<compile_context>
chip_gen: v7x
topology: tpu7x:2x2x1
jax: 0.10.0
libtpu: 0.0.40
codegen_flags: <defaults>
</compile_context>

<pallas_src>
import numpy as np

import jax
import jax.numpy as jnp
from jax.experimental import pallas as pl
from jax.experimental.pallas import tpu as pltpu

# ----------------------------------------------------------------------------
# Problem geometry / layout constants.
# ----------------------------------------------------------------------------
H = W = 16
HW = H * W                        # 256 -> lane axis
PAD = 128                         # zero halo each side of the flattened rows
HALO_W = 2 * PAD + HW             # 512
MAX_CIN = 8                       # im2col row-block stride (max conv cin)
NTAPS = 9
IM2COL_K = NTAPS * MAX_CIN        # 72
IMG_CHANNELS = (3, 8, 16)         # cfg.MULTIMODAL_FUSION.IMG_CHANNELS
DCT_CHANNELS = (4, 8)             # cfg.MULTIMODAL_FUSION.DCT_CHANNELS
NUM_CLASSES = 2                   # len(cfg.CLASSES)
C1 = IMG_CHANNELS[1]              # 8   (block-1 out channels per modality)
C2 = IMG_CHANNELS[2]              # 16  (block-2 out channels per modality)

# bf16 parameter slab (width HW=256): column masks + both conv-weight matrices.
ROW_CMASK = 0                     # rows 0..2   : (3, HW) column masks
ROW_W1 = 8                        # rows 8..23  : (2*C1, 72) block-1 weights
ROW_W2 = ROW_W1 + 2 * C1          # rows 24..55 : (2*C2, 72) block-2 weights
BF_ROWS = ROW_W2 + 2 * C2         # 56

# f32 parameter slab (width 32): attention weights, biases, classifier.
F32_COLS = 2 * C2                 # 32
ROW_ATT1 = 0                      # rows  0..15 : W_att1 (16,16); b1 col16; b_att1 col17
ROW_ATT2 = ROW_ATT1 + 2 * C1      # rows 16..47 : W_att2 (32,32)
ROW_B2 = ROW_ATT2 + 2 * C2        # rows 48..79 : b2 col0; b_att2 col1
ROW_CLS = ROW_B2 + 2 * C2         # rows 80..81 : Wcls (2,16); bcls col16
F32_ROWS = ROW_CLS + NUM_CLASSES  # 82
COL_B1 = 2 * C1                   # 16
COL_BATT1 = COL_B1 + 1            # 17
COL_BCLS = C2                     # 16


# ----------------------------------------------------------------------------
# Fused kernel: whole Image_n_DCT forward for a tile of B images.
# ----------------------------------------------------------------------------
def _fused_forward_kernel(bfs_ref, fps_ref, rgb_ref, dct_ref, o_ref,
                          hbuf_ref, r_ref, act1_ref):
    B = rgb_ref.shape[1] // HW

    # Re-zero only the halo margins (one bf16 vreg worth), every step: cheap and
    # correct under megacore "parallel" grid splitting (see header comment).
    hbuf_ref[:, 0:PAD] = jnp.zeros((MAX_CIN, PAD), jnp.bfloat16)
    hbuf_ref[:, PAD + HW:HALO_W] = jnp.zeros((MAX_CIN, PAD), jnp.bfloat16)

    # Hoisted parameter loads (shared by every image of the tile).
    cmask = bfs_ref[ROW_CMASK:ROW_CMASK + 3, :]                     # (3, HW) bf16
    w1 = bfs_ref[ROW_W1:ROW_W1 + 2 * C1, 0:IM2COL_K]                # (16, 72) bf16
    w2 = bfs_ref[ROW_W2:ROW_W2 + 2 * C2, 0:IM2COL_K]                # (32, 72) bf16
    watt1 = fps_ref[ROW_ATT1:ROW_ATT1 + 2 * C1, 0:2 * C1]           # (16, 16) f32
    b1 = fps_ref[ROW_ATT1:ROW_ATT1 + 2 * C1, COL_B1:COL_B1 + 1]     # (16, 1)
    batt1 = fps_ref[ROW_ATT1:ROW_ATT1 + 2 * C1, COL_BATT1:COL_BATT1 + 1]
    watt2 = fps_ref[ROW_ATT2:ROW_ATT2 + 2 * C2, 0:2 * C2]           # (32, 32)
    b2 = fps_ref[ROW_B2:ROW_B2 + 2 * C2, 0:1]                       # (32, 1)
    batt2 = fps_ref[ROW_B2:ROW_B2 + 2 * C2, 1:2]
    wcls = fps_ref[ROW_CLS:ROW_CLS + NUM_CLASSES, 0:C2]             # (2, 16)
    bcls = fps_ref[ROW_CLS:ROW_CLS + NUM_CLASSES, COL_BCLS:COL_BCLS + 1]

    inv_hw = 1.0 / HW
    zero_fill = jnp.zeros((MAX_CIN - IMG_CHANNELS[0] - DCT_CHANNELS[0], HW),
                          jnp.float32)                              # hoisted

    def conv3x3_bn_relu(x8_bf16, w, b):
        # x8_bf16: (8, HW) bf16 input rows (unused rows are zero, their weight
        # columns are zero too).  w: (cout, 72) bf16 (BN folded).  b: (cout, 1).
        hbuf_ref[:, PAD:PAD + HW] = x8_bf16            # zero halo => row padding
        for k in range(NTAPS):                         # build (72, HW) im2col RHS
            dy, dx = divmod(k, 3)
            off = (dy - 1) * W + (dx - 1)
            tap = hbuf_ref[:, PAD + off:PAD + off + HW]              # lane-shifted
            if dx != 1:                                # column-pad mask (0/1 bf16)
                tap = tap * cmask[dx:dx + 1, :]
            r_ref[k * MAX_CIN:(k + 1) * MAX_CIN, :] = tap            # aligned store
        acc = jnp.dot(w, r_ref[...],                   # single MXU GEMM, K = 72
                      preferred_element_type=jnp.float32)
        return jnp.maximum(acc + b, 0.0)               # (cout, HW) f32

    def gap(y):                                        # XLU lane reduction, no MXU
        return jnp.sum(y, axis=1, keepdims=True) * inv_hw            # (cout, 1)

    def sigmoid(z):                                    # divide -> EUP reciprocal
        return pl.reciprocal(1.0 + jnp.exp(-z), approx=True)

    # ---- Block 1: img & dct convs fused into one block-diagonal GEMM / image.
    pooled1 = []
    for b_i in range(B):
        lo = b_i * HW
        x8 = jnp.concatenate([rgb_ref[:, lo:lo + HW],
                              dct_ref[:, lo:lo + HW],
                              zero_fill], axis=0)                    # (8, HW) f32
        y1 = conv3x3_bn_relu(x8.astype(jnp.bfloat16), w1, b1)        # (16, HW)
        act1_ref[:, lo:lo + HW] = y1                   # rows 0..7 img, 8..15 dct
        pooled1.append(gap(y1))
    pooled1 = jnp.concatenate(pooled1, axis=1)                       # (16, B)

    # Channel attention for both modalities, batched over the tile (N = B).
    # NOTE: default MXU precision (single-pass bf16) on these f32 dots; the
    # reference uses Precision.HIGHEST -- covered by the 1e-2 test tolerance.
    att1 = sigmoid(jnp.dot(watt1, pooled1,
                           preferred_element_type=jnp.float32) + batt1)  # (16, B)

    # ---- Block 2: the fused map feeds both convs -> shared im2col, stacked GEMM.
    pooled2 = []
    for b_i in range(B):
        lo = b_i * HW
        fused = (act1_ref[0:C1, lo:lo + HW] * att1[0:C1, b_i:b_i + 1]
                 + act1_ref[C1:2 * C1, lo:lo + HW] * att1[C1:2 * C1, b_i:b_i + 1])
        y2 = conv3x3_bn_relu(fused.astype(jnp.bfloat16), w2, b2)     # (32, HW)
        pooled2.append(gap(y2))
    pooled2 = jnp.concatenate(pooled2, axis=1)                       # (32, B)

    att2 = sigmoid(jnp.dot(watt2, pooled2,
                           preferred_element_type=jnp.float32) + batt2)  # (32, B)

    # GAP is linear and the attention scale is spatially constant, so the final
    # fusion + classifier collapse onto the pooled vectors (no spatial pass).
    pooled_fused = (pooled2[0:C2, :] * att2[0:C2, :]
                    + pooled2[C2:2 * C2, :] * att2[C2:2 * C2, :])    # (16, B)
    o_ref[0] = (jnp.dot(wcls, pooled_fused,
                        preferred_element_type=jnp.float32) + bcls)  # (2, B)


# ----------------------------------------------------------------------------
# Parameter packing (BN fold, im2col-column weights, slabs) and the wrapper.
# ----------------------------------------------------------------------------
def _fold_bn(p, eps=1e-5):
    scale = p["gamma"] / jnp.sqrt(p["var"] + eps)
    wf = p["w"] * scale[:, None, None, None]                 # (cout, cin, 3, 3)
    bf = p["b"] * scale + (p["beta"] - p["mean"] * scale)    # (cout,)
    return wf, bf


def _conv_cols(wf, ci_offset):
    """(cout, cin, 3, 3) -> (cout, 72); column index = 8*tap + ci_offset + ci."""
    cout, cin = wf.shape[0], wf.shape[1]
    w = jnp.transpose(wf, (2, 3, 1, 0)).reshape(NTAPS, cin, cout)    # (k, ci, o)
    full = jnp.zeros((NTAPS, MAX_CIN, cout), wf.dtype)
    full = full.at[:, ci_offset:ci_offset + cin, :].set(w)
    return full.reshape(IM2COL_K, cout).T


def _column_masks():
    j = np.arange(HW) % W
    m = np.stack([(j + dx - 1 >= 0) & (j + dx - 1 < W) for dx in range(3)], axis=0)
    return m.astype(np.float32)                                       # (3, HW)


def _pack_params(params):
    blk1, blk2 = params["blocks"]
    wi1, bi1 = _fold_bn(blk1["img"])
    wd1, bd1 = _fold_bn(blk1["dct"])
    wi2, bi2 = _fold_bn(blk2["img"])
    wd2, bd2 = _fold_bn(blk2["dct"])
    f1, f2, cls = blk1["fusion"], blk2["fusion"], params["classifier"]

    # Block 1: rgb channels at im2col rows +0..2, dct channels at +3..6.
    w1 = jnp.concatenate([_conv_cols(wi1, 0),
                          _conv_cols(wd1, IMG_CHANNELS[0])], axis=0)  # (16, 72)
    # Block 2: both convs read the same fused 8-channel input.
    w2 = jnp.concatenate([_conv_cols(wi2, 0), _conv_cols(wd2, 0)], axis=0)  # (32,72)

    bf_slab = jnp.zeros((BF_ROWS, HW), jnp.float32)
    bf_slab = bf_slab.at[ROW_CMASK:ROW_CMASK + 3, :].set(jnp.asarray(_column_masks()))
    bf_slab = bf_slab.at[ROW_W1:ROW_W1 + 2 * C1, 0:IM2COL_K].set(w1)
    bf_slab = bf_slab.at[ROW_W2:ROW_W2 + 2 * C2, 0:IM2COL_K].set(w2)
    bf_slab = bf_slab.astype(jnp.bfloat16)       # weights rounded once (masks exact)

    watt1 = (jnp.zeros((2 * C1, 2 * C1), jnp.float32)
             .at[0:C1, 0:C1].set(f1["wr"]).at[C1:, C1:].set(f1["wd"]))
    watt2 = (jnp.zeros((2 * C2, 2 * C2), jnp.float32)
             .at[0:C2, 0:C2].set(f2["wr"]).at[C2:, C2:].set(f2["wd"]))

    fp = jnp.zeros((F32_ROWS, F32_COLS), jnp.float32)
    fp = fp.at[ROW_ATT1:ROW_ATT1 + 2 * C1, 0:2 * C1].set(watt1)
    fp = fp.at[ROW_ATT1:ROW_ATT1 + 2 * C1, COL_B1].set(jnp.concatenate([bi1, bd1]))
    fp = fp.at[ROW_ATT1:ROW_ATT1 + 2 * C1, COL_BATT1].set(
        jnp.concatenate([f1["br"], f1["bd"]]))
    fp = fp.at[ROW_ATT2:ROW_ATT2 + 2 * C2, 0:2 * C2].set(watt2)
    fp = fp.at[ROW_B2:ROW_B2 + 2 * C2, 0].set(jnp.concatenate([bi2, bd2]))
    fp = fp.at[ROW_B2:ROW_B2 + 2 * C2, 1].set(jnp.concatenate([f2["br"], f2["bd"]]))
    fp = fp.at[ROW_CLS:ROW_CLS + NUM_CLASSES, 0:C2].set(cls["w"])
    fp = fp.at[ROW_CLS:ROW_CLS + NUM_CLASSES, COL_BCLS].set(cls["b"])
    return bf_slab, fp


def image_n_dct_forward(params, rgb_nchw, dct_nchw, b_tile=4):
    N = rgb_nchw.shape[0]
    assert rgb_nchw.shape[1:] == (IMG_CHANNELS[0], H, W)
    assert dct_nchw.shape[1:] == (DCT_CHANNELS[0], H, W)
    grid = max(1, pl.cdiv(N, b_tile))
    n_pad = grid * b_tile

    def to_lane_major(x):
        # NCHW -> channel-major (C, N*H*W): HW (and the batch tile) on lanes.
        x = jnp.pad(x, ((0, n_pad - N), (0, 0), (0, 0), (0, 0)))
        return jnp.transpose(x, (1, 0, 2, 3)).reshape(x.shape[1], n_pad * HW)

    rgb2 = to_lane_major(rgb_nchw)
    dct2 = to_lane_major(dct_nchw)
    bf_slab, f32_slab = _pack_params(params)

    out = pl.pallas_call(
        _fused_forward_kernel,
        out_shape=jax.ShapeDtypeStruct((grid, NUM_CLASSES, b_tile), jnp.float32),
        grid_spec=pltpu.PrefetchScalarGridSpec(
            num_scalar_prefetch=0,
            grid=(grid,),                              # B_TILE images per step
            in_specs=[
                pl.BlockSpec((BF_ROWS, HW), lambda n: (0, 0)),
                pl.BlockSpec((F32_ROWS, F32_COLS), lambda n: (0, 0)),
                pl.BlockSpec((IMG_CHANNELS[0], b_tile * HW), lambda n: (0, n)),
                pl.BlockSpec((DCT_CHANNELS[0], b_tile * HW), lambda n: (0, n)),
            ],
            out_specs=pl.BlockSpec((1, NUM_CLASSES, b_tile), lambda n: (n, 0, 0)),
            scratch_shapes=[
                pltpu.VMEM((MAX_CIN, HALO_W), jnp.bfloat16),      # halo row buffer
                pltpu.VMEM((IM2COL_K, HW), jnp.bfloat16),         # im2col RHS
                pltpu.VMEM((2 * C1, b_tile * HW), jnp.float32),   # block-1 acts
            ],
        ),
        # Batch-tile axis is embarrassingly parallel; with >=2 grid steps both
        # v7x TensorCores get work.  Footprint ~250 KiB -> no vmem override.
        compiler_params=pltpu.CompilerParams(
            dimension_semantics=("parallel",)),
    )(bf_slab, f32_slab, rgb2, dct2)

    return out.transpose(0, 2, 1).reshape(n_pad, NUM_CLASSES)[:N]


# ----------------------------------------------------------------------------
# Synthetic parameters and a pure-JAX reference (same bf16 conv rounding).
# ----------------------------------------------------------------------------
def init_params(key):
    kit = iter(jax.random.split(key, 64))

    def conv_bn(cin, cout):
        return {
            "w": 0.3 * jax.random.normal(next(kit), (cout, cin, 3, 3), jnp.float32),
            "b": 0.05 * jax.random.normal(next(kit), (cout,), jnp.float32),
            "gamma": 1.0 + 0.1 * jax.random.normal(next(kit), (cout,), jnp.float32),
            "beta": 0.05 * jax.random.normal(next(kit), (cout,), jnp.float32),
            "mean": 0.05 * jax.random.normal(next(kit), (cout,), jnp.float32),
            "var": jax.random.uniform(next(kit), (cout,), jnp.float32, 0.5, 1.5),
        }

    blocks = []
    for i in range(len(IMG_CHANNELS) - 1):
        cout = IMG_CHANNELS[i + 1]
        blocks.append({
            "img": conv_bn(IMG_CHANNELS[i], cout),
            "dct": conv_bn(DCT_CHANNELS[i], cout),
            "fusion": {
                "wr": 0.3 * jax.random.normal(next(kit), (cout, cout), jnp.float32),
                "br": 0.05 * jax.random.normal(next(kit), (cout,), jnp.float32),
                "wd": 0.3 * jax.random.normal(next(kit), (cout, cout), jnp.float32),
                "bd": 0.05 * jax.random.normal(next(kit), (cout,), jnp.float32),
            },
        })
    cls = {
        "w": 0.3 * jax.random.normal(next(kit), (NUM_CLASSES, IMG_CHANNELS[-1]),
                                     jnp.float32),
        "b": 0.05 * jax.random.normal(next(kit), (NUM_CLASSES,), jnp.float32),
    }
    return {"blocks": blocks, "classifier": cls}


def reference_forward(params, rgb, dct):
    hi = jax.lax.Precision.HIGHEST

    def conv_bn_relu(x, p):
        wf, bf = _fold_bn(p)
        wf = wf.astype(jnp.bfloat16).astype(jnp.float32)     # same rounding as
        xb = x.astype(jnp.bfloat16).astype(jnp.float32)      # the kernel
        n, cin, h, w = x.shape
        cout = wf.shape[0]
        xp = jnp.pad(xb, ((0, 0), (0, 0), (1, 1), (1, 1)))
        y = jnp.zeros((n, cout, h, w), jnp.float32)
        for dy in range(3):
            for dx in range(3):
                y = y + jnp.einsum("oc,nchw->nohw", wf[:, :, dy, dx],
                                   xp[:, :, dy:dy + h, dx:dx + w], precision=hi)
        return jnp.maximum(y + bf[None, :, None, None], 0.0)

    def fuse(a, b, fp):
        pa, pb = a.mean(axis=(2, 3)), b.mean(axis=(2, 3))
        aa = jax.nn.sigmoid(jnp.dot(pa, fp["wr"].T, precision=hi) + fp["br"][None, :])
        ab = jax.nn.sigmoid(jnp.dot(pb, fp["wd"].T, precision=hi) + fp["bd"][None, :])
        return a * aa[:, :, None, None] + b * ab[:, :, None, None]

    img, d = rgb, dct
    for blk in params["blocks"]:
        img = conv_bn_relu(img, blk["img"])
        d = conv_bn_relu(d, blk["dct"])
        img = fuse(img, d, blk["fusion"])
        d = img
    pool = img.mean(axis=(2, 3))
    cls = params["classifier"]
    return jnp.dot(pool, cls["w"].T, precision=hi) + cls["b"][None, :]


if __name__ == "__main__":
    key = jax.random.PRNGKey(0)
    k_rgb, k_dct, k_par = jax.random.split(key, 3)
    N = 8
    rgb = jax.random.normal(k_rgb, (N, IMG_CHANNELS[0], H, W), jnp.float32)  # NCHW
    dct = jax.random.normal(k_dct, (N, DCT_CHANNELS[0], H, W), jnp.float32)  # NCHW
    params = init_params(k_par)

    fwd = jax.jit(lambda p, a, b: image_n_dct_forward(p, a, b, b_tile=4))
    out = jax.block_until_ready(fwd(params, rgb, dct))
    assert out.shape == (N, NUM_CLASSES) and out.dtype == jnp.float32

    # Tolerance covers MXU accumulation order, default-precision f32 dots on the
    # tiny attention/classifier GEMMs and the EUP approx-reciprocal sigmoid.
    ref = jax.block_until_ready(reference_forward(params, rgb, dct))
    np.testing.assert_allclose(np.asarray(out), np.asarray(ref),
                               rtol=1e-2, atol=1e-2)
    print("KERNEL_OK")
</pallas_src>

<mosaic_0001>
module attributes {stable_mosaic.version = 11 : i64} {
  func.func @_fused_forward_kernel(%arg0: i32, %arg1: memref<56x256xbf16, #tpu.memory_space<vmem>>, %arg2: memref<82x32xf32, #tpu.memory_space<vmem>>, %arg3: memref<3x1024xf32, #tpu.memory_space<vmem>>, %arg4: memref<4x1024xf32, #tpu.memory_space<vmem>>, %arg5: memref<1x2x4xf32, #tpu.memory_space<vmem>>, %arg6: memref<8x512xbf16, #tpu.memory_space<vmem>>, %arg7: memref<72x256xbf16, #tpu.memory_space<vmem>>, %arg8: memref<16x1024xf32, #tpu.memory_space<vmem>>) attributes {dimension_semantics = [#tpu.dimension_semantics<parallel>], iteration_bounds = array<i64: 2>, scalar_prefetch = 0 : i64, scratch_operands = 3 : i64, tpu.core_type = #tpu.core_type<tc>, window_params = [{pipeline_mode = #tpu.pipeline_mode<synchronous>, transform_indices = @transform_0, window_bounds = array<i64: 56, 256>}, {pipeline_mode = #tpu.pipeline_mode<synchronous>, transform_indices = @transform_1, window_bounds = array<i64: 82, 32>}, {transform_indices = @transform_2, window_bounds = array<i64: 3, 1024>}, {transform_indices = @transform_3, window_bounds = array<i64: 4, 1024>}, {transform_indices = @transform_4, window_bounds = array<i64: 1, 2, 4>}]} {
    %cst = arith.constant 0.000000e+00 : bf16
    %0 = vector.broadcast %cst : bf16 to vector<8x128xbf16>
    %c0 = arith.constant 0 : index
    %c0_0 = arith.constant 0 : index
    %1 = vector.load %arg6[%c0, %c0_0] : memref<8x512xbf16, #tpu.memory_space<vmem>>, vector<8x128xbf16>
    tpu.vector_store %arg6[%c0, %c0_0], %0 {strides = array<i32>} : memref<8x512xbf16, #tpu.memory_space<vmem>>, vector<8x128xbf16>,
    %cst_1 = arith.constant 0.000000e+00 : bf16
    %2 = vector.broadcast %cst_1 : bf16 to vector<8x128xbf16>
    %c0_2 = arith.constant 0 : index
    %c384 = arith.constant 384 : index
    %3 = vector.load %arg6[%c0_2, %c384] : memref<8x512xbf16, #tpu.memory_space<vmem>>, vector<8x128xbf16>
    tpu.vector_store %arg6[%c0_2, %c384], %2 {strides = array<i32>} : memref<8x512xbf16, #tpu.memory_space<vmem>>, vector<8x128xbf16>,
    %c0_3 = arith.constant 0 : index
    %c0_4 = arith.constant 0 : index
    %4 = vector.load %arg1[%c0_3, %c0_4] : memref<56x256xbf16, #tpu.memory_space<vmem>>, vector<3x256xbf16>
    %c8 = arith.constant 8 : index
    %c0_5 = arith.constant 0 : index
    %5 = vector.load %arg1[%c8, %c0_5] : memref<56x256xbf16, #tpu.memory_space<vmem>>, vector<16x72xbf16>
    %c24 = arith.constant 24 : index
    %c0_6 = arith.constant 0 : index
    %6 = vector.load %arg1[%c24, %c0_6] : memref<56x256xbf16, #tpu.memory_space<vmem>>, vector<32x72xbf16>
    %c0_7 = arith.constant 0 : index
    %c0_8 = arith.constant 0 : index
    %7 = vector.load %arg2[%c0_7, %c0_8] : memref<82x32xf32, #tpu.memory_space<vmem>>, vector<16x16xf32>
    %c0_9 = arith.constant 0 : index
    %c16 = arith.constant 16 : index
    %8 = vector.load %arg2[%c0_9, %c16] : memref<82x32xf32, #tpu.memory_space<vmem>>, vector<16x1xf32>
    %c0_10 = arith.constant 0 : index
    %c17 = arith.constant 17 : index
    %9 = vector.load %arg2[%c0_10, %c17] : memref<82x32xf32, #tpu.memory_space<vmem>>, vector<16x1xf32>
    %c16_11 = arith.constant 16 : index
    %c0_12 = arith.constant 0 : index
    %10 = vector.load %arg2[%c16_11, %c0_12] : memref<82x32xf32, #tpu.memory_space<vmem>>, vector<32x32xf32>
    %c48 = arith.constant 48 : index
    %c0_13 = arith.constant 0 : index
    %11 = vector.load %arg2[%c48, %c0_13] : memref<82x32xf32, #tpu.memory_space<vmem>>, vector<32x1xf32>
    %c48_14 = arith.constant 48 : index
    %c1 = arith.constant 1 : index
    %12 = vector.load %arg2[%c48_14, %c1] : memref<82x32xf32, #tpu.memory_space<vmem>>, vector<32x1xf32>
    %c80 = arith.constant 80 : index
    %c0_15 = arith.constant 0 : index
    %13 = vector.load %arg2[%c80, %c0_15] : memref<82x32xf32, #tpu.memory_space<vmem>>, vector<2x16xf32>
    %c80_16 = arith.constant 80 : index
    %c16_17 = arith.constant 16 : index
    %14 = vector.load %arg2[%c80_16, %c16_17] : memref<82x32xf32, #tpu.memory_space<vmem>>, vector<2x1xf32>
    %cst_18 = arith.constant 0.000000e+00 : f32
    %15 = vector.broadcast %cst_18 : f32 to vector<1x256xf32>
    %c0_19 = arith.constant 0 : index
    %c0_20 = arith.constant 0 : index
    %16 = vector.load %arg3[%c0_19, %c0_20] : memref<3x1024xf32, #tpu.memory_space<vmem>>, vector<3x256xf32>
    %c0_21 = arith.constant 0 : index
    %c0_22 = arith.constant 0 : index
    %17 = vector.load %arg4[%c0_21, %c0_22] : memref<4x1024xf32, #tpu.memory_space<vmem>>, vector<4x256xf32>
    %18 = tpu.concatenate %16, %17, %15 in 0 : vector<3x256xf32>, vector<4x256xf32>, vector<1x256xf32> -> vector<8x256xf32>
    %19 = arith.truncf %18 : vector<8x256xf32> to vector<8x256xbf16>
    %c0_23 = arith.constant 0 : index
    %c128 = arith.constant 128 : index
    %20 = vector.load %arg6[%c0_23, %c128] : memref<8x512xbf16, #tpu.memory_space<vmem>>, vector<8x256xbf16>
    tpu.vector_store %arg6[%c0_23, %c128], %19 {strides = array<i32>} : memref<8x512xbf16, #tpu.memory_space<vmem>>, vector<8x256xbf16>,
    %c0_24 = arith.constant 0 : index
    %c111 = arith.constant 111 : index
    %21 = vector.load %arg6[%c0_24, %c111] : memref<8x512xbf16, #tpu.memory_space<vmem>>, vector<8x256xbf16>
    %22 = vector.extract_strided_slice %4 {offsets = [0, 0], sizes = [1, 256], strides = [1, 1]} : vector<3x256xbf16> to vector<1x256xbf16>
    %23 = vector.broadcast %22 : vector<1x256xbf16> to vector<8x256xbf16>
    %24 = arith.mulf %21, %23 : vector<8x256xbf16>
    %c0_25 = arith.constant 0 : index
    %c0_26 = arith.constant 0 : index
    %25 = vector.load %arg7[%c0_25, %c0_26] : memref<72x256xbf16, #tpu.memory_space<vmem>>, vector<8x256xbf16>
    tpu.vector_store %arg7[%c0_25, %c0_26], %24 {strides = array<i32>} : memref<72x256xbf16, #tpu.memory_space<vmem>>, vector<8x256xbf16>,
    %c0_27 = arith.constant 0 : index
    %c112 = arith.constant 112 : index
    %26 = vector.load %arg6[%c0_27, %c112] : memref<8x512xbf16, #tpu.memory_space<vmem>>, vector<8x256xbf16>
    %c8_28 = arith.constant 8 : index
    %c0_29 = arith.constant 0 : index
    %27 = vector.load %arg7[%c8_28, %c0_29] : memref<72x256xbf16, #tpu.memory_space<vmem>>, vector<8x256xbf16>
    tpu.vector_store %arg7[%c8_28, %c0_29], %26 {strides = array<i32>} : memref<72x256xbf16, #tpu.memory_space<vmem>>, vector<8x256xbf16>,
    %c0_30 = arith.constant 0 : index
    %c113 = arith.constant 113 : index
    %28 = vector.load %arg6[%c0_30, %c113] : memref<8x512xbf16, #tpu.memory_space<vmem>>, vector<8x256xbf16>
    %29 = vector.extract_strided_slice %4 {offsets = [2, 0], sizes = [1, 256], strides = [1, 1]} : vector<3x256xbf16> to vector<1x256xbf16>
    %30 = vector.broadcast %29 : vector<1x256xbf16> to vector<8x256xbf16>
    %31 = arith.mulf %28, %30 : vector<8x256xbf16>
    %c16_31 = arith.constant 16 : index
    %c0_32 = arith.constant 0 : index
    %32 = vector.load %arg7[%c16_31, %c0_32] : memref<72x256xbf16, #tpu.memory_space<vmem>>, vector<8x256xbf16>
    tpu.vector_store %arg7[%c16_31, %c0_32], %31 {strides = array<i32>} : memref<72x256xbf16, #tpu.memory_space<vmem>>, vector<8x256xbf16>,
    %c0_33 = arith.constant 0 : index
    %c127 = arith.constant 127 : index
    %33 = vector.load %arg6[%c0_33, %c127] : memref<8x512xbf16, #tpu.memory_space<vmem>>, vector<8x256xbf16>
    %34 = vector.extract_strided_slice %4 {offsets = [0, 0], sizes = [1, 256], strides = [1, 1]} : vector<3x256xbf16> to vector<1x256xbf16>
    %35 = vector.broadcast %34 : vector<1x256xbf16> to vector<8x256xbf16>
    %36 = arith.mulf %33, %35 : vector<8x256xbf16>
    %c24_34 = arith.constant 24 : index
    %c0_35 = arith.constant 0 : index
    %37 = vector.load %arg7[%c24_34, %c0_35] : memref<72x256xbf16, #tpu.memory_space<vmem>>, vector<8x256xbf16>
    tpu.vector_store %arg7[%c24_34, %c0_35], %36 {strides = array<i32>} : memref<72x256xbf16, #tpu.memory_space<vmem>>, vector<8x256xbf16>,
    %c0_36 = arith.constant 0 : index
    %c128_37 = arith.constant 128 : index
    %38 = vector.load %arg6[%c0_36, %c128_37] : memref<8x512xbf16, #tpu.memory_space<vmem>>, vector<8x256xbf16>
    %c32 = arith.constant 32 : index
    %c0_38 = arith.constant 0 : index
    %39 = vector.load %arg7[%c32, %c0_38] : memref<72x256xbf16, #tpu.memory_space<vmem>>, vector<8x256xbf16>
    tpu.vector_store %arg7[%c32, %c0_38], %38 {strides = array<i32>} : memref<72x256xbf16, #tpu.memory_space<vmem>>, vector<8x256xbf16>,
    %c0_39 = arith.constant 0 : index
    %c129 = arith.constant 129 : index
    %40 = vector.load %arg6[%c0_39, %c129] : memref<8x512xbf16, #tpu.memory_space<vmem>>, vector<8x256xbf16>
    %41 = vector.extract_strided_slice %4 {offsets = [2, 0], sizes = [1, 256], strides = [1, 1]} : vector<3x256xbf16> to vector<1x256xbf16>
    %42 = vector.broadcast %41 : vector<1x256xbf16> to vector<8x256xbf16>
    %43 = arith.mulf %40, %42 : vector<8x256xbf16>
    %c40 = arith.constant 40 : index
    %c0_40 = arith.constant 0 : index
    %44 = vector.load %arg7[%c40, %c0_40] : memref<72x256xbf16, #tpu.memory_space<vmem>>, vector<8x256xbf16>
    tpu.vector_store %arg7[%c40, %c0_40], %43 {strides = array<i32>} : memref<72x256xbf16, #tpu.memory_space<vmem>>, vector<8x256xbf16>,
    %c0_41 = arith.constant 0 : index
    %c143 = arith.constant 143 : index
    %45 = vector.load %arg6[%c0_41, %c143] : memref<8x512xbf16, #tpu.memory_space<vmem>>, vector<8x256xbf16>
    %46 = vector.extract_strided_slice %4 {offsets = [0, 0], sizes = [1, 256], strides = [1, 1]} : vector<3x256xbf16> to vector<1x256xbf16>
    %47 = vector.broadcast %46 : vector<1x256xbf16> to vector<8x256xbf16>
    %48 = arith.mulf %45, %47 : vector<8x256xbf16>
    %c48_42 = arith.constant 48 : index
    %c0_43 = arith.constant 0 : index
    %49 = vector.load %arg7[%c48_42, %c0_43] : memref<72x256xbf16, #tpu.memory_space<vmem>>, vector<8x256xbf16>
    tpu.vector_store %arg7[%c48_42, %c0_43], %48 {strides = array<i32>} : memref<72x256xbf16, #tpu.memory_space<vmem>>, vector<8x256xbf16>,
    %c0_44 = arith.constant 0 : index
    %c144 = arith.constant 144 : index
    %50 = vector.load %arg6[%c0_44, %c144] : memref<8x512xbf16, #tpu.memory_space<vmem>>, vector<8x256xbf16>
    %c56 = arith.constant 56 : index
    %c0_45 = arith.constant 0 : index
    %51 = vector.load %arg7[%c56, %c0_45] : memref<72x256xbf16, #tpu.memory_space<vmem>>, vector<8x256xbf16>
    tpu.vector_store %arg7[%c56, %c0_45], %50 {strides = array<i32>} : memref<72x256xbf16, #tpu.memory_space<vmem>>, vector<8x256xbf16>,
    %c0_46 = arith.constant 0 : index
    %c145 = arith.constant 145 : index
    %52 = vector.load %arg6[%c0_46, %c145] : memref<8x512xbf16, #tpu.memory_space<vmem>>, vector<8x256xbf16>
    %53 = vector.extract_strided_slice %4 {offsets = [2, 0], sizes = [1, 256], strides = [1, 1]} : vector<3x256xbf16> to vector<1x256xbf16>
    %54 = vector.broadcast %53 : vector<1x256xbf16> to vector<8x256xbf16>
    %55 = arith.mulf %52, %54 : vector<8x256xbf16>
    %c64 = arith.constant 64 : index
    %c0_47 = arith.constant 0 : index
    %56 = vector.load %arg7[%c64, %c0_47] : memref<72x256xbf16, #tpu.memory_space<vmem>>, vector<8x256xbf16>
    tpu.vector_store %arg7[%c64, %c0_47], %55 {strides = array<i32>} : memref<72x256xbf16, #tpu.memory_space<vmem>>, vector<8x256xbf16>,
    %c0_48 = arith.constant 0 : index
    %c0_49 = arith.constant 0 : index
    %57 = vector.load %arg7[%c0_48, %c0_49] : memref<72x256xbf16, #tpu.memory_space<vmem>>, vector<72x256xbf16>
    %cst_50 = arith.constant dense<0.000000e+00> : vector<16x256xf32>
    %58 = tpu.matmul %5, %57, %cst_50 {dimension_numbers = #tpu.dot_dimension_numbers<[1], [0], [0], [1], [0, 0, 1, 1], [], []>} : vector<16x72xbf16>, vector<72x256xbf16>, vector<16x256xf32> -> vector<16x256xf32>
    %59 = vector.broadcast %8 : vector<16x1xf32> to vector<16x256xf32>
    %60 = arith.addf %58, %59 : vector<16x256xf32>
    %cst_51 = arith.constant 0.000000e+00 : f32
    %61 = vector.broadcast %cst_51 : f32 to vector<16x256xf32>
    %62 = arith.maximumf %60, %61 : vector<16x256xf32>
    %c0_52 = arith.constant 0 : index
    %c0_53 = arith.constant 0 : index
    %63 = vector.load %arg8[%c0_52, %c0_53] : memref<16x1024xf32, #tpu.memory_space<vmem>>, vector<16x256xf32>
    tpu.vector_store %arg8[%c0_52, %c0_53], %62 {strides = array<i32>} : memref<16x1024xf32, #tpu.memory_space<vmem>>, vector<16x256xf32>,
    %cst_54 = arith.constant dense<0.000000e+00> : vector<16xf32>
    %64 = vector.multi_reduction <add>, %62, %cst_54 [1] : vector<16x256xf32> to vector<16xf32>
    %65 = vector.shape_cast %64 : vector<16xf32> to vector<16x1xf32>
    %cst_55 = arith.constant 3.906250e-03 : f32
    %66 = vector.broadcast %cst_55 : f32 to vector<16x1xf32>
    %67 = arith.mulf %65, %66 : vector<16x1xf32>
    %c0_56 = arith.constant 0 : index
    %c256 = arith.constant 256 : index
    %68 = vector.load %arg3[%c0_56, %c256] : memref<3x1024xf32, #tpu.memory_space<vmem>>, vector<3x256xf32>
    %c0_57 = arith.constant 0 : index
    %c256_58 = arith.constant 256 : index
    %69 = vector.load %arg4[%c0_57, %c256_58] : memref<4x1024xf32, #tpu.memory_space<vmem>>, vector<4x256xf32>
    %70 = tpu.concatenate %68, %69, %15 in 0 : vector<3x256xf32>, vector<4x256xf32>, vector<1x256xf32> -> vector<8x256xf32>
    %71 = arith.truncf %70 : vector<8x256xf32> to vector<8x256xbf16>
    %c0_59 = arith.constant 0 : index
    %c128_60 = arith.constant 128 : index
    %72 = vector.load %arg6[%c0_59, %c128_60] : memref<8x512xbf16, #tpu.memory_space<vmem>>, vector<8x256xbf16>
    tpu.vector_store %arg6[%c0_59, %c128_60], %71 {strides = array<i32>} : memref<8x512xbf16, #tpu.memory_space<vmem>>, vector<8x256xbf16>,
    %c0_61 = arith.constant 0 : index
    %c111_62 = arith.constant 111 : index
    %73 = vector.load %arg6[%c0_61, %c111_62] : memref<8x512xbf16, #tpu.memory_space<vmem>>, vector<8x256xbf16>
    %74 = vector.extract_strided_slice %4 {offsets = [0, 0], sizes = [1, 256], strides = [1, 1]} : vector<3x256xbf16> to vector<1x256xbf16>
    %75 = vector.broadcast %74 : vector<1x256xbf16> to vector<8x256xbf16>
    %76 = arith.mulf %73, %75 : vector<8x256xbf16>
    %c0_63 = arith.constant 0 : index
    %c0_64 = arith.constant 0 : index
    %77 = vector.load %arg7[%c0_63, %c0_64] : memref<72x256xbf16, #tpu.memory_space<vmem>>, vector<8x256xbf16>
    tpu.vector_store %arg7[%c0_63, %c0_64], %76 {strides = array<i32>} : memref<72x256xbf16, #tpu.memory_space<vmem>>, vector<8x256xbf16>,
    %c0_65 = arith.constant 0 : index
    %c112_66 = arith.constant 112 : index
    %78 = vector.load %arg6[%c0_65, %c112_66] : memref<8x512xbf16, #tpu.memory_space<vmem>>, vector<8x256xbf16>
    %c8_67 = arith.constant 8 : index
    %c0_68 = arith.constant 0 : index
    %79 = vector.load %arg7[%c8_67, %c0_68] : memref<72x256xbf16, #tpu.memory_space<vmem>>, vector<8x256xbf16>
    tpu.vector_store %arg7[%c8_67, %c0_68], %78 {strides = array<i32>} : memref<72x256xbf16, #tpu.memory_space<vmem>>, vector<8x256xbf16>,
    %c0_69 = arith.constant 0 : index
    %c113_70 = arith.constant 113 : index
    %80 = vector.load %arg6[%c0_69, %c113_70] : memref<8x512xbf16, #tpu.memory_space<vmem>>, vector<8x256xbf16>
    %81 = vector.extract_strided_slice %4 {offsets = [2, 0], sizes = [1, 256], strides = [1, 1]} : vector<3x256xbf16> to vector<1x256xbf16>
    %82 = vector.broadcast %81 : vector<1x256xbf16> to vector<8x256xbf16>
    %83 = arith.mulf %80, %82 : vector<8x256xbf16>
    %c16_71 = arith.constant 16 : index
    %c0_72 = arith.constant 0 : index
    %84 = vector.load %arg7[%c16_71, %c0_72] : memref<72x256xbf16, #tpu.memory_space<vmem>>, vector<8x256xbf16>
    tpu.vector_store %arg7[%c16_71, %c0_72], %83 {strides = array<i32>} : memref<72x256xbf16, #tpu.memory_space<vmem>>, vector<8x256xbf16>,
    %c0_73 = arith.constant 0 : index
    %c127_74 = arith.constant 127 : index
    %85 = vector.load %arg6[%c0_73, %c127_74] : memref<8x512xbf16, #tpu.memory_space<vmem>>, vector<8x256xbf16>
    %86 = vector.extract_strided_slice %4 {offsets = [0, 0], sizes = [1, 256], strides = [1, 1]} : vector<3x256xbf16> to vector<1x256xbf16>
    %87 = vector.broadcast %86 : vector<1x256xbf16> to vector<8x256xbf16>
    %88 = arith.mulf %85, %87 : vector<8x256xbf16>
    %c24_75 = arith.constant 24 : index
    %c0_76 = arith.constant 0 : index
    %89 = vector.load %arg7[%c24_75, %c0_76] : memref<72x256xbf16, #tpu.memory_space<vmem>>, vector<8x256xbf16>
    tpu.vector_store %arg7[%c24_75, %c0_76], %88 {strides = array<i32>} : memref<72x256xbf16, #tpu.memory_space<vmem>>, vector<8x256xbf16>,
    %c0_77 = arith.constant 0 : index
    %c128_78 = arith.constant 128 : index
    %90 = vector.load %arg6[%c0_77, %c128_78] : memref<8x512xbf16, #tpu.memory_space<vmem>>, vector<8x256xbf16>
    %c32_79 = arith.constant 32 : index
    %c0_80 = arith.constant 0 : index
    %91 = vector.load %arg7[%c32_79, %c0_80] : memref<72x256xbf16, #tpu.memory_space<vmem>>, vector<8x256xbf16>
    tpu.vector_store %arg7[%c32_79, %c0_80], %90 {strides = array<i32>} : memref<72x256xbf16, #tpu.memory_space<vmem>>, vector<8x256xbf16>,
    %c0_81 = arith.constant 0 : index
    %c129_82 = arith.constant 129 : index
    %92 = vector.load %arg6[%c0_81, %c129_82] : memref<8x512xbf16, #tpu.memory_space<vmem>>, vector<8x256xbf16>
    %93 = vector.extract_strided_slice %4 {offsets = [2, 0], sizes = [1, 256], strides = [1, 1]} : vector<3x256xbf16> to vector<1x256xbf16>
    %94 = vector.broadcast %93 : vector<1x256xbf16> to vector<8x256xbf16>
    %95 = arith.mulf %92, %94 : vector<8x256xbf16>
    %c40_83 = arith.constant 40 : index
    %c0_84 = arith.constant 0 : index
    %96 = vector.load %arg7[%c40_83, %c0_84] : memref<72x256xbf16, #tpu.memory_space<vmem>>, vector<8x256xbf16>
    tpu.vector_store %arg7[%c40_83, %c0_84], %95 {strides = array<i32>} : memref<72x256xbf16, #tpu.memory_space<vmem>>, vector<8x256xbf16>,
    %c0_85 = arith.constant 0 : index
    %c143_86 = arith.constant 143 : index
    %97 = vector.load %arg6[%c0_85, %c143_86] : memref<8x512xbf16, #tpu.memory_space<vmem>>, vector<8x256xbf16>
    %98 = vector.extract_strided_slice %4 {offsets = [0, 0], sizes = [1, 256], strides = [1, 1]} : vector<3x256xbf16> to vector<1x256xbf16>
    %99 = vector.broadcast %98 : vector<1x256xbf16> to vector<8x256xbf16>
    %100 = arith.mulf %97, %99 : vector<8x256xbf16>
    %c48_87 = arith.constant 48 : index
    %c0_88 = arith.constant 0 : index
    %101 = vector.load %arg7[%c48_87, %c0_88] : memref<72x256xbf16, #tpu.memory_space<vmem>>, vector<8x256xbf16>
    tpu.vector_store %arg7[%c48_87, %c0_88], %100 {strides = array<i32>} : memref<72x256xbf16, #tpu.memory_space<vmem>>, vector<8x256xbf16>,
    %c0_89 = arith.constant 0 : index
    %c144_90 = arith.constant 144 : index
    %102 = vector.load %arg6[%c0_89, %c144_90] : memref<8x512xbf16, #tpu.memory_space<vmem>>, vector<8x256xbf16>
    %c56_91 = arith.constant 56 : index
    %c0_92 = arith.constant 0 : index
    %103 = vector.load %arg7[%c56_91, %c0_92] : memref<72x256xbf16, #tpu.memory_space<vmem>>, vector<8x256xbf16>
    tpu.vector_store %arg7[%c56_91, %c0_92], %102 {strides = array<i32>} : memref<72x256xbf16, #tpu.memory_space<vmem>>, vector<8x256xbf16>,
    %c0_93 = arith.constant 0 : index
    %c145_94 = arith.constant 145 : index
    %104 = vector.load %arg6[%c0_93, %c145_94] : memref<8x512xbf16, #tpu.memory_space<vmem>>, vector<8x256xbf16>
    %105 = vector.extract_strided_slice %4 {offsets = [2, 0], sizes = [1, 256], strides = [1, 1]} : vector<3x256xbf16> to vector<1x256xbf16>
    %106 = vector.broadcast %105 : vector<1x256xbf16> to vector<8x256xbf16>
    %107 = arith.mulf %104, %106 : vector<8x256xbf16>
    %c64_95 = arith.constant 64 : index
    %c0_96 = arith.constant 0 : index
    %108 = vector.load %arg7[%c64_95, %c0_96] : memref<72x256xbf16, #tpu.memory_space<vmem>>, vector<8x256xbf16>
    tpu.vector_store %arg7[%c64_95, %c0_96], %107 {strides = array<i32>} : memref<72x256xbf16, #tpu.memory_space<vmem>>, vector<8x256xbf16>,
    %c0_97 = arith.constant 0 : index
    %c0_98 = arith.constant 0 : index
    %109 = vector.load %arg7[%c0_97, %c0_98] : memref<72x256xbf16, #tpu.memory_space<vmem>>, vector<72x256xbf16>
    %cst_99 = arith.constant dense<0.000000e+00> : vector<16x256xf32>
    %110 = tpu.matmul %5, %109, %cst_99 {dimension_numbers = #tpu.dot_dimension_numbers<[1], [0], [0], [1], [0, 0, 1, 1], [], []>} : vector<16x72xbf16>, vector<72x256xbf16>, vector<16x256xf32> -> vector<16x256xf32>
    %111 = vector.broadcast %8 : vector<16x1xf32> to vector<16x256xf32>
    %112 = arith.addf %110, %111 : vector<16x256xf32>
    %cst_100 = arith.constant 0.000000e+00 : f32
    %113 = vector.broadcast %cst_100 : f32 to vector<16x256xf32>
    %114 = arith.maximumf %112, %113 : vector<16x256xf32>
    %c0_101 = arith.constant 0 : index
    %c256_102 = arith.constant 256 : index
    %115 = vector.load %arg8[%c0_101, %c256_102] : memref<16x1024xf32, #tpu.memory_space<vmem>>, vector<16x256xf32>
    tpu.vector_store %arg8[%c0_101, %c256_102], %114 {strides = array<i32>} : memref<16x1024xf32, #tpu.memory_space<vmem>>, vector<16x256xf32>,
    %cst_103 = arith.constant dense<0.000000e+00> : vector<16xf32>
    %116 = vector.multi_reduction <add>, %114, %cst_103 [1] : vector<16x256xf32> to vector<16xf32>
    %117 = vector.shape_cast %116 : vector<16xf32> to vector<16x1xf32>
    %cst_104 = arith.constant 3.906250e-03 : f32
    %118 = vector.broadcast %cst_104 : f32 to vector<16x1xf32>
    %119 = arith.mulf %117, %118 : vector<16x1xf32>
    %c0_105 = arith.constant 0 : index
    %c512 = arith.constant 512 : index
    %120 = vector.load %arg3[%c0_105, %c512] : memref<3x1024xf32, #tpu.memory_space<vmem>>, vector<3x256xf32>
    %c0_106 = arith.constant 0 : index
    %c512_107 = arith.constant 512 : index
    %121 = vector.load %arg4[%c0_106, %c512_107] : memref<4x1024xf32, #tpu.memory_space<vmem>>, vector<4x256xf32>
    %122 = tpu.concatenate %120, %121, %15 in 0 : vector<3x256xf32>, vector<4x256xf32>, vector<1x256xf32> -> vector<8x256xf32>
    %123 = arith.truncf %122 : vector<8x256xf32> to vector<8x256xbf16>
    %c0_108 = arith.constant 0 : index
    %c128_109 = arith.constant 128 : index
    %124 = vector.load %arg6[%c0_108, %c128_109] : memref<8x512xbf16, #tpu.memory_space<vmem>>, vector<8x256xbf16>
    tpu.vector_store %arg6[%c0_108, %c128_109], %123 {strides = array<i32>} : memref<8x512xbf16, #tpu.memory_space<vmem>>, vector<8x256xbf16>,
    %c0_110 = arith.constant 0 : index
    %c111_111 = arith.constant 111 : index
    %125 = vector.load %arg6[%c0_110, %c111_111] : memref<8x512xbf16, #tpu.memory_space<vmem>>, vector<8x256xbf16>
    %126 = vector.extract_strided_slice %4 {offsets = [0, 0], sizes = [1, 256], strides = [1, 1]} : vector<3x256xbf16> to vector<1x256xbf16>
    %127 = vector.broadcast %126 : vector<1x256xbf16> to vector<8x256xbf16>
    %128 = arith.mulf %125, %127 : vector<8x256xbf16>
    %c0_112 = arith.constant 0 : index
    %c0_113 = arith.constant 0 : index
    %129 = vector.load %arg7[%c0_112, %c0_113] : memref<72x256xbf16, #tpu.memory_space<vmem>>, vector<8x256xbf16>
    tpu.vector_store %arg7[%c0_112, %c0_113], %128 {strides = array<i32>} : memref<72x256xbf16, #tpu.memory_space<vmem>>, vector<8x256xbf16>,
    %c0_114 = arith.constant 0 : index
    %c112_115 = arith.constant 112 : index
    %130 = vector.load %arg6[%c0_114, %c112_115] : memref<8x512xbf16, #tpu.memory_space<vmem>>, vector<8x256xbf16>
    %c8_116 = arith.constant 8 : index
    %c0_117 = arith.constant 0 : index
    %131 = vector.load %arg7[%c8_116, %c0_117] : memref<72x256xbf16, #tpu.memory_space<vmem>>, vector<8x256xbf16>
    tpu.vector_store %arg7[%c8_116, %c0_117], %130 {strides = array<i32>} : memref<72x256xbf16, #tpu.memory_space<vmem>>, vector<8x256xbf16>,
    %c0_118 = arith.constant 0 : index
    %c113_119 = arith.constant 113 : index
    %132 = vector.load %arg6[%c0_118, %c113_119] : memref<8x512xbf16, #tpu.memory_space<vmem>>, vector<8x256xbf16>
    %133 = vector.extract_strided_slice %4 {offsets = [2, 0], sizes = [1, 256], strides = [1, 1]} : vector<3x256xbf16> to vector<1x256xbf16>
    %134 = vector.broadcast %133 : vector<1x256xbf16> to vector<8x256xbf16>
    %135 = arith.mulf %132, %134 : vector<8x256xbf16>
    %c16_120 = arith.constant 16 : index
    %c0_121 = arith.constant 0 : index
    %136 = vector.load %arg7[%c16_120, %c0_121] : memref<72x256xbf16, #tpu.memory_space<vmem>>, vector<8x256xbf16>
    tpu.vector_store %arg7[%c16_120, %c0_121], %135 {strides = array<i32>} : memref<72x256xbf16, #tpu.memory_space<vmem>>, vector<8x256xbf16>,
    %c0_122 = arith.constant 0 : index
    %c127_123 = arith.constant 127 : index
    %137 = vector.load %arg6[%c0_122, %c127_123] : memref<8x512xbf16, #tpu.memory_space<vmem>>, vector<8x256xbf16>
    %138 = vector.extract_strided_slice %4 {offsets = [0, 0], sizes = [1, 256], strides = [1, 1]} : vector<3x256xbf16> to vector<1x256xbf16>
    %139 = vector.broadcast %138 : vector<1x256xbf16> to vector<8x256xbf16>
    %140 = arith.mulf %137, %139 : vector<8x256xbf16>
    %c24_124 = arith.constant 24 : index
    %c0_125 = arith.constant 0 : index
    %141 = vector.load %arg7[%c24_124, %c0_125] : memref<72x256xbf16, #tpu.memory_space<vmem>>, vector<8x256xbf16>
    tpu.vector_store %arg7[%c24_124, %c0_125], %140 {strides = array<i32>} : memref<72x256xbf16, #tpu.memory_space<vmem>>, vector<8x256xbf16>,
    %c0_126 = arith.constant 0 : index
    %c128_127 = arith.constant 128 : index
    %142 = vector.load %arg6[%c0_126, %c128_127] : memref<8x512xbf16, #tpu.memory_space<vmem>>, vector<8x256xbf16>
    %c32_128 = arith.constant 32 : index
    %c0_129 = arith.constant 0 : index
    %143 = vector.load %arg7[%c32_128, %c0_129] : memref<72x256xbf16, #tpu.memory_space<vmem>>, vector<8x256xbf16>
    tpu.vector_store %arg7[%c32_128, %c0_129], %142 {strides = array<i32>} : memref<72x256xbf16, #tpu.memory_space<vmem>>, vector<8x256xbf16>,
    %c0_130 = arith.constant 0 : index
    %c129_131 = arith.constant 129 : index
    %144 = vector.load %arg6[%c0_130, %c129_131] : memref<8x512xbf16, #tpu.memory_space<vmem>>, vector<8x256xbf16>
    %145 = vector.extract_strided_slice %4 {offsets = [2, 0], sizes = [1, 256], strides = [1, 1]} : vector<3x256xbf16> to vector<1x256xbf16>
    %146 = vector.broadcast %145 : vector<1x256xbf16> to vector<8x256xbf16>
    %147 = arith.mulf %144, %146 : vector<8x256xbf16>
    %c40_132 = arith.constant 40 : index
    %c0_133 = arith.constant 0 : index
    %148 = vector.load %arg7[%c40_132, %c0_133] : memref<72x256xbf16, #tpu.memory_space<vmem>>, vector<8x256xbf16>
    tpu.vector_store %arg7[%c40_132, %c0_133], %147 {strides = array<i32>} : memref<72x256xbf16, #tpu.memory_space<vmem>>, vector<8x256xbf16>,
    %c0_134 = arith.constant 0 : index
    %c143_135 = arith.constant 143 : index
    %149 = vector.load %arg6[%c0_134, %c143_135] : memref<8x512xbf16, #tpu.memory_space<vmem>>, vector<8x256xbf16>
    %150 = vector.extract_strided_slice %4 {offsets = [0, 0], sizes = [1, 256], strides = [1, 1]} : vector<3x256xbf16> to vector<1x256xbf16>
    %151 = vector.broadcast %150 : vector<1x256xbf16> to vector<8x256xbf16>
    %152 = arith.mulf %149, %151 : vector<8x256xbf16>
    %c48_136 = arith.constant 48 : index
    %c0_137 = arith.constant 0 : index
    %153 = vector.load %arg7[%c48_136, %c0_137] : memref<72x256xbf16, #tpu.memory_space<vmem>>, vector<8x256xbf16>
    tpu.vector_store %arg7[%c48_136, %c0_137], %152 {strides = array<i32>} : memref<72x256xbf16, #tpu.memory_space<vmem>>, vector<8x256xbf16>,
    %c0_138 = arith.constant 0 : index
    %c144_139 = arith.constant 144 : index
    %154 = vector.load %arg6[%c0_138, %c144_139] : memref<8x512xbf16, #tpu.memory_space<vmem>>, vector<8x256xbf16>
    %c56_140 = arith.constant 56 : index
    %c0_141 = arith.constant 0 : index
    %155 = vector.load %arg7[%c56_140, %c0_141] : memref<72x256xbf16, #tpu.memory_space<vmem>>, vector<8x256xbf16>
    tpu.vector_store %arg7[%c56_140, %c0_141], %154 {strides = array<i32>} : memref<72x256xbf16, #tpu.memory_space<vmem>>, vector<8x256xbf16>,
    %c0_142 = arith.constant 0 : index
    %c145_143 = arith.constant 145 : index
    %156 = vector.load %arg6[%c0_142, %c145_143] : memref<8x512xbf16, #tpu.memory_space<vmem>>, vector<8x256xbf16>
    %157 = vector.extract_strided_slice %4 {offsets = [2, 0], sizes = [1, 256], strides = [1, 1]} : vector<3x256xbf16> to vector<1x256xbf16>
    %158 = vector.broadcast %157 : vector<1x256xbf16> to vector<8x256xbf16>
    %159 = arith.mulf %156, %158 : vector<8x256xbf16>
    %c64_144 = arith.constant 64 : index
    %c0_145 = arith.constant 0 : index
    %160 = vector.load %arg7[%c64_144, %c0_145] : memref<72x256xbf16, #tpu.memory_space<vmem>>, vector<8x256xbf16>
    tpu.vector_store %arg7[%c64_144, %c0_145], %159 {strides = array<i32>} : memref<72x256xbf16, #tpu.memory_space<vmem>>, vector<8x256xbf16>,
    %c0_146 = arith.constant 0 : index
    %c0_147 = arith.constant 0 : index
    %161 = vector.load %arg7[%c0_146, %c0_147] : memref<72x256xbf16, #tpu.memory_space<vmem>>, vector<72x256xbf16>
    %cst_148 = arith.constant dense<0.000000e+00> : vector<16x256xf32>
    %162 = tpu.matmul %5, %161, %cst_148 {dimension_numbers = #tpu.dot_dimension_numbers<[1], [0], [0], [1], [0, 0, 1, 1], [], []>} : vector<16x72xbf16>, vector<72x256xbf16>, vector<16x256xf32> -> vector<16x256xf32>
    %163 = vector.broadcast %8 : vector<16x1xf32> to vector<16x256xf32>
    %164 = arith.addf %162, %163 : vector<16x256xf32>
    %cst_149 = arith.constant 0.000000e+00 : f32
    %165 = vector.broadcast %cst_149 : f32 to vector<16x256xf32>
    %166 = arith.maximumf %164, %165 : vector<16x256xf32>
    %c0_150 = arith.constant 0 : index
    %c512_151 = arith.constant 512 : index
    %167 = vector.load %arg8[%c0_150, %c512_151] : memref<16x1024xf32, #tpu.memory_space<vmem>>, vector<16x256xf32>
    tpu.vector_store %arg8[%c0_150, %c512_151], %166 {strides = array<i32>} : memref<16x1024xf32, #tpu.memory_space<vmem>>, vector<16x256xf32>,
    %cst_152 = arith.constant dense<0.000000e+00> : vector<16xf32>
    %168 = vector.multi_reduction <add>, %166, %cst_152 [1] : vector<16x256xf32> to vector<16xf32>
    %169 = vector.shape_cast %168 : vector<16xf32> to vector<16x1xf32>
    %cst_153 = arith.constant 3.906250e-03 : f32
    %170 = vector.broadcast %cst_153 : f32 to vector<16x1xf32>
    %171 = arith.mulf %169, %170 : vector<16x1xf32>
    %c0_154 = arith.constant 0 : index
    %c768 = arith.constant 768 : index
    %172 = vector.load %arg3[%c0_154, %c768] : memref<3x1024xf32, #tpu.memory_space<vmem>>, vector<3x256xf32>
    %c0_155 = arith.constant 0 : index
    %c768_156 = arith.constant 768 : index
    %173 = vector.load %arg4[%c0_155, %c768_156] : memref<4x1024xf32, #tpu.memory_space<vmem>>, vector<4x256xf32>
    %174 = tpu.concatenate %172, %173, %15 in 0 : vector<3x256xf32>, vector<4x256xf32>, vector<1x256xf32> -> vector<8x256xf32>
    %175 = arith.truncf %174 : vector<8x256xf32> to vector<8x256xbf16>
    %c0_157 = arith.constant 0 : index
    %c128_158 = arith.constant 128 : index
    %176 = vector.load %arg6[%c0_157, %c128_158] : memref<8x512xbf16, #tpu.memory_space<vmem>>, vector<8x256xbf16>
    tpu.vector_store %arg6[%c0_157, %c128_158], %175 {strides = array<i32>} : memref<8x512xbf16, #tpu.memory_space<vmem>>, vector<8x256xbf16>,
    %c0_159 = arith.constant 0 : index
    %c111_160 = arith.constant 111 : index
    %177 = vector.load %arg6[%c0_159, %c111_160] : memref<8x512xbf16, #tpu.memory_space<vmem>>, vector<8x256xbf16>
    %178 = vector.extract_strided_slice %4 {offsets = [0, 0], sizes = [1, 256], strides = [1, 1]} : vector<3x256xbf16> to vector<1x256xbf16>
    %179 = vector.broadcast %178 : vector<1x256xbf16> to vector<8x256xbf16>
    %180 = arith.mulf %177, %179 : vector<8x256xbf16>
    %c0_161 = arith.constant 0 : index
    %c0_162 = arith.constant 0 : index
    %181 = vector.load %arg7[%c0_161, %c0_162] : memref<72x256xbf16, #tpu.memory_space<vmem>>, vector<8x256xbf16>
    tpu.vector_store %arg7[%c0_161, %c0_162], %180 {strides = array<i32>} : memref<72x256xbf16, #tpu.memory_space<vmem>>, vector<8x256xbf16>,
    %c0_163 = arith.constant 0 : index
    %c112_164 = arith.constant 112 : index
    %182 = vector.load %arg6[%c0_163, %c112_164] : memref<8x512xbf16, #tpu.memory_space<vmem>>, vector<8x256xbf16>
    %c8_165 = arith.constant 8 : index
    %c0_166 = arith.constant 0 : index
    %183 = vector.load %arg7[%c8_165, %c0_166] : memref<72x256xbf16, #tpu.memory_space<vmem>>, vector<8x256xbf16>
    tpu.vector_store %arg7[%c8_165, %c0_166], %182 {strides = array<i32>} : memref<72x256xbf16, #tpu.memory_space<vmem>>, vector<8x256xbf16>,
    %c0_167 = arith.constant 0 : index
    %c113_168 = arith.constant 113 : index
    %184 = vector.load %arg6[%c0_167, %c113_168] : memref<8x512xbf16, #tpu.memory_space<vmem>>, vector<8x256xbf16>
    %185 = vector.extract_strided_slice %4 {offsets = [2, 0], sizes = [1, 256], strides = [1, 1]} : vector<3x256xbf16> to vector<1x256xbf16>
    %186 = vector.broadcast %185 : vector<1x256xbf16> to vector<8x256xbf16>
    %187 = arith.mulf %184, %186 : vector<8x256xbf16>
    %c16_169 = arith.constant 16 : index
    %c0_170 = arith.constant 0 : index
    %188 = vector.load %arg7[%c16_169, %c0_170] : memref<72x256xbf16, #tpu.memory_space<vmem>>, vector<8x256xbf16>
    tpu.vector_store %arg7[%c16_169, %c0_170], %187 {strides = array<i32>} : memref<72x256xbf16, #tpu.memory_space<vmem>>, vector<8x256xbf16>,
    %c0_171 = arith.constant 0 : index
    %c127_172 = arith.constant 127 : index
    %189 = vector.load %arg6[%c0_171, %c127_172] : memref<8x512xbf16, #tpu.memory_space<vmem>>, vector<8x256xbf16>
    %190 = vector.extract_strided_slice %4 {offsets = [0, 0], sizes = [1, 256], strides = [1, 1]} : vector<3x256xbf16> to vector<1x256xbf16>
    %191 = vector.broadcast %190 : vector<1x256xbf16> to vector<8x256xbf16>
    %192 = arith.mulf %189, %191 : vector<8x256xbf16>
    %c24_173 = arith.constant 24 : index
    %c0_174 = arith.constant 0 : index
    %193 = vector.load %arg7[%c24_173, %c0_174] : memref<72x256xbf16, #tpu.memory_space<vmem>>, vector<8x256xbf16>
    tpu.vector_store %arg7[%c24_173, %c0_174], %192 {strides = array<i32>} : memref<72x256xbf16, #tpu.memory_space<vmem>>, vector<8x256xbf16>,
    %c0_175 = arith.constant 0 : index
    %c128_176 = arith.constant 128 : index
    %194 = vector.load %arg6[%c0_175, %c128_176] : memref<8x512xbf16, #tpu.memory_space<vmem>>, vector<8x256xbf16>
    %c32_177 = arith.constant 32 : index
    %c0_178 = arith.constant 0 : index
    %195 = vector.load %arg7[%c32_177, %c0_178] : memref<72x256xbf16, #tpu.memory_space<vmem>>, vector<8x256xbf16>
    tpu.vector_store %arg7[%c32_177, %c0_178], %194 {strides = array<i32>} : memref<72x256xbf16, #tpu.memory_space<vmem>>, vector<8x256xbf16>,
    %c0_179 = arith.constant 0 : index
    %c129_180 = arith.constant 129 : index
    %196 = vector.load %arg6[%c0_179, %c129_180] : memref<8x512xbf16, #tpu.memory_space<vmem>>, vector<8x256xbf16>
    %197 = vector.extract_strided_slice %4 {offsets = [2, 0], sizes = [1, 256], strides = [1, 1]} : vector<3x256xbf16> to vector<1x256xbf16>
    %198 = vector.broadcast %197 : vector<1x256xbf16> to vector<8x256xbf16>
    %199 = arith.mulf %196, %198 : vector<8x256xbf16>
    %c40_181 = arith.constant 40 : index
    %c0_182 = arith.constant 0 : index
    %200 = vector.load %arg7[%c40_181, %c0_182] : memref<72x256xbf16, #tpu.memory_space<vmem>>, vector<8x256xbf16>
    tpu.vector_store %arg7[%c40_181, %c0_182], %199 {strides = array<i32>} : memref<72x256xbf16, #tpu.memory_space<vmem>>, vector<8x256xbf16>,
    %c0_183 = arith.constant 0 : index
    %c143_184 = arith.constant 143 : index
    %201 = vector.load %arg6[%c0_183, %c143_184] : memref<8x512xbf16, #tpu.memory_space<vmem>>, vector<8x256xbf16>
    %202 = vector.extract_strided_slice %4 {offsets = [0, 0], sizes = [1, 256], strides = [1, 1]} : vector<3x256xbf16> to vector<1x256xbf16>
    %203 = vector.broadcast %202 : vector<1x256xbf16> to vector<8x256xbf16>
    %204 = arith.mulf %201, %203 : vector<8x256xbf16>
    %c48_185 = arith.constant 48 : index
    %c0_186 = arith.constant 0 : index
    %205 = vector.load %arg7[%c48_185, %c0_186] : memref<72x256xbf16, #tpu.memory_space<vmem>>, vector<8x256xbf16>
    tpu.vector_store %arg7[%c48_185, %c0_186], %204 {strides = array<i32>} : memref<72x256xbf16, #tpu.memory_space<vmem>>, vector<8x256xbf16>,
    %c0_187 = arith.constant 0 : index
    %c144_188 = arith.constant 144 : index
    %206 = vector.load %arg6[%c0_187, %c144_188] : memref<8x512xbf16, #tpu.memory_space<vmem>>, vector<8x256xbf16>
    %c56_189 = arith.constant 56 : index
    %c0_190 = arith.constant 0 : index
    %207 = vector.load %arg7[%c56_189, %c0_190] : memref<72x256xbf16, #tpu.memory_space<vmem>>, vector<8x256xbf16>
    tpu.vector_store %arg7[%c56_189, %c0_190], %206 {strides = array<i32>} : memref<72x256xbf16, #tpu.memory_space<vmem>>, vector<8x256xbf16>,
    %c0_191 = arith.constant 0 : index
    %c145_192 = arith.constant 145 : index
    %208 = vector.load %arg6[%c0_191, %c145_192] : memref<8x512xbf16, #tpu.memory_space<vmem>>, vector<8x256xbf16>
    %209 = vector.extract_strided_slice %4 {offsets = [2, 0], sizes = [1, 256], strides = [1, 1]} : vector<3x256xbf16> to vector<1x256xbf16>
    %210 = vector.broadcast %209 : vector<1x256xbf16> to vector<8x256xbf16>
    %211 = arith.mulf %208, %210 : vector<8x256xbf16>
    %c64_193 = arith.constant 64 : index
    %c0_194 = arith.constant 0 : index
    %212 = vector.load %arg7[%c64_193, %c0_194] : memref<72x256xbf16, #tpu.memory_space<vmem>>, vector<8x256xbf16>
    tpu.vector_store %arg7[%c64_193, %c0_194], %211 {strides = array<i32>} : memref<72x256xbf16, #tpu.memory_space<vmem>>, vector<8x256xbf16>,
    %c0_195 = arith.constant 0 : index
    %c0_196 = arith.constant 0 : index
    %213 = vector.load %arg7[%c0_195, %c0_196] : memref<72x256xbf16, #tpu.memory_space<vmem>>, vector<72x256xbf16>
    %cst_197 = arith.constant dense<0.000000e+00> : vector<16x256xf32>
    %214 = tpu.matmul %5, %213, %cst_197 {dimension_numbers = #tpu.dot_dimension_numbers<[1], [0], [0], [1], [0, 0, 1, 1], [], []>} : vector<16x72xbf16>, vector<72x256xbf16>, vector<16x256xf32> -> vector<16x256xf32>
    %215 = vector.broadcast %8 : vector<16x1xf32> to vector<16x256xf32>
    %216 = arith.addf %214, %215 : vector<16x256xf32>
    %cst_198 = arith.constant 0.000000e+00 : f32
    %217 = vector.broadcast %cst_198 : f32 to vector<16x256xf32>
    %218 = arith.maximumf %216, %217 : vector<16x256xf32>
    %c0_199 = arith.constant 0 : index
    %c768_200 = arith.constant 768 : index
    %219 = vector.load %arg8[%c0_199, %c768_200] : memref<16x1024xf32, #tpu.memory_space<vmem>>, vector<16x256xf32>
    tpu.vector_store %arg8[%c0_199, %c768_200], %218 {strides = array<i32>} : memref<16x1024xf32, #tpu.memory_space<vmem>>, vector<16x256xf32>,
    %cst_201 = arith.constant dense<0.000000e+00> : vector<16xf32>
    %220 = vector.multi_reduction <add>, %218, %cst_201 [1] : vector<16x256xf32> to vector<16xf32>
    %221 = vector.shape_cast %220 : vector<16xf32> to vector<16x1xf32>
    %cst_202 = arith.constant 3.906250e-03 : f32
    %222 = vector.broadcast %cst_202 : f32 to vector<16x1xf32>
    %223 = arith.mulf %221, %222 : vector<16x1xf32>
    %224 = tpu.concatenate %67, %119, %171, %223 in 1 : vector<16x1xf32>, vector<16x1xf32>, vector<16x1xf32>, vector<16x1xf32> -> vector<16x4xf32>
    %cst_203 = arith.constant dense<0.000000e+00> : vector<16x4xf32>
    %225 = tpu.matmul %7, %224, %cst_203 {dimension_numbers = #tpu.dot_dimension_numbers<[1], [0], [0], [1], [0, 0, 1, 1], [], []>} : vector<16x16xf32>, vector<16x4xf32>, vector<16x4xf32> -> vector<16x4xf32>
    %226 = vector.broadcast %9 : vector<16x1xf32> to vector<16x4xf32>
    %227 = arith.addf %225, %226 : vector<16x4xf32>
    %cst_204 = arith.constant 0.000000e+00 : f32
    %228 = vector.broadcast %cst_204 : f32 to vector<16x4xf32>
    %229 = arith.subf %228, %227 : vector<16x4xf32>
    %230 = math.exp %229 : vector<16x4xf32>
    %cst_205 = arith.constant 1.000000e+00 : f32
    %231 = vector.broadcast %cst_205 : f32 to vector<16x4xf32>
    %232 = arith.addf %231, %230 : vector<16x4xf32>
    %233 = tpu.reciprocal %232 {approx = true} : vector<16x4xf32> -> vector<16x4xf32>
    %c0_206 = arith.constant 0 : index
    %c0_207 = arith.constant 0 : index
    %234 = vector.load %arg8[%c0_206, %c0_207] : memref<16x1024xf32, #tpu.memory_space<vmem>>, vector<8x256xf32>
    %235 = vector.extract_strided_slice %233 {offsets = [0, 0], sizes = [8, 1], strides = [1, 1]} : vector<16x4xf32> to vector<8x1xf32>
    %236 = vector.broadcast %235 : vector<8x1xf32> to vector<8x256xf32>
    %237 = arith.mulf %234, %236 : vector<8x256xf32>
    %c8_208 = arith.constant 8 : index
    %c0_209 = arith.constant 0 : index
    %238 = vector.load %arg8[%c8_208, %c0_209] : memref<16x1024xf32, #tpu.memory_space<vmem>>, vector<8x256xf32>
    %239 = vector.extract_strided_slice %233 {offsets = [8, 0], sizes = [8, 1], strides = [1, 1]} : vector<16x4xf32> to vector<8x1xf32>
    %240 = vector.broadcast %239 : vector<8x1xf32> to vector<8x256xf32>
    %241 = arith.mulf %238, %240 : vector<8x256xf32>
    %242 = arith.addf %237, %241 : vector<8x256xf32>
    %243 = arith.truncf %242 : vector<8x256xf32> to vector<8x256xbf16>
    %c0_210 = arith.constant 0 : index
    %c128_211 = arith.constant 128 : index
    %244 = vector.load %arg6[%c0_210, %c128_211] : memref<8x512xbf16, #tpu.memory_space<vmem>>, vector<8x256xbf16>
    tpu.vector_store %arg6[%c0_210, %c128_211], %243 {strides = array<i32>} : memref<8x512xbf16, #tpu.memory_space<vmem>>, vector<8x256xbf16>,
    %c0_212 = arith.constant 0 : index
    %c111_213 = arith.constant 111 : index
    %245 = vector.load %arg6[%c0_212, %c111_213] : memref<8x512xbf16, #tpu.memory_space<vmem>>, vector<8x256xbf16>
    %246 = vector.extract_strided_slice %4 {offsets = [0, 0], sizes = [1, 256], strides = [1, 1]} : vector<3x256xbf16> to vector<1x256xbf16>
    %247 = vector.broadcast %246 : vector<1x256xbf16> to vector<8x256xbf16>
    %248 = arith.mulf %245, %247 : vector<8x256xbf16>
    %c0_214 = arith.constant 0 : index
    %c0_215 = arith.constant 0 : index
    %249 = vector.load %arg7[%c0_214, %c0_215] : memref<72x256xbf16, #tpu.memory_space<vmem>>, vector<8x256xbf16>
    tpu.vector_store %arg7[%c0_214, %c0_215], %248 {strides = array<i32>} : memref<72x256xbf16, #tpu.memory_space<vmem>>, vector<8x256xbf16>,
    %c0_216 = arith.constant 0 : index
    %c112_217 = arith.constant 112 : index
    %250 = vector.load %arg6[%c0_216, %c112_217] : memref<8x512xbf16, #tpu.memory_space<vmem>>, vector<8x256xbf16>
    %c8_218 = arith.constant 8 : index
    %c0_219 = arith.constant 0 : index
    %251 = vector.load %arg7[%c8_218, %c0_219] : memref<72x256xbf16, #tpu.memory_space<vmem>>, vector<8x256xbf16>
    tpu.vector_store %arg7[%c8_218, %c0_219], %250 {strides = array<i32>} : memref<72x256xbf16, #tpu.memory_space<vmem>>, vector<8x256xbf16>,
    %c0_220 = arith.constant 0 : index
    %c113_221 = arith.constant 113 : index
    %252 = vector.load %arg6[%c0_220, %c113_221] : memref<8x512xbf16, #tpu.memory_space<vmem>>, vector<8x256xbf16>
    %253 = vector.extract_strided_slice %4 {offsets = [2, 0], sizes = [1, 256], strides = [1, 1]} : vector<3x256xbf16> to vector<1x256xbf16>
    %254 = vector.broadcast %253 : vector<1x256xbf16> to vector<8x256xbf16>
    %255 = arith.mulf %252, %254 : vector<8x256xbf16>
    %c16_222 = arith.constant 16 : index
    %c0_223 = arith.constant 0 : index
    %256 = vector.load %arg7[%c16_222, %c0_223] : memref<72x256xbf16, #tpu.memory_space<vmem>>, vector<8x256xbf16>
    tpu.vector_store %arg7[%c16_222, %c0_223], %255 {strides = array<i32>} : memref<72x256xbf16, #tpu.memory_space<vmem>>, vector<8x256xbf16>,
    %c0_224 = arith.constant 0 : index
    %c127_225 = arith.constant 127 : index
    %257 = vector.load %arg6[%c0_224, %c127_225] : memref<8x512xbf16, #tpu.memory_space<vmem>>, vector<8x256xbf16>
    %258 = vector.extract_strided_slice %4 {offsets = [0, 0], sizes = [1, 256], strides = [1, 1]} : vector<3x256xbf16> to vector<1x256xbf16>
    %259 = vector.broadcast %258 : vector<1x256xbf16> to vector<8x256xbf16>
    %260 = arith.mulf %257, %259 : vector<8x256xbf16>
    %c24_226 = arith.constant 24 : index
    %c0_227 = arith.constant 0 : index
    %261 = vector.load %arg7[%c24_226, %c0_227] : memref<72x256xbf16, #tpu.memory_space<vmem>>, vector<8x256xbf16>
    tpu.vector_store %arg7[%c24_226, %c0_227], %260 {strides = array<i32>} : memref<72x256xbf16, #tpu.memory_space<vmem>>, vector<8x256xbf16>,
    %c0_228 = arith.constant 0 : index
    %c128_229 = arith.constant 128 : index
    %262 = vector.load %arg6[%c0_228, %c128_229] : memref<8x512xbf16, #tpu.memory_space<vmem>>, vector<8x256xbf16>
    %c32_230 = arith.constant 32 : index
    %c0_231 = arith.constant 0 : index
    %263 = vector.load %arg7[%c32_230, %c0_231] : memref<72x256xbf16, #tpu.memory_space<vmem>>, vector<8x256xbf16>
    tpu.vector_store %arg7[%c32_230, %c0_231], %262 {strides = array<i32>} : memref<72x256xbf16, #tpu.memory_space<vmem>>, vector<8x256xbf16>,
    %c0_232 = arith.constant 0 : index
    %c129_233 = arith.constant 129 : index
    %264 = vector.load %arg6[%c0_232, %c129_233] : memref<8x512xbf16, #tpu.memory_space<vmem>>, vector<8x256xbf16>
    %265 = vector.extract_strided_slice %4 {offsets = [2, 0], sizes = [1, 256], strides = [1, 1]} : vector<3x256xbf16> to vector<1x256xbf16>
    %266 = vector.broadcast %265 : vector<1x256xbf16> to vector<8x256xbf16>
    %267 = arith.mulf %264, %266 : vector<8x256xbf16>
    %c40_234 = arith.constant 40 : index
    %c0_235 = arith.constant 0 : index
    %268 = vector.load %arg7[%c40_234, %c0_235] : memref<72x256xbf16, #tpu.memory_space<vmem>>, vector<8x256xbf16>
    tpu.vector_store %arg7[%c40_234, %c0_235], %267 {strides = array<i32>} : memref<72x256xbf16, #tpu.memory_space<vmem>>, vector<8x256xbf16>,
    %c0_236 = arith.constant 0 : index
    %c143_237 = arith.constant 143 : index
    %269 = vector.load %arg6[%c0_236, %c143_237] : memref<8x512xbf16, #tpu.memory_space<vmem>>, vector<8x256xbf16>
    %270 = vector.extract_strided_slice %4 {offsets = [0, 0], sizes = [1, 256], strides = [1, 1]} : vector<3x256xbf16> to vector<1x256xbf16>
    %271 = vector.broadcast %270 : vector<1x256xbf16> to vector<8x256xbf16>
    %272 = arith.mulf %269, %271 : vector<8x256xbf16>
    %c48_238 = arith.constant 48 : index
    %c0_239 = arith.constant 0 : index
    %273 = vector.load %arg7[%c48_238, %c0_239] : memref<72x256xbf16, #tpu.memory_space<vmem>>, vector<8x256xbf16>
    tpu.vector_store %arg7[%c48_238, %c0_239], %272 {strides = array<i32>} : memref<72x256xbf16, #tpu.memory_space<vmem>>, vector<8x256xbf16>,
    %c0_240 = arith.constant 0 : index
    %c144_241 = arith.constant 144 : index
    %274 = vector.load %arg6[%c0_240, %c144_241] : memref<8x512xbf16, #tpu.memory_space<vmem>>, vector<8x256xbf16>
    %c56_242 = arith.constant 56 : index
    %c0_243 = arith.constant 0 : index
    %275 = vector.load %arg7[%c56_242, %c0_243] : memref<72x256xbf16, #tpu.memory_space<vmem>>, vector<8x256xbf16>
    tpu.vector_store %arg7[%c56_242, %c0_243], %274 {strides = array<i32>} : memref<72x256xbf16, #tpu.memory_space<vmem>>, vector<8x256xbf16>,
    %c0_244 = arith.constant 0 : index
    %c145_245 = arith.constant 145 : index
    %276 = vector.load %arg6[%c0_244, %c145_245] : memref<8x512xbf16, #tpu.memory_space<vmem>>, vector<8x256xbf16>
    %277 = vector.extract_strided_slice %4 {offsets = [2, 0], sizes = [1, 256], strides = [1, 1]} : vector<3x256xbf16> to vector<1x256xbf16>
    %278 = vector.broadcast %277 : vector<1x256xbf16> to vector<8x256xbf16>
    %279 = arith.mulf %276, %278 : vector<8x256xbf16>
    %c64_246 = arith.constant 64 : index
    %c0_247 = arith.constant 0 : index
    %280 = vector.load %arg7[%c64_246, %c0_247] : memref<72x256xbf16, #tpu.memory_space<vmem>>, vector<8x256xbf16>
    tpu.vector_store %arg7[%c64_246, %c0_247], %279 {strides = array<i32>} : memref<72x256xbf16, #tpu.memory_space<vmem>>, vector<8x256xbf16>,
    %c0_248 = arith.constant 0 : index
    %c0_249 = arith.constant 0 : index
    %281 = vector.load %arg7[%c0_248, %c0_249] : memref<72x256xbf16, #tpu.memory_space<vmem>>, vector<72x256xbf16>
    %cst_250 = arith.constant dense<0.000000e+00> : vector<32x256xf32>
    %282 = tpu.matmul %6, %281, %cst_250 {dimension_numbers = #tpu.dot_dimension_numbers<[1], [0], [0], [1], [0, 0, 1, 1], [], []>} : vector<32x72xbf16>, vector<72x256xbf16>, vector<32x256xf32> -> vector<32x256xf32>
    %283 = vector.broadcast %11 : vector<32x1xf32> to vector<32x256xf32>
    %284 = arith.addf %282, %283 : vector<32x256xf32>
    %cst_251 = arith.constant 0.000000e+00 : f32
    %285 = vector.broadcast %cst_251 : f32 to vector<32x256xf32>
    %286 = arith.maximumf %284, %285 : vector<32x256xf32>
    %cst_252 = arith.constant dense<0.000000e+00> : vector<32xf32>
    %287 = vector.multi_reduction <add>, %286, %cst_252 [1] : vector<32x256xf32> to vector<32xf32>
    %288 = vector.shape_cast %287 : vector<32xf32> to vector<32x1xf32>
    %cst_253 = arith.constant 3.906250e-03 : f32
    %289 = vector.broadcast %cst_253 : f32 to vector<32x1xf32>
    %290 = arith.mulf %288, %289 : vector<32x1xf32>
    %c0_254 = arith.constant 0 : index
    %c256_255 = arith.constant 256 : index
    %291 = vector.load %arg8[%c0_254, %c256_255] : memref<16x1024xf32, #tpu.memory_space<vmem>>, vector<8x256xf32>
    %292 = vector.extract_strided_slice %233 {offsets = [0, 1], sizes = [8, 1], strides = [1, 1]} : vector<16x4xf32> to vector<8x1xf32>
    %293 = vector.broadcast %292 : vector<8x1xf32> to vector<8x256xf32>
    %294 = arith.mulf %291, %293 : vector<8x256xf32>
    %c8_256 = arith.constant 8 : index
    %c256_257 = arith.constant 256 : index
    %295 = vector.load %arg8[%c8_256, %c256_257] : memref<16x1024xf32, #tpu.memory_space<vmem>>, vector<8x256xf32>
    %296 = vector.extract_strided_slice %233 {offsets = [8, 1], sizes = [8, 1], strides = [1, 1]} : vector<16x4xf32> to vector<8x1xf32>
    %297 = vector.broadcast %296 : vector<8x1xf32> to vector<8x256xf32>
    %298 = arith.mulf %295, %297 : vector<8x256xf32>
    %299 = arith.addf %294, %298 : vector<8x256xf32>
    %300 = arith.truncf %299 : vector<8x256xf32> to vector<8x256xbf16>
    %c0_258 = arith.constant 0 : index
    %c128_259 = arith.constant 128 : index
    %301 = vector.load %arg6[%c0_258, %c128_259] : memref<8x512xbf16, #tpu.memory_space<vmem>>, vector<8x256xbf16>
    tpu.vector_store %arg6[%c0_258, %c128_259], %300 {strides = array<i32>} : memref<8x512xbf16, #tpu.memory_space<vmem>>, vector<8x256xbf16>,
    %c0_260 = arith.constant 0 : index
    %c111_261 = arith.constant 111 : index
    %302 = vector.load %arg6[%c0_260, %c111_261] : memref<8x512xbf16, #tpu.memory_space<vmem>>, vector<8x256xbf16>
    %303 = vector.extract_strided_slice %4 {offsets = [0, 0], sizes = [1, 256], strides = [1, 1]} : vector<3x256xbf16> to vector<1x256xbf16>
    %304 = vector.broadcast %303 : vector<1x256xbf16> to vector<8x256xbf16>
    %305 = arith.mulf %302, %304 : vector<8x256xbf16>
    %c0_262 = arith.constant 0 : index
    %c0_263 = arith.constant 0 : index
    %306 = vector.load %arg7[%c0_262, %c0_263] : memref<72x256xbf16, #tpu.memory_space<vmem>>, vector<8x256xbf16>
    tpu.vector_store %arg7[%c0_262, %c0_263], %305 {strides = array<i32>} : memref<72x256xbf16, #tpu.memory_space<vmem>>, vector<8x256xbf16>,
    %c0_264 = arith.constant 0 : index
    %c112_265 = arith.constant 112 : index
    %307 = vector.load %arg6[%c0_264, %c112_265] : memref<8x512xbf16, #tpu.memory_space<vmem>>, vector<8x256xbf16>
    %c8_266 = arith.constant 8 : index
    %c0_267 = arith.constant 0 : index
    %308 = vector.load %arg7[%c8_266, %c0_267] : memref<72x256xbf16, #tpu.memory_space<vmem>>, vector<8x256xbf16>
    tpu.vector_store %arg7[%c8_266, %c0_267], %307 {strides = array<i32>} : memref<72x256xbf16, #tpu.memory_space<vmem>>, vector<8x256xbf16>,
    %c0_268 = arith.constant 0 : index
    %c113_269 = arith.constant 113 : index
    %309 = vector.load %arg6[%c0_268, %c113_269] : memref<8x512xbf16, #tpu.memory_space<vmem>>, vector<8x256xbf16>
    %310 = vector.extract_strided_slice %4 {offsets = [2, 0], sizes = [1, 256], strides = [1, 1]} : vector<3x256xbf16> to vector<1x256xbf16>
    %311 = vector.broadcast %310 : vector<1x256xbf16> to vector<8x256xbf16>
    %312 = arith.mulf %309, %311 : vector<8x256xbf16>
    %c16_270 = arith.constant 16 : index
    %c0_271 = arith.constant 0 : index
    %313 = vector.load %arg7[%c16_270, %c0_271] : memref<72x256xbf16, #tpu.memory_space<vmem>>, vector<8x256xbf16>
    tpu.vector_store %arg7[%c16_270, %c0_271], %312 {strides = array<i32>} : memref<72x256xbf16, #tpu.memory_space<vmem>>, vector<8x256xbf16>,
    %c0_272 = arith.constant 0 : index
    %c127_273 = arith.constant 127 : index
    %314 = vector.load %arg6[%c0_272, %c127_273] : memref<8x512xbf16, #tpu.memory_space<vmem>>, vector<8x256xbf16>
    %315 = vector.extract_strided_slice %4 {offsets = [0, 0], sizes = [1, 256], strides = [1, 1]} : vector<3x256xbf16> to vector<1x256xbf16>
    %316 = vector.broadcast %315 : vector<1x256xbf16> to vector<8x256xbf16>
    %317 = arith.mulf %314, %316 : vector<8x256xbf16>
    %c24_274 = arith.constant 24 : index
    %c0_275 = arith.constant 0 : index
    %318 = vector.load %arg7[%c24_274, %c0_275] : memref<72x256xbf16, #tpu.memory_space<vmem>>, vector<8x256xbf16>
    tpu.vector_store %arg7[%c24_274, %c0_275], %317 {strides = array<i32>} : memref<72x256xbf16, #tpu.memory_space<vmem>>, vector<8x256xbf16>,
    %c0_276 = arith.constant 0 : index
    %c128_277 = arith.constant 128 : index
    %319 = vector.load %arg6[%c0_276, %c128_277] : memref<8x512xbf16, #tpu.memory_space<vmem>>, vector<8x256xbf16>
    %c32_278 = arith.constant 32 : index
    %c0_279 = arith.constant 0 : index
    %320 = vector.load %arg7[%c32_278, %c0_279] : memref<72x256xbf16, #tpu.memory_space<vmem>>, vector<8x256xbf16>
    tpu.vector_store %arg7[%c32_278, %c0_279], %319 {strides = array<i32>} : memref<72x256xbf16, #tpu.memory_space<vmem>>, vector<8x256xbf16>,
    %c0_280 = arith.constant 0 : index
    %c129_281 = arith.constant 129 : index
    %321 = vector.load %arg6[%c0_280, %c129_281] : memref<8x512xbf16, #tpu.memory_space<vmem>>, vector<8x256xbf16>
    %322 = vector.extract_strided_slice %4 {offsets = [2, 0], sizes = [1, 256], strides = [1, 1]} : vector<3x256xbf16> to vector<1x256xbf16>
    %323 = vector.broadcast %322 : vector<1x256xbf16> to vector<8x256xbf16>
    %324 = arith.mulf %321, %323 : vector<8x256xbf16>
    %c40_282 = arith.constant 40 : index
    %c0_283 = arith.constant 0 : index
    %325 = vector.load %arg7[%c40_282, %c0_283] : memref<72x256xbf16, #tpu.memory_space<vmem>>, vector<8x256xbf16>
    tpu.vector_store %arg7[%c40_282, %c0_283], %324 {strides = array<i32>} : memref<72x256xbf16, #tpu.memory_space<vmem>>, vector<8x256xbf16>,
    %c0_284 = arith.constant 0 : index
    %c143_285 = arith.constant 143 : index
    %326 = vector.load %arg6[%c0_284, %c143_285] : memref<8x512xbf16, #tpu.memory_space<vmem>>, vector<8x256xbf16>
    %327 = vector.extract_strided_slice %4 {offsets = [0, 0], sizes = [1, 256], strides = [1, 1]} : vector<3x256xbf16> to vector<1x256xbf16>
    %328 = vector.broadcast %327 : vector<1x256xbf16> to vector<8x256xbf16>
    %329 = arith.mulf %326, %328 : vector<8x256xbf16>
    %c48_286 = arith.constant 48 : index
    %c0_287 = arith.constant 0 : index
    %330 = vector.load %arg7[%c48_286, %c0_287] : memref<72x256xbf16, #tpu.memory_space<vmem>>, vector<8x256xbf16>
    tpu.vector_store %arg7[%c48_286, %c0_287], %329 {strides = array<i32>} : memref<72x256xbf16, #tpu.memory_space<vmem>>, vector<8x256xbf16>,
    %c0_288 = arith.constant 0 : index
    %c144_289 = arith.constant 144 : index
    %331 = vector.load %arg6[%c0_288, %c144_289] : memref<8x512xbf16, #tpu.memory_space<vmem>>, vector<8x256xbf16>
    %c56_290 = arith.constant 56 : index
    %c0_291 = arith.constant 0 : index
    %332 = vector.load %arg7[%c56_290, %c0_291] : memref<72x256xbf16, #tpu.memory_space<vmem>>, vector<8x256xbf16>
    tpu.vector_store %arg7[%c56_290, %c0_291], %331 {strides = array<i32>} : memref<72x256xbf16, #tpu.memory_space<vmem>>, vector<8x256xbf16>,
    %c0_292 = arith.constant 0 : index
    %c145_293 = arith.constant 145 : index
    %333 = vector.load %arg6[%c0_292, %c145_293] : memref<8x512xbf16, #tpu.memory_space<vmem>>, vector<8x256xbf16>
    %334 = vector.extract_strided_slice %4 {offsets = [2, 0], sizes = [1, 256], strides = [1, 1]} : vector<3x256xbf16> to vector<1x256xbf16>
    %335 = vector.broadcast %334 : vector<1x256xbf16> to vector<8x256xbf16>
    %336 = arith.mulf %333, %335 : vector<8x256xbf16>
    %c64_294 = arith.constant 64 : index
    %c0_295 = arith.constant 0 : index
    %337 = vector.load %arg7[%c64_294, %c0_295] : memref<72x256xbf16, #tpu.memory_space<vmem>>, vector<8x256xbf16>
    tpu.vector_store %arg7[%c64_294, %c0_295], %336 {strides = array<i32>} : memref<72x256xbf16, #tpu.memory_space<vmem>>, vector<8x256xbf16>,
    %c0_296 = arith.constant 0 : index
    %c0_297 = arith.constant 0 : index
    %338 = vector.load %arg7[%c0_296, %c0_297] : memref<72x256xbf16, #tpu.memory_space<vmem>>, vector<72x256xbf16>
    %cst_298 = arith.constant dense<0.000000e+00> : vector<32x256xf32>
    %339 = tpu.matmul %6, %338, %cst_298 {dimension_numbers = #tpu.dot_dimension_numbers<[1], [0], [0], [1], [0, 0, 1, 1], [], []>} : vector<32x72xbf16>, vector<72x256xbf16>, vector<32x256xf32> -> vector<32x256xf32>
    %340 = vector.broadcast %11 : vector<32x1xf32> to vector<32x256xf32>
    %341 = arith.addf %339, %340 : vector<32x256xf32>
    %cst_299 = arith.constant 0.000000e+00 : f32
    %342 = vector.broadcast %cst_299 : f32 to vector<32x256xf32>
    %343 = arith.maximumf %341, %342 : vector<32x256xf32>
    %cst_300 = arith.constant dense<0.000000e+00> : vector<32xf32>
    %344 = vector.multi_reduction <add>, %343, %cst_300 [1] : vector<32x256xf32> to vector<32xf32>
    %345 = vector.shape_cast %344 : vector<32xf32> to vector<32x1xf32>
    %cst_301 = arith.constant 3.906250e-03 : f32
    %346 = vector.broadcast %cst_301 : f32 to vector<32x1xf32>
    %347 = arith.mulf %345, %346 : vector<32x1xf32>
    %c0_302 = arith.constant 0 : index
    %c512_303 = arith.constant 512 : index
    %348 = vector.load %arg8[%c0_302, %c512_303] : memref<16x1024xf32, #tpu.memory_space<vmem>>, vector<8x256xf32>
    %349 = vector.extract_strided_slice %233 {offsets = [0, 2], sizes = [8, 1], strides = [1, 1]} : vector<16x4xf32> to vector<8x1xf32>
    %350 = vector.broadcast %349 : vector<8x1xf32> to vector<8x256xf32>
    %351 = arith.mulf %348, %350 : vector<8x256xf32>
    %c8_304 = arith.constant 8 : index
    %c512_305 = arith.constant 512 : index
    %352 = vector.load %arg8[%c8_304, %c512_305] : memref<16x1024xf32, #tpu.memory_space<vmem>>, vector<8x256xf32>
    %353 = vector.extract_strided_slice %233 {offsets = [8, 2], sizes = [8, 1], strides = [1, 1]} : vector<16x4xf32> to vector<8x1xf32>
    %354 = vector.broadcast %353 : vector<8x1xf32> to vector<8x256xf32>
    %355 = arith.mulf %352, %354 : vector<8x256xf32>
    %356 = arith.addf %351, %355 : vector<8x256xf32>
    %357 = arith.truncf %356 : vector<8x256xf32> to vector<8x256xbf16>
    %c0_306 = arith.constant 0 : index
    %c128_307 = arith.constant 128 : index
    %358 = vector.load %arg6[%c0_306, %c128_307] : memref<8x512xbf16, #tpu.memory_space<vmem>>, vector<8x256xbf16>
    tpu.vector_store %arg6[%c0_306, %c128_307], %357 {strides = array<i32>} : memref<8x512xbf16, #tpu.memory_space<vmem>>, vector<8x256xbf16>,
    %c0_308 = arith.constant 0 : index
    %c111_309 = arith.constant 111 : index
    %359 = vector.load %arg6[%c0_308, %c111_309] : memref<8x512xbf16, #tpu.memory_space<vmem>>, vector<8x256xbf16>
    %360 = vector.extract_strided_slice %4 {offsets = [0, 0], sizes = [1, 256], strides = [1, 1]} : vector<3x256xbf16> to vector<1x256xbf16>
    %361 = vector.broadcast %360 : vector<1x256xbf16> to vector<8x256xbf16>
    %362 = arith.mulf %359, %361 : vector<8x256xbf16>
    %c0_310 = arith.constant 0 : index
    %c0_311 = arith.constant 0 : index
    %363 = vector.load %arg7[%c0_310, %c0_311] : memref<72x256xbf16, #tpu.memory_space<vmem>>, vector<8x256xbf16>
    tpu.vector_store %arg7[%c0_310, %c0_311], %362 {strides = array<i32>} : memref<72x256xbf16, #tpu.memory_space<vmem>>, vector<8x256xbf16>,
    %c0_312 = arith.constant 0 : index
    %c112_313 = arith.constant 112 : index
    %364 = vector.load %arg6[%c0_312, %c112_313] : memref<8x512xbf16, #tpu.memory_space<vmem>>, vector<8x256xbf16>
    %c8_314 = arith.constant 8 : index
    %c0_315 = arith.constant 0 : index
    %365 = vector.load %arg7[%c8_314, %c0_315] : memref<72x256xbf16, #tpu.memory_space<vmem>>, vector<8x256xbf16>
    tpu.vector_store %arg7[%c8_314, %c0_315], %364 {strides = array<i32>} : memref<72x256xbf16, #tpu.memory_space<vmem>>, vector<8x256xbf16>,
    %c0_316 = arith.constant 0 : index
    %c113_317 = arith.constant 113 : index
    %366 = vector.load %arg6[%c0_316, %c113_317] : memref<8x512xbf16, #tpu.memory_space<vmem>>, vector<8x256xbf16>
    %367 = vector.extract_strided_slice %4 {offsets = [2, 0], sizes = [1, 256], strides = [1, 1]} : vector<3x256xbf16> to vector<1x256xbf16>
    %368 = vector.broadcast %367 : vector<1x256xbf16> to vector<8x256xbf16>
    %369 = arith.mulf %366, %368 : vector<8x256xbf16>
    %c16_318 = arith.constant 16 : index
    %c0_319 = arith.constant 0 : index
    %370 = vector.load %arg7[%c16_318, %c0_319] : memref<72x256xbf16, #tpu.memory_space<vmem>>, vector<8x256xbf16>
    tpu.vector_store %arg7[%c16_318, %c0_319], %369 {strides = array<i32>} : memref<72x256xbf16, #tpu.memory_space<vmem>>, vector<8x256xbf16>,
    %c0_320 = arith.constant 0 : index
    %c127_321 = arith.constant 127 : index
    %371 = vector.load %arg6[%c0_320, %c127_321] : memref<8x512xbf16, #tpu.memory_space<vmem>>, vector<8x256xbf16>
    %372 = vector.extract_strided_slice %4 {offsets = [0, 0], sizes = [1, 256], strides = [1, 1]} : vector<3x256xbf16> to vector<1x256xbf16>
    %373 = vector.broadcast %372 : vector<1x256xbf16> to vector<8x256xbf16>
    %374 = arith.mulf %371, %373 : vector<8x256xbf16>
    %c24_322 = arith.constant 24 : index
    %c0_323 = arith.constant 0 : index
    %375 = vector.load %arg7[%c24_322, %c0_323] : memref<72x256xbf16, #tpu.memory_space<vmem>>, vector<8x256xbf16>
    tpu.vector_store %arg7[%c24_322, %c0_323], %374 {strides = array<i32>} : memref<72x256xbf16, #tpu.memory_space<vmem>>, vector<8x256xbf16>,
    %c0_324 = arith.constant 0 : index
    %c128_325 = arith.constant 128 : index
    %376 = vector.load %arg6[%c0_324, %c128_325] : memref<8x512xbf16, #tpu.memory_space<vmem>>, vector<8x256xbf16>
    %c32_326 = arith.constant 32 : index
    %c0_327 = arith.constant 0 : index
    %377 = vector.load %arg7[%c32_326, %c0_327] : memref<72x256xbf16, #tpu.memory_space<vmem>>, vector<8x256xbf16>
    tpu.vector_store %arg7[%c32_326, %c0_327], %376 {strides = array<i32>} : memref<72x256xbf16, #tpu.memory_space<vmem>>, vector<8x256xbf16>,
    %c0_328 = arith.constant 0 : index
    %c129_329 = arith.constant 129 : index
    %378 = vector.load %arg6[%c0_328, %c129_329] : memref<8x512xbf16, #tpu.memory_space<vmem>>, vector<8x256xbf16>
    %379 = vector.extract_strided_slice %4 {offsets = [2, 0], sizes = [1, 256], strides = [1, 1]} : vector<3x256xbf16> to vector<1x256xbf16>
    %380 = vector.broadcast %379 : vector<1x256xbf16> to vector<8x256xbf16>
    %381 = arith.mulf %378, %380 : vector<8x256xbf16>
    %c40_330 = arith.constant 40 : index
    %c0_331 = arith.constant 0 : index
    %382 = vector.load %arg7[%c40_330, %c0_331] : memref<72x256xbf16, #tpu.memory_space<vmem>>, vector<8x256xbf16>
    tpu.vector_store %arg7[%c40_330, %c0_331], %381 {strides = array<i32>} : memref<72x256xbf16, #tpu.memory_space<vmem>>, vector<8x256xbf16>,
    %c0_332 = arith.constant 0 : index
    %c143_333 = arith.constant 143 : index
    %383 = vector.load %arg6[%c0_332, %c143_333] : memref<8x512xbf16, #tpu.memory_space<vmem>>, vector<8x256xbf16>
    %384 = vector.extract_strided_slice %4 {offsets = [0, 0], sizes = [1, 256], strides = [1, 1]} : vector<3x256xbf16> to vector<1x256xbf16>
    %385 = vector.broadcast %384 : vector<1x256xbf16> to vector<8x256xbf16>
    %386 = arith.mulf %383, %385 : vector<8x256xbf16>
    %c48_334 = arith.constant 48 : index
    %c0_335 = arith.constant 0 : index
    %387 = vector.load %arg7[%c48_334, %c0_335] : memref<72x256xbf16, #tpu.memory_space<vmem>>, vector<8x256xbf16>
    tpu.vector_store %arg7[%c48_334, %c0_335], %386 {strides = array<i32>} : memref<72x256xbf16, #tpu.memory_space<vmem>>, vector<8x256xbf16>,
    %c0_336 = arith.constant 0 : index
    %c144_337 = arith.constant 144 : index
    %388 = vector.load %arg6[%c0_336, %c144_337] : memref<8x512xbf16, #tpu.memory_space<vmem>>, vector<8x256xbf16>
    %c56_338 = arith.constant 56 : index
    %c0_339 = arith.constant 0 : index
    %389 = vector.load %arg7[%c56_338, %c0_339] : memref<72x256xbf16, #tpu.memory_space<vmem>>, vector<8x256xbf16>
    tpu.vector_store %arg7[%c56_338, %c0_339], %388 {strides = array<i32>} : memref<72x256xbf16, #tpu.memory_space<vmem>>, vector<8x256xbf16>,
    %c0_340 = arith.constant 0 : index
    %c145_341 = arith.constant 145 : index
    %390 = vector.load %arg6[%c0_340, %c145_341] : memref<8x512xbf16, #tpu.memory_space<vmem>>, vector<8x256xbf16>
    %391 = vector.extract_strided_slice %4 {offsets = [2, 0], sizes = [1, 256], strides = [1, 1]} : vector<3x256xbf16> to vector<1x256xbf16>
    %392 = vector.broadcast %391 : vector<1x256xbf16> to vector<8x256xbf16>
    %393 = arith.mulf %390, %392 : vector<8x256xbf16>
    %c64_342 = arith.constant 64 : index
    %c0_343 = arith.constant 0 : index
    %394 = vector.load %arg7[%c64_342, %c0_343] : memref<72x256xbf16, #tpu.memory_space<vmem>>, vector<8x256xbf16>
    tpu.vector_store %arg7[%c64_342, %c0_343], %393 {strides = array<i32>} : memref<72x256xbf16, #tpu.memory_space<vmem>>, vector<8x256xbf16>,
    %c0_344 = arith.constant 0 : index
    %c0_345 = arith.constant 0 : index
    %395 = vector.load %arg7[%c0_344, %c0_345] : memref<72x256xbf16, #tpu.memory_space<vmem>>, vector<72x256xbf16>
    %cst_346 = arith.constant dense<0.000000e+00> : vector<32x256xf32>
    %396 = tpu.matmul %6, %395, %cst_346 {dimension_numbers = #tpu.dot_dimension_numbers<[1], [0], [0], [1], [0, 0, 1, 1], [], []>} : vector<32x72xbf16>, vector<72x256xbf16>, vector<32x256xf32> -> vector<32x256xf32>
    %397 = vector.broadcast %11 : vector<32x1xf32> to vector<32x256xf32>
    %398 = arith.addf %396, %397 : vector<32x256xf32>
    %cst_347 = arith.constant 0.000000e+00 : f32
    %399 = vector.broadcast %cst_347 : f32 to vector<32x256xf32>
    %400 = arith.maximumf %398, %399 : vector<32x256xf32>
    %cst_348 = arith.constant dense<0.000000e+00> : vector<32xf32>
    %401 = vector.multi_reduction <add>, %400, %cst_348 [1] : vector<32x256xf32> to vector<32xf32>
    %402 = vector.shape_cast %401 : vector<32xf32> to vector<32x1xf32>
    %cst_349 = arith.constant 3.906250e-03 : f32
    %403 = vector.broadcast %cst_349 : f32 to vector<32x1xf32>
    %404 = arith.mulf %402, %403 : vector<32x1xf32>
    %c0_350 = arith.constant 0 : index
    %c768_351 = arith.constant 768 : index
    %405 = vector.load %arg8[%c0_350, %c768_351] : memref<16x1024xf32, #tpu.memory_space<vmem>>, vector<8x256xf32>
    %406 = vector.extract_strided_slice %233 {offsets = [0, 3], sizes = [8, 1], strides = [1, 1]} : vector<16x4xf32> to vector<8x1xf32>
    %407 = vector.broadcast %406 : vector<8x1xf32> to vector<8x256xf32>
    %408 = arith.mulf %405, %407 : vector<8x256xf32>
    %c8_352 = arith.constant 8 : index
    %c768_353 = arith.constant 768 : index
    %409 = vector.load %arg8[%c8_352, %c768_353] : memref<16x1024xf32, #tpu.memory_space<vmem>>, vector<8x256xf32>
    %410 = vector.extract_strided_slice %233 {offsets = [8, 3], sizes = [8, 1], strides = [1, 1]} : vector<16x4xf32> to vector<8x1xf32>
    %411 = vector.broadcast %410 : vector<8x1xf32> to vector<8x256xf32>
    %412 = arith.mulf %409, %411 : vector<8x256xf32>
    %413 = arith.addf %408, %412 : vector<8x256xf32>
    %414 = arith.truncf %413 : vector<8x256xf32> to vector<8x256xbf16>
    %c0_354 = arith.constant 0 : index
    %c128_355 = arith.constant 128 : index
    %415 = vector.load %arg6[%c0_354, %c128_355] : memref<8x512xbf16, #tpu.memory_space<vmem>>, vector<8x256xbf16>
    tpu.vector_store %arg6[%c0_354, %c128_355], %414 {strides = array<i32>} : memref<8x512xbf16, #tpu.memory_space<vmem>>, vector<8x256xbf16>,
    %c0_356 = arith.constant 0 : index
    %c111_357 = arith.constant 111 : index
    %416 = vector.load %arg6[%c0_356, %c111_357] : memref<8x512xbf16, #tpu.memory_space<vmem>>, vector<8x256xbf16>
    %417 = vector.extract_strided_slice %4 {offsets = [0, 0], sizes = [1, 256], strides = [1, 1]} : vector<3x256xbf16> to vector<1x256xbf16>
    %418 = vector.broadcast %417 : vector<1x256xbf16> to vector<8x256xbf16>
    %419 = arith.mulf %416, %418 : vector<8x256xbf16>
    %c0_358 = arith.constant 0 : index
    %c0_359 = arith.constant 0 : index
    %420 = vector.load %arg7[%c0_358, %c0_359] : memref<72x256xbf16, #tpu.memory_space<vmem>>, vector<8x256xbf16>
    tpu.vector_store %arg7[%c0_358, %c0_359], %419 {strides = array<i32>} : memref<72x256xbf16, #tpu.memory_space<vmem>>, vector<8x256xbf16>,
    %c0_360 = arith.constant 0 : index
    %c112_361 = arith.constant 112 : index
    %421 = vector.load %arg6[%c0_360, %c112_361] : memref<8x512xbf16, #tpu.memory_space<vmem>>, vector<8x256xbf16>
    %c8_362 = arith.constant 8 : index
    %c0_363 = arith.constant 0 : index
    %422 = vector.load %arg7[%c8_362, %c0_363] : memref<72x256xbf16, #tpu.memory_space<vmem>>, vector<8x256xbf16>
    tpu.vector_store %arg7[%c8_362, %c0_363], %421 {strides = array<i32>} : memref<72x256xbf16, #tpu.memory_space<vmem>>, vector<8x256xbf16>,
    %c0_364 = arith.constant 0 : index
    %c113_365 = arith.constant 113 : index
    %423 = vector.load %arg6[%c0_364, %c113_365] : memref<8x512xbf16, #tpu.memory_space<vmem>>, vector<8x256xbf16>
    %424 = vector.extract_strided_slice %4 {offsets = [2, 0], sizes = [1, 256], strides = [1, 1]} : vector<3x256xbf16> to vector<1x256xbf16>
    %425 = vector.broadcast %424 : vector<1x256xbf16> to vector<8x256xbf16>
    %426 = arith.mulf %423, %425 : vector<8x256xbf16>
    %c16_366 = arith.constant 16 : index
    %c0_367 = arith.constant 0 : index
    %427 = vector.load %arg7[%c16_366, %c0_367] : memref<72x256xbf16, #tpu.memory_space<vmem>>, vector<8x256xbf16>
    tpu.vector_store %arg7[%c16_366, %c0_367], %426 {strides = array<i32>} : memref<72x256xbf16, #tpu.memory_space<vmem>>, vector<8x256xbf16>,
    %c0_368 = arith.constant 0 : index
    %c127_369 = arith.constant 127 : index
    %428 = vector.load %arg6[%c0_368, %c127_369] : memref<8x512xbf16, #tpu.memory_space<vmem>>, vector<8x256xbf16>
    %429 = vector.extract_strided_slice %4 {offsets = [0, 0], sizes = [1, 256], strides = [1, 1]} : vector<3x256xbf16> to vector<1x256xbf16>
    %430 = vector.broadcast %429 : vector<1x256xbf16> to vector<8x256xbf16>
    %431 = arith.mulf %428, %430 : vector<8x256xbf16>
    %c24_370 = arith.constant 24 : index
    %c0_371 = arith.constant 0 : index
    %432 = vector.load %arg7[%c24_370, %c0_371] : memref<72x256xbf16, #tpu.memory_space<vmem>>, vector<8x256xbf16>
    tpu.vector_store %arg7[%c24_370, %c0_371], %431 {strides = array<i32>} : memref<72x256xbf16, #tpu.memory_space<vmem>>, vector<8x256xbf16>,
    %c0_372 = arith.constant 0 : index
    %c128_373 = arith.constant 128 : index
    %433 = vector.load %arg6[%c0_372, %c128_373] : memref<8x512xbf16, #tpu.memory_space<vmem>>, vector<8x256xbf16>
    %c32_374 = arith.constant 32 : index
    %c0_375 = arith.constant 0 : index
    %434 = vector.load %arg7[%c32_374, %c0_375] : memref<72x256xbf16, #tpu.memory_space<vmem>>, vector<8x256xbf16>
    tpu.vector_store %arg7[%c32_374, %c0_375], %433 {strides = array<i32>} : memref<72x256xbf16, #tpu.memory_space<vmem>>, vector<8x256xbf16>,
    %c0_376 = arith.constant 0 : index
    %c129_377 = arith.constant 129 : index
    %435 = vector.load %arg6[%c0_376, %c129_377] : memref<8x512xbf16, #tpu.memory_space<vmem>>, vector<8x256xbf16>
    %436 = vector.extract_strided_slice %4 {offsets = [2, 0], sizes = [1, 256], strides = [1, 1]} : vector<3x256xbf16> to vector<1x256xbf16>
    %437 = vector.broadcast %436 : vector<1x256xbf16> to vector<8x256xbf16>
    %438 = arith.mulf %435, %437 : vector<8x256xbf16>
    %c40_378 = arith.constant 40 : index
    %c0_379 = arith.constant 0 : index
    %439 = vector.load %arg7[%c40_378, %c0_379] : memref<72x256xbf16, #tpu.memory_space<vmem>>, vector<8x256xbf16>
    tpu.vector_store %arg7[%c40_378, %c0_379], %438 {strides = array<i32>} : memref<72x256xbf16, #tpu.memory_space<vmem>>, vector<8x256xbf16>,
    %c0_380 = arith.constant 0 : index
    %c143_381 = arith.constant 143 : index
    %440 = vector.load %arg6[%c0_380, %c143_381] : memref<8x512xbf16, #tpu.memory_space<vmem>>, vector<8x256xbf16>
    %441 = vector.extract_strided_slice %4 {offsets = [0, 0], sizes = [1, 256], strides = [1, 1]} : vector<3x256xbf16> to vector<1x256xbf16>
    %442 = vector.broadcast %441 : vector<1x256xbf16> to vector<8x256xbf16>
    %443 = arith.mulf %440, %442 : vector<8x256xbf16>
    %c48_382 = arith.constant 48 : index
    %c0_383 = arith.constant 0 : index
    %444 = vector.load %arg7[%c48_382, %c0_383] : memref<72x256xbf16, #tpu.memory_space<vmem>>, vector<8x256xbf16>
    tpu.vector_store %arg7[%c48_382, %c0_383], %443 {strides = array<i32>} : memref<72x256xbf16, #tpu.memory_space<vmem>>, vector<8x256xbf16>,
    %c0_384 = arith.constant 0 : index
    %c144_385 = arith.constant 144 : index
    %445 = vector.load %arg6[%c0_384, %c144_385] : memref<8x512xbf16, #tpu.memory_space<vmem>>, vector<8x256xbf16>
    %c56_386 = arith.constant 56 : index
    %c0_387 = arith.constant 0 : index
    %446 = vector.load %arg7[%c56_386, %c0_387] : memref<72x256xbf16, #tpu.memory_space<vmem>>, vector<8x256xbf16>
    tpu.vector_store %arg7[%c56_386, %c0_387], %445 {strides = array<i32>} : memref<72x256xbf16, #tpu.memory_space<vmem>>, vector<8x256xbf16>,
    %c0_388 = arith.constant 0 : index
    %c145_389 = arith.constant 145 : index
    %447 = vector.load %arg6[%c0_388, %c145_389] : memref<8x512xbf16, #tpu.memory_space<vmem>>, vector<8x256xbf16>
    %448 = vector.extract_strided_slice %4 {offsets = [2, 0], sizes = [1, 256], strides = [1, 1]} : vector<3x256xbf16> to vector<1x256xbf16>
    %449 = vector.broadcast %448 : vector<1x256xbf16> to vector<8x256xbf16>
    %450 = arith.mulf %447, %449 : vector<8x256xbf16>
    %c64_390 = arith.constant 64 : index
    %c0_391 = arith.constant 0 : index
    %451 = vector.load %arg7[%c64_390, %c0_391] : memref<72x256xbf16, #tpu.memory_space<vmem>>, vector<8x256xbf16>
    tpu.vector_store %arg7[%c64_390, %c0_391], %450 {strides = array<i32>} : memref<72x256xbf16, #tpu.memory_space<vmem>>, vector<8x256xbf16>,
    %c0_392 = arith.constant 0 : index
    %c0_393 = arith.constant 0 : index
    %452 = vector.load %arg7[%c0_392, %c0_393] : memref<72x256xbf16, #tpu.memory_space<vmem>>, vector<72x256xbf16>
    %cst_394 = arith.constant dense<0.000000e+00> : vector<32x256xf32>
    %453 = tpu.matmul %6, %452, %cst_394 {dimension_numbers = #tpu.dot_dimension_numbers<[1], [0], [0], [1], [0, 0, 1, 1], [], []>} : vector<32x72xbf16>, vector<72x256xbf16>, vector<32x256xf32> -> vector<32x256xf32>
    %454 = vector.broadcast %11 : vector<32x1xf32> to vector<32x256xf32>
    %455 = arith.addf %453, %454 : vector<32x256xf32>
    %cst_395 = arith.constant 0.000000e+00 : f32
    %456 = vector.broadcast %cst_395 : f32 to vector<32x256xf32>
    %457 = arith.maximumf %455, %456 : vector<32x256xf32>
    %cst_396 = arith.constant dense<0.000000e+00> : vector<32xf32>
    %458 = vector.multi_reduction <add>, %457, %cst_396 [1] : vector<32x256xf32> to vector<32xf32>
    %459 = vector.shape_cast %458 : vector<32xf32> to vector<32x1xf32>
    %cst_397 = arith.constant 3.906250e-03 : f32
    %460 = vector.broadcast %cst_397 : f32 to vector<32x1xf32>
    %461 = arith.mulf %459, %460 : vector<32x1xf32>
    %462 = tpu.concatenate %290, %347, %404, %461 in 1 : vector<32x1xf32>, vector<32x1xf32>, vector<32x1xf32>, vector<32x1xf32> -> vector<32x4xf32>
    %cst_398 = arith.constant dense<0.000000e+00> : vector<32x4xf32>
    %463 = tpu.matmul %10, %462, %cst_398 {dimension_numbers = #tpu.dot_dimension_numbers<[1], [0], [0], [1], [0, 0, 1, 1], [], []>} : vector<32x32xf32>, vector<32x4xf32>, vector<32x4xf32> -> vector<32x4xf32>
    %464 = vector.broadcast %12 : vector<32x1xf32> to vector<32x4xf32>
    %465 = arith.addf %463, %464 : vector<32x4xf32>
    %cst_399 = arith.constant 0.000000e+00 : f32
    %466 = vector.broadcast %cst_399 : f32 to vector<32x4xf32>
    %467 = arith.subf %466, %465 : vector<32x4xf32>
    %468 = math.exp %467 : vector<32x4xf32>
    %cst_400 = arith.constant 1.000000e+00 : f32
    %469 = vector.broadcast %cst_400 : f32 to vector<32x4xf32>
    %470 = arith.addf %469, %468 : vector<32x4xf32>
    %471 = tpu.reciprocal %470 {approx = true} : vector<32x4xf32> -> vector<32x4xf32>
    %472 = vector.extract_strided_slice %462 {offsets = [0, 0], sizes = [16, 4], strides = [1, 1]} : vector<32x4xf32> to vector<16x4xf32>
    %473 = vector.extract_strided_slice %471 {offsets = [0, 0], sizes = [16, 4], strides = [1, 1]} : vector<32x4xf32> to vector<16x4xf32>
    %474 = arith.mulf %472, %473 : vector<16x4xf32>
    %475 = vector.extract_strided_slice %462 {offsets = [16, 0], sizes = [16, 4], strides = [1, 1]} : vector<32x4xf32> to vector<16x4xf32>
    %476 = vector.extract_strided_slice %471 {offsets = [16, 0], sizes = [16, 4], strides = [1, 1]} : vector<32x4xf32> to vector<16x4xf32>
    %477 = arith.mulf %475, %476 : vector<16x4xf32>
    %478 = arith.addf %474, %477 : vector<16x4xf32>
    %cst_401 = arith.constant dense<0.000000e+00> : vector<2x4xf32>
    %479 = tpu.matmul %13, %478, %cst_401 {dimension_numbers = #tpu.dot_dimension_numbers<[1], [0], [0], [1], [0, 0, 1, 1], [], []>} : vector<2x16xf32>, vector<16x4xf32>, vector<2x4xf32> -> vector<2x4xf32>
    %480 = vector.broadcast %14 : vector<2x1xf32> to vector<2x4xf32>
    %481 = arith.addf %479, %480 : vector<2x4xf32>
    %c0_402 = arith.constant 0 : index
    %c0_403 = arith.constant 0 : index
    %c0_404 = arith.constant 0 : index
    %482 = vector.load %arg5[%c0_402, %c0_403, %c0_404] : memref<1x2x4xf32, #tpu.memory_space<vmem>>, vector<1x2x4xf32>
    %483 = vector.shape_cast %482 : vector<1x2x4xf32> to vector<2x4xf32>
    %484 = vector.shape_cast %481 : vector<2x4xf32> to vector<1x2x4xf32>
    tpu.vector_store %arg5[%c0_402, %c0_403, %c0_404], %484 {strides = array<i32>} : memref<1x2x4xf32, #tpu.memory_space<vmem>>, vector<1x2x4xf32>,
    return
  }
  func.func @transform_0(%arg0: i32) -> (i32, i32) {
    %c0_i32 = arith.constant 0 : i32
    %c0_i32_0 = arith.constant 0 : i32
    %c0_i32_1 = arith.constant 0 : i32
    return %c0_i32, %c0_i32_0 : i32, i32
  }
  func.func @transform_1(%arg0: i32) -> (i32, i32) {
    %c0_i32 = arith.constant 0 : i32
    %c0_i32_0 = arith.constant 0 : i32
    %c0_i32_1 = arith.constant 0 : i32
    return %c0_i32, %c0_i32_0 : i32, i32
  }
  func.func @transform_2(%arg0: i32) -> (i32, i32) {
    %c0_i32 = arith.constant 0 : i32
    %c0_i32_0 = arith.constant 0 : i32
    return %c0_i32, %arg0 : i32, i32
  }
  func.func @transform_3(%arg0: i32) -> (i32, i32) {
    %c0_i32 = arith.constant 0 : i32
    %c0_i32_0 = arith.constant 0 : i32
    return %c0_i32, %arg0 : i32, i32
  }
  func.func @transform_4(%arg0: i32) -> (i32, i32, i32) {
    %c0_i32 = arith.constant 0 : i32
    %c0_i32_0 = arith.constant 0 : i32
    %c0_i32_1 = arith.constant 0 : i32
    return %arg0, %c0_i32, %c0_i32_0 : i32, i32, i32
  }
}

</mosaic_0001>

<bundles_post_ra>
// kernel: _lambda_.1
= control target key start
LH: loop header
LB: loop body
LE: loop exit
PB: predicated region body
PF: predicated region fallthrough
CT: control target
= control target key end

     0   :  { %s3372_s15 = smov 0   ;;  %s4433_s0 = inlined_call_operand.vmem [shape: bf16[56,256], index: 0, kind: input, shape index: {}]   ;;  %s4434_s1 = inlined_call_operand.vmem [shape: f32[82,32], index: 1, kind: input, shape index: {}]   ;;  %s4435_s2 = inlined_call_operand.vmem [shape: f32[3,2048], index: 2, kind: input, shape index: {}]   ;;  %s4436_s3 = inlined_call_operand.vmem [shape: f32[4,2048], index: 3, kind: input, shape index: {}]   ;;  %s4437_s4 = inlined_call_operand.vmem [shape: f32[2,2,4], index: 4, kind: output, shape index: {}]  }
   0x1 LB: > { %s3378_s16 = sadd.s32 4294967295, %s3328_s15   ;;  %p3026_p0 = scmp.ge.s32.totalorder %s3328_s15, 1  ;;  %s3328_s15 = sphi %s3372_s15, %s14_s15  }
   0x2   : > { %p174_p1 = scmp.lt.s32.totalorder %s3328_s15, 3 }
   0x4   : > { %p175_p2 = pnand %p3026_p0, %p174_p1 }
   0x6   : > { %178 = sbr.rel (%p175_p2) target bundleno = 2222 (0x8ae), region = 36 }
   0xd   : > { %v223_v0 = vld [vmem:[%s4433_s0] sm:$0x33]  ;;  %v277_v1 = vlaneseq  ;;  %v4440_v4 = vmov 0   ;;  %s3027_s19 = sshll.u32 %s3378_s16, 3  ;;  %s3331_s27 = smov 127   ;;  %vm252_vm0 = vcmask 1042432  }
   0xe   : > { %v3033_v2 = vcombine.low %v223_v0, %v223_v0  ;;  %v3034_v3 = vcombine.high %v223_v0, %v223_v0  ;;  %221 = vst [vmem:[#allocation2] sm:$0xf] %v4440_v4  ;;  %222 = vst [vmem:[#allocation2 + $0xc] sm:$0xf] %v4440_v4  ;;  %587 = vmatprep.mubr.bf16.mxu0 %v4440_v4  ;;  %856 = vmatprep.mubr.bf16.mxu1 %v4440_v4  ;;  %p205_p3 = scmp.lt.s32.totalorder %s3027_s19, 15  ;;  %s3332_s28 = smov 111  }
   0xf   : > { %v278_v5 = vshrl.u32 %v277_v1, 7  ;;  %vm255_vm1 = vcmask 1046528   ;;  %s3333_s29 = smov 1   ;;  %s3334_s30 = smov 113   ;;  %vm296_vm2 = vcmask 908288   ;;  %vm312_vm3 = vcmask 138240  }
  0x10   : > { %v275_v6 = vpack.i.b16 %v3033_v2, %v3033_v2  ;;  %v282_v7 = vpack.i.b16 %v3034_v3, %v3034_v3  ;;  %s4453_s19 = smov (!%p205_p3, %s3027_s19), 15  ;;  %s3335_s5 = smov 17   ;;  %vm349_vm4 = vcmask 924672   ;;  %vm373_vm5 = vcmask 1039360  }
  0x11   : > { %v279_v8 = vsub.s32 0, %v278_v5  ;;  %v335_v9 = vsub.s32 1, %v278_v5  ;;  %s3028_s20 = sshll.u32 %s4453_s19, 2  ;;  %s3336_s6 = smov 15   ;;  %vm388_vm6 = vcmask 7168   ;;  %vm364_vm7 = vcmask 121856  }
  0x12   : > { %s3393_s23 = scalar_lea.vmem %s4435_s2, %s3028_s20  ;;  %s3398_s26 = scalar_lea.vmem %s4436_s3, %s3028_s20  ;;  %vm310_vm8 = vcmask 1043456   ;;  %vm327_vm9 = vcmask 130048   ;;  %vm449_vm10 = vcmask 916480   ;;  %vm544_vm11 = vcmask 588800  }
  0x13   : > { %v280_v10 = vrot.slane %v275_v6, %v279_v8  ;;  %v287_v11 = vrot.slane %v282_v7, %v279_v8  ;;  %v336_v12 = vrot.slane %v275_v6, %v335_v9  ;;  %v340_v13 = vrot.slane %v282_v7, %v335_v9  ;;  %v241_v16 = vld [vmem:[%s3393_s23] sm:$0x77]  ;;  %v614_v21 = vld [vmem:[%s3393_s23 + $0x8] sm:$0x77]  ;;  %v884_v34 = vld [vmem:[%s3398_s26 + $0x10] sm:$0xff]  ;;  %s3337_s7 = smov 112  }
  0x14   : > { %v242_v17 = vld [vmem:[%s3398_s26] sm:$0xff]  ;;  %v244_v18 = vcombine.high %v241_v16, %v241_v16  ;;  %v615_v22 = vld [vmem:[%s3398_s26 + $0x8] sm:$0xff]  ;;  %v617_v27 = vcombine.high %v614_v21, %v614_v21  ;;  %v889_v39 = vcombine.high %v884_v34, %v884_v34  ;;  %v883_v40 = vld [vmem:[%s3393_s23 + $0x10] sm:$0x77]  ;;  %v890_v44 = vrot.slane %v884_v34, 5  ;;  %s3338_s8 = smov 16  }
  0x15   : > { %v3035_v14 = vcombine.low %v280_v10, %v287_v11  ;;  %v3036_v15 = vcombine.low %v336_v12, %v340_v13  ;;  %v247_v19 = vcombine.high %v242_v17, %v242_v17  ;;  %v248_v20 = vrot.slane %v242_v17, 5  ;;  %v439_v31 = vld [vmem:[#allocation2 + $0xc] sm:$0xf]  ;;  %v1153_v47 = vld [vmem:[%s3398_s26 + $0x18] sm:$0xff]  ;;  %p216_p4 = scmp.lt.s32.totalorder %s3378_s16, 1 }
  0x16   : > { %v620_v23 = vcombine.high %v615_v22, %v615_v22  ;;  %v621_v28 = vrot.slane %v615_v22, 5  ;;  %v735_v32 = vld [vmem:[#allocation2 + $0xc] sm:$0xf]  ;;  %v886_v43 = vcombine.high %v883_v40, %v883_v40  ;;  %v891_v45 = vrot.slane %v889_v39, 5  ;;  %v1152_v56 = vld [vmem:[%s3393_s23 + $0x18] sm:$0x77] }
  0x17   : > { %370 = vrot.lane.b32.xlu1 %v3035_v14, %s3331_s27  ;;  %293 = vrot.lane.b32.xlu0 %v3035_v14, %s3332_s28  ;;  %v249_v24 = vrot.slane %v247_v19, 5  ;;  %v253_v25 = vsel %vm252_vm0, %v241_v16, %v248_v20  ;;  %v3247_v38 = vpack.i.bf16 %v735_v32, %v439_v31  ;;  %v894_v51 = vsel %vm252_vm0, %v883_v40, %v890_v44  ;;  %v749_v31 = vld [vmem:[#allocation2 + $0xc] sm:$0xf]  ;;  %s4455_s16 = smov (!%p216_p4, %s3378_s16), 1 }
  0x18   : > { %v256_v26 = vsel %vm255_vm1, %v253_v25, 0.0  ;;  %v622_v29 = vrot.slane %v620_v23, 5  ;;  %v625_v36 = vsel %vm252_vm0, %v614_v21, %v621_v28  ;;  %v895_v52 = vsel %vm252_vm0, %v886_v43, %v891_v45  ;;  %v703_v45 = vld [vmem:[#allocation2 + $0xc] sm:$0xf]  ;;  %s3031_s13 = sshll.u32 %s4455_s16, 1 }
  0x19   : > { %v254_v30 = vsel %vm252_vm0, %v244_v18, %v249_v24  ;;  %v627_v41 = vsel %vm255_vm1, %v625_v36, 0.0  ;;  %v1158_v55 = vcombine.high %v1153_v47, %v1153_v47  ;;  %v896_v57 = vsel %vm255_vm1, %v894_v51, 0.0  ;;  %s219_s18 = scalar_lea.vmem %s4437_s4, %s3031_s13 }
  0x1a   : > { %v257_v33 = vsel %vm255_vm1, %v254_v30, 0.0  ;;  %v626_v37 = vsel %vm252_vm0, %v617_v27, %v622_v29  ;;  %v897_v58 = vsel %vm255_vm1, %v895_v52, 0.0  ;;  %v1155_v59 = vcombine.high %v1152_v56, %v1152_v56 }
  0x1b   : > { %396 = vrot.lane.b32.xlu1 %v3036_v15, %s3333_s29  ;;  %346 = vrot.lane.b32.xlu0 %v3036_v15, %s3334_s30  ;;  %v3413_v35 = vpack.c.bf16 %v257_v33, %v256_v26  ;;  %v628_v42 = vsel %vm255_vm1, %v626_v37, 0.0  ;;  %v1159_v60 = vrot.slane %v1153_v47, 5  ;;  %v1160_v61 = vrot.slane %v1158_v55, 5  ;;  %v454_v26 = vld [vmem:[#allocation2 + $0xc] sm:$0xf] }
  0x1c   : > { %v3424_v46 = vpack.c.bf16 %v628_v42, %v627_v41  ;;  %v3444_v62 = vpack.c.bf16 %v897_v58, %v896_v57  ;;  %v395_v41 = vld [vmem:[#allocation2 + $0xc] sm:$0xf]  ;;  %vm1424_vm12 = vcmask 15360   ;;  %vm1427_vm13 = vcmask 23552  }
  0x1d   : > { %266 = vst [vmem:[#allocation2 + $0x4] sm:$0xff] %v3413_v35  ;;  %v1163_v2 = vsel %vm252_vm0, %v1152_v56, %v1159_v60  ;;  %v1164_v3 = vsel %vm252_vm0, %v1155_v59, %v1160_v61  ;;  %v972_v59 = vld [vmem:[#allocation2 + $0xc] sm:$0xf]  ;;  %vm2754_vm14 = vcmask 261120   ;;  %vm3345_vm15 = vmmov 0  }
  0x1e   : > { %v1165_v7 = vsel %vm255_vm1, %v1163_v2, 0.0  ;;  %v1166_v8 = vsel %vm255_vm1, %v1164_v3, 0.0  ;;  %vm2955_vm0 = vcmask 25600  }
  0x1f   : > { %455 = vrot.lane.b32.xlu1 %v3036_v15, %s3335_s5  ;;  %418 = vrot.lane.b32.xlu0 %v3035_v14, %s3336_s6  ;;  %v3458_v9 = vpack.c.bf16 %v1166_v8, %v1165_v7 }
  0x23   : > { %3248 = vrot.lane.b32.xlu1 %v3247_v38, %s3337_s7 }
  0x24   : > { %v3427_v48 = vld [vmem:[#allocation2] sm:$0xff]  ;;  %v3429_v49 = vld [vmem:[#allocation2 + $0x8] sm:$0xf] }
  0x25   : > { %v3431_v50 = vld [vmem:[#allocation2 + $0x8] sm:$0xf]  ;;  %320 = vrot.lane.b32.xlu0 %v3427_v48, %s3338_s8 }
  0x26   : > { %v268_v53 = vld [vmem:[#allocation2 + $0x8] sm:$0xf] }
  0x27   : > { %v317_v54 = vld [vmem:[#allocation2 + $0x8] sm:$0xf] }
  0x28   : > { %322 = vrot.lane.b32.xlu1 %v317_v54, %s3338_s8  ;;  %637 = vst [vmem:[#allocation2 + $0x4] sm:$0xff] %v3424_v46  ;;  %v719_v54 = vld [vmem:[#allocation2 + $0xc] sm:$0xf] }
  0x29   : > { %442 = vrot.lane.b32.xlu0 %v3413_v35, %s3337_s7 }
  0x2f   : > { %v3446_v63 = vld [vmem:[#allocation2] sm:$0xff]  ;;  %v669_v0 = vld [vmem:[#allocation2 + $0x8] sm:$0xf] }
  0x30   : > { %v685_v1 = vld [vmem:[#allocation2 + $0x8] sm:$0xf]  ;;  %658 = vrot.lane.b32.xlu0 %v3446_v63, %s3338_s8 }
  0x31   : > { %v639_v5 = vld [vmem:[#allocation2 + $0x8] sm:$0xf] }
  0x32   : > { %v655_v6 = vld [vmem:[#allocation2 + $0x8] sm:$0xf] }
  0x33   : > { %660 = vrot.lane.b32.xlu1 %v655_v6, %s3338_s8  ;;  %906 = vst [vmem:[#allocation2 + $0x4] sm:$0xff] %v3444_v62 }
  0x34   : > { %738 = vrot.lane.b32.xlu0 %v3424_v46, %s3337_s7 }
  0x3a   : > { %v3460_v10 = vld [vmem:[#allocation2] sm:$0xff]  ;;  %v908_v11 = vld [vmem:[#allocation2 + $0x8] sm:$0xf] }
  0x3b   : > { %v938_v12 = vld [vmem:[#allocation2 + $0x8] sm:$0xf]  ;;  %927 = vrot.lane.b32.xlu1 %v3460_v10, %s3338_s8 }
  0x3c   : > { %v954_v13 = vld [vmem:[#allocation2 + $0x8] sm:$0xf] }
  0x3d   : > { %v924_v14 = vld [vmem:[#allocation2 + $0x8] sm:$0xf] }
  0x3e   : > { %929 = vrot.lane.b32.xlu0 %v924_v14, %s3338_s8  ;;  %1175 = vst [vmem:[#allocation2 + $0x4] sm:$0xff] %v3458_v9 }
  0x45   : > { %v3466_v15 = vld [vmem:[#allocation2] sm:$0xff]  ;;  %v1193_v16 = vld [vmem:[#allocation2 + $0x8] sm:$0xf] }
  0x46   : > { %1196 = vrot.lane.b32.xlu1 %v3466_v15, %s3338_s8  ;;  %1198 = vrot.lane.b32.xlu0 %v1193_v16, %s3338_s8  ;;  %v1177_v37 = vld [vmem:[#allocation2 + $0x8] sm:$0xf] }
  0x47   : > { %v1207_v52 = vld [vmem:[#allocation2 + $0x8] sm:$0xf] }
  0x48   : > { %v1223_v56 = vld [vmem:[#allocation2 + $0x8] sm:$0xf] }
  0x89   : > { %v3471_v17 = vpop.permute.xlu1 %370  ;;  %v294_v18 = vpop.permute.xlu0 %293 }
  0x8a   : > { %v3473_v19 = vrot.slane %v294_v18, 4  ;;  %v3494_v29 = vrot.slane %v3471_v17, 4 }
  0x8c   : > { %v301_v20 = vmul.bf16 %v3473_v19, %v268_v53  ;;  %v641_v24 = vmul.bf16 %v639_v5, %v3473_v19  ;;  %v378_v33 = vmul.bf16 %v3494_v29, %v3431_v50  ;;  %v910_v34 = vmul.bf16 %v908_v11, %v3473_v19 }
  0x8d   : > { %v3476_v21 = vpop.permute.xlu1 %396  ;;  %v3478_v22 = vpop.permute.xlu0 %346  ;;  %v687_v39 = vmul.bf16 %v685_v1, %v3494_v29  ;;  %v1179_v40 = vmul.bf16 %v1177_v37, %v3473_v19  ;;  %v956_v51 = vmul.bf16 %v954_v13, %v3494_v29  ;;  %v1225_v58 = vmul.bf16 %v1223_v56, %v3494_v29  ;;  %v1018_v1 = vld [vmem:[#allocation2 + $0xc] sm:$0xf] }
  0x8e   : > { %306 = vrot.lane.b32.xlu1 %v301_v20, %s3335_s5  ;;  %v3482_v23 = vrot.slane %v3478_v22, 4  ;;  %v3509_v38 = vrot.slane %v3476_v21, 4  ;;  %v3539_v61 = vsel %vm296_vm2, %v3473_v19, %v294_v18  ;;  %v3571_v11 = vsel %vm373_vm5, %v3494_v29, %v3471_v17 }
  0x8f   : > { %v640_v3 = vmul.bf16 %v3446_v63, %v3539_v61  ;;  %v377_v13 = vmul.bf16 %v3571_v11, %v3427_v48  ;;  %v909_v14 = vmul.bf16 %v3460_v10, %v3539_v61  ;;  %v1178_v17 = vmul.bf16 %v3466_v15, %v3539_v61 }
  0x90   : > { %v354_v28 = vmul.bf16 %v3482_v23, %v3429_v49  ;;  %v671_v36 = vmul.bf16 %v669_v0, %v3482_v23  ;;  %v403_v43 = vmul.bf16 %v3509_v38, %v395_v41  ;;  %v940_v44 = vmul.bf16 %v938_v12, %v3482_v23  ;;  %v417_v49 = vld [vmem:[#allocation2 + $0xc] sm:$0xf] }
  0x91   : > { %v3485_v25 = vpop.permute.xlu1 %455  ;;  %v3515_v42 = vpop.permute.xlu0 %418  ;;  %v705_v50 = vmul.bf16 %v703_v45, %v3509_v38  ;;  %v1209_v55 = vmul.bf16 %v1207_v52, %v3482_v23  ;;  %v974_v60 = vmul.bf16 %v972_v59, %v3509_v38  ;;  %v300_v0 = vmul.bf16 %v3427_v48, %v3539_v61 }
  0x92   : > { %v3488_v27 = vrot.slane %v3485_v25, 4  ;;  %646 = vrot.lane.b32.xlu1 %v641_v24, %s3335_s5  ;;  %v3522_v47 = vrot.slane %v3515_v42, 4  ;;  %v3560_v6 = vsel %vm349_vm4, %v3482_v23, %v3478_v22  ;;  %v3594_v18 = vsel %vm388_vm6, %v3509_v38, %v3476_v21 }
  0x93   : > { %v353_v8 = vmul.bf16 %v3560_v6, %v3427_v48  ;;  %v670_v16 = vmul.bf16 %v3446_v63, %v3560_v6  ;;  %v686_v48 = vmul.bf16 %v3446_v63, %v3571_v11  ;;  %v939_v20 = vmul.bf16 %v3460_v10, %v3560_v6 }
  0x94   : > { %v462_v30 = vmul.bf16 %v3488_v27, %v454_v26  ;;  %v751_v32 = vmul.bf16 %v749_v31, %v3488_v27  ;;  %v425_v53 = vmul.bf16 %v3522_v47, %v417_v49  ;;  %v721_v57 = vmul.bf16 %v719_v54, %v3522_v47 }
  0x95   : > { %v1020_v2 = vmul.bf16 %v1018_v1, %v3488_v27  ;;  %v3555_v5 = vsel %vm312_vm3, %v3488_v27, %v3485_v25  ;;  %v402_v22 = vmul.bf16 %v3413_v35, %v3594_v18  ;;  %v955_v63 = vmul.bf16 %v3460_v10, %v3571_v11 }
  0x96   : > { %467 = vrot.lane.b32.xlu0 %v462_v30, %s3332_s28  ;;  %359 = vrot.lane.b32.xlu1 %v354_v28, %s3336_s6  ;;  %4446 = vst [vmem:[#allocation5_spill] sm:$0xff] %v3555_v5  ;;  %v461_v7 = vmul.bf16 %v3413_v35, %v3555_v5  ;;  %v750_v12 = vmul.bf16 %v3424_v46, %v3555_v5  ;;  %v1241_v30 = vld [vmem:[#allocation2 + $0xc] sm:$0xf]  ;;  %v4438_v59 = vmov 16  }
  0x97   : > { %v704_v21 = vmul.bf16 %v3424_v46, %v3594_v18  ;;  %v3611_v24 = vsel %vm364_vm7, %v3522_v47, %v3515_v42  ;;  %v1208_v25 = vmul.bf16 %v3466_v15, %v3560_v6  ;;  %v1224_v10 = vmul.bf16 %v3466_v15, %v3571_v11  ;;  %v1273_v15 = vld [vmem:[#allocation2 + $0xc] sm:$0xf]  ;;  %v3639_v41 = vpop.permute.xlu0 %320  ;;  %3257 = vset.pattern.permute.xlu0 %v4438_v59 }
  0x98   : > { %4447 = vst [vmem:[#allocation6_spill] sm:$0xff] %v3611_v24  ;;  %v424_v26 = vmul.bf16 %v3413_v35, %v3611_v24  ;;  %v720_v28 = vmul.bf16 %v3424_v46, %v3611_v24  ;;  %v973_v31 = vmul.bf16 %v3444_v62, %v3594_v18  ;;  %v989_v42 = vmul.bf16 %v3444_v62, %v3611_v24 }
  0x99   : > { %v1258_v45 = vmul.bf16 %v3458_v9, %v3611_v24  ;;  %v1019_v54 = vmul.bf16 %v3444_v62, %v3555_v5  ;;  %3258 = vset.pattern.permute.xlu1 %v4438_v59 }
  0x9a   : > { %756 = vrot.lane.b32.xlu0 %v751_v32, %s3332_s28  ;;  %383 = vrot.lane.b32.xlu1 %v378_v33, %s3333_s29  ;;  %v1243_v32 = vmul.bf16 %v1241_v30, %v3509_v38  ;;  %v988_v33 = vld [vmem:[#allocation2 + $0xc] sm:$0xf] }
  0x9b   : > { %v990_v37 = vmul.bf16 %v988_v33, %v3522_v47 }
  0x9e   : > { %915 = vrot.lane.b32.xlu0 %v910_v34, %s3335_s5  ;;  %676 = vrot.lane.b32.xlu1 %v671_v36, %s3336_s6  ;;  %v1004_v34 = vld [vmem:[#allocation2 + $0xc] sm:$0xf]  ;;  %v1242_v36 = vmul.bf16 %v3458_v9, %v3594_v18 }
  0xa2   : > { %692 = vrot.lane.b32.xlu1 %v687_v39, %s3333_s29  ;;  %1184 = vrot.lane.b32.xlu0 %v1179_v40, %s3335_s5  ;;  %v3635_v39 = vpop.permute.xlu1 %3248  ;;  %v3252_v40 = vpack.i.bf16 %v1273_v15, %v1004_v34  ;;  %v324_v34 = vrot.slane %v3639_v41, 4 }
  0xa6   : > { %408 = vrot.lane.b32.xlu1 %v403_v43, %s3331_s27  ;;  %945 = vrot.lane.b32.xlu0 %v940_v44, %s3336_s6  ;;  %v1257_v43 = vld [vmem:[#allocation2 + $0xc] sm:$0xf]  ;;  %v323_v44 = vpop.permute.xlu1 %322 }
  0xa7   : > { %v1259_v49 = vmul.bf16 %v1257_v43, %v3522_v47  ;;  %v325_v15 = vrot.slane %v323_v44, 4 }
  0xaa   : > { %710 = vrot.lane.b32.xlu1 %v705_v50, %s3331_s27  ;;  %961 = vrot.lane.b32.xlu0 %v956_v51, %s3333_s29  ;;  %v1287_v50 = vld [vmem:[#allocation2 + $0xc] sm:$0xf]  ;;  %v3648_v51 = vpop.permute.xlu0 %442  ;;  %v661_v52 = vpop.permute.xlu1 %660 }
  0xae   : > { %430 = vrot.lane.b32.xlu1 %v425_v53, %s3334_s30  ;;  %1214 = vrot.lane.b32.xlu0 %v1209_v55, %s3336_s6  ;;  %v1289_v53 = vmul.bf16 %v1287_v50, %v3488_v27  ;;  %v3660_v55 = vld [vmem:[%s4434_s1 + $0x8] sm:$0xff]  ;;  %v659_v56 = vpop.permute.xlu0 %658 }
  0xb2   : > { %726 = vrot.lane.b32.xlu1 %v721_v57, %s3334_s30  ;;  %1230 = vrot.lane.b32.xlu0 %v1225_v58, %s3333_s29  ;;  %v1288_v57 = vmul.bf16 %v3458_v9, %v3555_v5  ;;  %v3664_v58 = vpop.permute.xlu1 %927 }
  0xb6   : > { %1007 = vrot.lane.b32.xlu1 %v3444_v62, %s3337_s7  ;;  %979 = vrot.lane.b32.xlu0 %v974_v60, %s3331_s27  ;;  %v3673_v60 = vld [vmem:[%s4434_s1] sm:$0xff] }
  0xb8   : > { %v3677_v1 = vpop.permute.xlu1 %1196 }
  0xba   : > { %1276 = vrot.lane.b32.xlu1 %v3458_v9, %s3337_s7  ;;  %304 = vrot.lane.b32.xlu0 %v300_v0, %s3335_s5  ;;  %v3675_v0 = vpop.permute.xlu0 %738 }
  0xbe   : > { %1025 = vrot.lane.b32.xlu1 %v1020_v2, %s3332_s28  ;;  %644 = vrot.lane.b32.xlu0 %v640_v3, %s3335_s5  ;;  %v3680_v2 = vpop.permute.xlu0 %929 }
  0xc2   : > { %465 = vrot.lane.b32.xlu1 %v461_v7, %s3332_s28  ;;  %357 = vrot.lane.b32.xlu0 %v353_v8, %s3336_s6  ;;  %v3682_v7 = vpop.permute.xlu0 %1198 }
  0xc6   : > { %754 = vrot.lane.b32.xlu1 %v750_v12, %s3332_s28  ;;  %381 = vrot.lane.b32.xlu0 %v377_v13, %s3333_s29 }
  0xca   : > { %913 = vrot.lane.b32.xlu1 %v909_v14, %s3335_s5  ;;  %674 = vrot.lane.b32.xlu0 %v670_v16, %s3336_s6 }
  0xce   : > { %1182 = vrot.lane.b32.xlu1 %v1178_v17, %s3335_s5  ;;  %690 = vrot.lane.b32.xlu0 %v686_v48, %s3333_s29 }
  0xd2   : > { %943 = vrot.lane.b32.xlu1 %v939_v20, %s3336_s6  ;;  %406 = vrot.lane.b32.xlu0 %v402_v22, %s3331_s27 }
  0xd6   : > { %959 = vrot.lane.b32.xlu1 %v955_v63, %s3333_s29  ;;  %708 = vrot.lane.b32.xlu0 %v704_v21, %s3331_s27 }
  0xda   : > { %1212 = vrot.lane.b32.xlu1 %v1208_v25, %s3336_s6  ;;  %428 = vrot.lane.b32.xlu0 %v424_v26, %s3334_s30 }
  0xde   : > { %1228 = vrot.lane.b32.xlu1 %v1224_v10, %s3333_s29  ;;  %724 = vrot.lane.b32.xlu0 %v720_v28, %s3334_s30 }
  0xe2   : > { %977 = vrot.lane.b32.xlu1 %v973_v31, %s3331_s27  ;;  %1248 = vrot.lane.b32.xlu0 %v1243_v32, %s3331_s27 }
  0xe6   : > { %1246 = vrot.lane.b32.xlu1 %v1242_v36, %s3331_s27  ;;  %995 = vrot.lane.b32.xlu0 %v990_v37, %s3334_s30  ;;  %v662_v36 = vrot.slane %v659_v56, 4  ;;  %v663_v37 = vrot.slane %v661_v52, 4 }
  0xe8   : > { %v664_v52 = vsel %vm310_vm8, %v662_v36, %v663_v37 }
  0xea   : > { %993 = vrot.lane.b32.xlu1 %v989_v42, %s3334_s30  ;;  %3253 = vrot.lane.b32.xlu0 %v3252_v40, %s3337_s7 }
  0xee   : > { %1262 = vrot.lane.b32.xlu1 %v1258_v45, %s3334_s30  ;;  %1264 = vrot.lane.b32.xlu0 %v1259_v49, %s3334_s30  ;;  %v326_v49 = vsel %vm310_vm8, %v324_v34, %v325_v15 }
  0xef   : > { %v328_v44 = vsel %vm327_vm9, %v3639_v41, %v326_v49 }
  0xf2   : > { %1294 = vrot.lane.b32.xlu1 %v1289_v53, %s3332_s28  ;;  %1023 = vrot.lane.b32.xlu0 %v1019_v54, %s3332_s28 }
  0xf6   : > { %1292 = vrot.lane.b32.xlu0 %v1288_v57, %s3332_s28  ;;  %491 = vperm.xlu1 %3258, %v3660_v55  }
  0xfa   : > { %486 = vperm.xlu0 %3257, %v3673_v60  }
 0x100   : > { %v307_v3 = vpop.permute.xlu1 %306 }
 0x101   : > { %v309_v43 = vrot.slane %v307_v3, 4 }
 0x104   : > { %v647_v8 = vpop.permute.xlu1 %646 }
 0x105   : > { %v649_v59 = vrot.slane %v647_v8, 4 }
 0x108   : > { %v3684_v12 = vpop.permute.xlu0 %467  ;;  %v360_v13 = vpop.permute.xlu1 %359 }
 0x109   : > { %v362_v49 = vrot.slane %v360_v13, 4 }
 0x10c   : > { %v3686_v14 = vpop.permute.xlu0 %756  ;;  %v384_v16 = vpop.permute.xlu1 %383 }
 0x110   : > { %v3688_v17 = vpop.permute.xlu0 %915  ;;  %v3690_v48 = vpop.permute.xlu1 %676 }
 0x114   : > { %v3692_v20 = vpop.permute.xlu1 %692  ;;  %v3694_v22 = vpop.permute.xlu0 %1184 }
 0x118   : > { %v3696_v63 = vpop.permute.xlu1 %408  ;;  %v3698_v21 = vpop.permute.xlu0 %945 }
 0x11c   : > { %v3700_v25 = vpop.permute.xlu1 %710  ;;  %v3702_v26 = vpop.permute.xlu0 %961 }
 0x120   : > { %v3704_v10 = vpop.permute.xlu1 %430  ;;  %v3706_v28 = vpop.permute.xlu0 %1214 }
 0x124   : > { %v3708_v30 = vpop.permute.xlu1 %726  ;;  %v3710_v31 = vpop.permute.xlu0 %1230 }
 0x128   : > { %v3712_v32 = vpop.permute.xlu1 %1007  ;;  %v3714_v33 = vpop.permute.xlu0 %979 }
 0x12c   : > { %v3717_v40 = vpop.permute.xlu1 %1276  ;;  %v305_v42 = vpop.permute.xlu0 %304 }
 0x12d   : > { %v308_v45 = vrot.slane %v305_v42, 4 }
 0x12f   : > { %v311_v50 = vsel %vm310_vm8, %v308_v45, %v309_v43 }
 0x130   : > { %v3721_v53 = vpop.permute.xlu1 %1025  ;;  %v645_v54 = vpop.permute.xlu0 %644  ;;  %v313_v57 = vsel %vm312_vm3, %v305_v42, %v311_v50  ;;  %v665_v42 = vsel %vm327_vm9, %v659_v56, %v664_v52 }
 0x131   : > { %v648_v4 = vrot.slane %v645_v54, 4  ;;  %v3039_v5 = vcombine.high %v313_v57, %v328_v44  ;;  %v3038_v3 = vcombine.low %v313_v57, %v328_v44 }
 0x133   : > { %555 = vmatprep.subr.bf16.mxu0 %v3039_v5  ;;  %v650_v34 = vsel %vm310_vm8, %v648_v4, %v649_v59  ;;  %v386_v5 = vrot.slane %v384_v16, 4  ;;  %v679_v16 = vrot.slane %v3690_v48, 4 }
 0x134   : > { %v3728_v15 = vpop.permute.xlu1 %465  ;;  %556 = vmatpush1.bf16.msra.mxu0 %v3038_v3  ;;  %v358_v43 = vpop.permute.xlu0 %357  ;;  %v651_v45 = vsel %vm312_vm3, %v645_v54, %v650_v34  ;;  %v3251_v3 = vunpack.i.h.bf16 %v3635_v39  ;;  %v3250_v34 = vunpack.i.l.bf16 %v3635_v39  ;;  %v742_v39 = vrot.slane %v3675_v0, 4 }
 0x135   : > { %v361_v50 = vrot.slane %v358_v43, 4  ;;  %v3052_v24 = vcombine.high %v651_v45, %v665_v42  ;;  %v3051_v41 = vcombine.low %v651_v45, %v665_v42 }
 0x137   : > { %824 = vmatprep.subr.bf16.mxu1 %v3052_v24  ;;  %v363_v4 = vsel %vm310_vm8, %v361_v50, %v362_v49  ;;  %v743_v49 = vrot.slane %v3251_v3, 4 }
 0x138   : > { %v3732_v8 = vpop.permute.xlu1 %754  ;;  %825 = vmatpush1.bf16.msra.mxu1 %v3051_v41  ;;  %v382_v36 = vpop.permute.xlu0 %381  ;;  %v365_v57 = vsel %vm364_vm7, %v358_v43, %v363_v4  ;;  %v695_v43 = vrot.slane %v3692_v20, 4  ;;  %v446_v4 = vrot.slane %v3648_v51, 4  ;;  %v411_v20 = vrot.slane %v3696_v63, 4 }
 0x139   : > { %v385_v59 = vrot.slane %v382_v36, 4 }
 0x13b   : > { %v387_v37 = vsel %vm310_vm8, %v385_v59, %v386_v5 }
 0x13c   : > { %v389_v54 = vsel %vm388_vm6, %v382_v36, %v387_v37  ;;  %v3738_v56 = vpop.permute.xlu1 %913  ;;  %v675_v44 = vpop.permute.xlu0 %674  ;;  %v447_v36 = vrot.slane %v3250_v34, 4 }
 0x13d   : > { %v678_v52 = vrot.slane %v675_v44, 4  ;;  %v3041_v13 = vcombine.high %v365_v57, %v389_v54  ;;  %v3040_v24 = vcombine.low %v365_v57, %v389_v54 }
 0x13f   : > { %557 = vmatprep.subr.bf16.mxu0 %v3041_v13  ;;  %v680_v50 = vsel %vm310_vm8, %v678_v52, %v679_v16  ;;  %v931_v13 = vrot.slane %v3664_v58, 4  ;;  %v744_v16 = vsel %vm310_vm8, %v742_v39, %v743_v49  ;;  %v1201_v49 = vrot.slane %v3682_v7, 4 }
 0x140   : > { %v3743_v45 = vpop.permute.xlu1 %1182  ;;  %558 = vmatpush1.bf16.msra.mxu0 %v3040_v24  ;;  %v691_v42 = vpop.permute.xlu0 %690  ;;  %v681_v48 = vsel %vm364_vm7, %v675_v44, %v680_v50  ;;  %v932_v24 = vrot.slane %v3680_v2, 4  ;;  %v448_v44 = vsel %vm310_vm8, %v446_v4, %v447_v36  ;;  %v1200_v36 = vrot.slane %v3677_v1, 4 }
 0x141   : > { %v694_v41 = vrot.slane %v691_v42, 4  ;;  %v470_v4 = vrot.slane %v3684_v12, 4  ;;  %v450_v39 = vsel %vm449_vm10, %v3648_v51, %v448_v44  ;;  %v433_v51 = vrot.slane %v3704_v10, 4 }
 0x142   : > { %v918_v44 = vrot.slane %v3688_v17, 4  ;;  %v729_v10 = vrot.slane %v3708_v30, 4 }
 0x143   : > { %v696_v5 = vsel %vm310_vm8, %v694_v41, %v695_v43  ;;  %v713_v41 = vrot.slane %v3700_v25, 4 }
 0x144   : > { %v697_v59 = vsel %vm388_vm6, %v691_v42, %v696_v5  ;;  %v3752_v37 = vpop.permute.xlu1 %943  ;;  %v407_v57 = vpop.permute.xlu0 %406  ;;  %v469_v42 = vrot.slane %v3728_v15, 4 }
 0x145   : > { %v410_v54 = vrot.slane %v407_v57, 4  ;;  %v3054_v52 = vcombine.high %v681_v48, %v697_v59  ;;  %v3053_v3 = vcombine.low %v681_v48, %v697_v59  ;;  %v933_v59 = vsel %vm310_vm8, %v931_v13, %v932_v24 }
 0x147   : > { %v412_v34 = vsel %vm310_vm8, %v410_v54, %v411_v20  ;;  %826 = vmatprep.subr.bf16.mxu1 %v3054_v52  ;;  %v758_v20 = vrot.slane %v3732_v8, 4  ;;  %v917_v54 = vrot.slane %v3738_v56, 4 }
 0x148   : > { %v413_v43 = vsel %vm373_vm5, %v407_v57, %v412_v34  ;;  %v3762_v63 = vpop.permute.xlu1 %959  ;;  %827 = vmatpush1.bf16.msra.mxu1 %v3053_v3  ;;  %v709_v50 = vpop.permute.xlu0 %708  ;;  %v3775_v57 = vsel %vm449_vm10, %v3675_v0, %v744_v16  ;;  %v3787_v0 = vsel %vm327_vm9, %v3664_v58, %v933_v59  ;;  %v3791_v3 = vsel %vm310_vm8, %v1200_v36, %v1201_v49 }
 0x149   : > { %v712_v2 = vrot.slane %v709_v50, 4  ;;  %v3043_v5 = vcombine.high %v3413_v35, %v413_v43  ;;  %v3042_v48 = vcombine.low %v3413_v35, %v413_v43  ;;  %v471_v35 = vsel %vm310_vm8, %v469_v42, %v470_v4 }
 0x14a   : > { %v759_v34 = vrot.slane %v3686_v14, 4  ;;  %v1187_v42 = vrot.slane %v3694_v22, 4  ;;  %v472_v58 = vsel %vm296_vm2, %v3728_v15, %v471_v35  ;;  %v1186_v14 = vrot.slane %v3743_v45, 4 }
 0x14b   : > { %v714_v25 = vsel %vm310_vm8, %v712_v2, %v713_v41  ;;  %559 = vmatprep.subr.bf16.mxu0 %v3043_v5  ;;  %v919_v41 = vsel %vm310_vm8, %v917_v54, %v918_v44  ;;  %v963_v22 = vrot.slane %v3762_v63, 4  ;;  %v948_v15 = vrot.slane %v3698_v21, 4 }
 0x14c   : > { %v715_v7 = vsel %vm373_vm5, %v709_v50, %v714_v25  ;;  %v3782_v52 = vpop.permute.xlu1 %1212  ;;  %560 = vmatpush1.bf16.msra.mxu0 %v3042_v48  ;;  %v429_v12 = vpop.permute.xlu0 %428  ;;  %v760_v50 = vsel %vm310_vm8, %v758_v20, %v759_v34  ;;  %v964_v59 = vrot.slane %v3702_v26, 4  ;;  %v1217_v36 = vrot.slane %v3706_v28, 4 }
 0x14d   : > { %v432_v13 = vrot.slane %v429_v12, 4  ;;  %v3056_v24 = vcombine.high %v3424_v46, %v715_v7  ;;  %v3055_v16 = vcombine.low %v3424_v46, %v715_v7  ;;  %v3047_v49 = vcombine.high %v472_v58, %v472_v58 }
 0x14e   : > { %v761_v4 = vsel %vm296_vm2, %v3732_v8, %v760_v50  ;;  %v947_v25 = vrot.slane %v3752_v37, 4  ;;  %v3046_v20 = vcombine.low %v472_v58, %v472_v58  ;;  %v920_v54 = vsel %vm312_vm3, %v3738_v56, %v919_v41 }
 0x14f   : > { %v434_v43 = vsel %vm310_vm8, %v432_v13, %v433_v51  ;;  %828 = vmatprep.subr.bf16.mxu1 %v3056_v24  ;;  %v1216_v8 = vrot.slane %v3782_v52, 4  ;;  %v1233_v24 = vrot.slane %v3710_v31, 4  ;;  %v982_v56 = vrot.slane %v3714_v33, 4 }
 0x150   : > { %v435_v17 = vsel %vm349_vm4, %v429_v12, %v434_v43  ;;  %v1229_v2 = vpop.permute.xlu1 %1228  ;;  %829 = vmatpush1.bf16.msra.mxu1 %v3055_v16  ;;  %v725_v46 = vpop.permute.xlu0 %724  ;;  %v965_v12 = vsel %vm310_vm8, %v963_v22, %v964_v59  ;;  %v3059_v44 = vcombine.low %v761_v4, %v761_v4  ;;  %v3060_v16 = vcombine.high %v761_v4, %v761_v4  ;;  %v3830_v43 = vld [vmem:[%s4433_s0 + $0x8] ss:$8 sps:$4 sm:$0xff]  }
 0x151   : > { %v728_v30 = vrot.slane %v725_v46, 4  ;;  %v3045_v5 = vcombine.high %v435_v17, %v450_v39  ;;  %v3044_v48 = vcombine.low %v435_v17, %v450_v39  ;;  %v1188_v39 = vsel %vm310_vm8, %v1186_v14, %v1187_v42 }
 0x152   : > { %v1232_v21 = vrot.slane %v1229_v2, 4  ;;  %v949_v42 = vsel %vm310_vm8, %v947_v25, %v948_v15  ;;  %v3065_v58 = vcombine.high %v920_v54, %v3787_v0  ;;  %v1189_v31 = vsel %vm312_vm3, %v3743_v45, %v1188_v39 }
 0x153   : > { %v730_v35 = vsel %vm310_vm8, %v728_v30, %v729_v10  ;;  %561 = vmatprep.subr.bf16.mxu0 %v3045_v5  ;;  %v550_v10 = vsel %vm310_vm8, %v3046_v20, 0  ;;  %v966_v33 = vsel %vm388_vm6, %v3762_v63, %v965_v12  ;;  %v1218_v14 = vsel %vm310_vm8, %v1216_v8, %v1217_v36 }
 0x154   : > { %v731_v26 = vsel %vm349_vm4, %v725_v46, %v730_v35  ;;  %v978_v7 = vpop.permute.xlu1 %977  ;;  %562 = vmatpush1.bf16.msra.mxu0 %v3044_v48  ;;  %v1249_v28 = vpop.permute.xlu0 %1248  ;;  %v3064_v45 = vcombine.low %v920_v54, %v3787_v0  ;;  %v1203_v63 = vsel %vm327_vm9, %v3677_v1, %v3791_v3  ;;  %v950_v22 = vsel %vm364_vm7, %v3752_v37, %v949_v42 }
 0x155   : > { %v981_v51 = vrot.slane %v978_v7, 4  ;;  %3048 = vmatprep.subr.msk.bf16.mxu0 %vm310_vm8, %v3047_v49  ;;  %v3058_v13 = vcombine.high %v731_v26, %v3775_v57  ;;  %v3057_v34 = vcombine.low %v731_v26, %v3775_v57  ;;  %v1234_v57 = vsel %vm310_vm8, %v1232_v21, %v1233_v24 }
 0x156   : > { %v819_v30 = vsel %vm310_vm8, %v3059_v44, 0  ;;  %v1235_v5 = vsel %vm388_vm6, %v1229_v2, %v1234_v57  ;;  %v1251_v48 = vrot.slane %v1249_v28, 4  ;;  %v3067_v15 = vcombine.high %v950_v22, %v966_v33 }
 0x157   : > { %830 = vmatprep.subr.bf16.mxu1 %v3058_v13  ;;  %v983_v17 = vsel %vm310_vm8, %v981_v51, %v982_v56  ;;  %v3078_v59 = vcombine.high %v1189_v31, %v1203_v63  ;;  %v1219_v0 = vsel %vm364_vm7, %v3782_v52, %v1218_v14  ;;  %v1011_v35 = vrot.slane %v3712_v32, 4 }
 0x158   : > { %v1247_v50 = vpop.permute.xlu1 %1246  ;;  %564 = vmatpush1.bf16.msra.mxu0 %v550_v10  ;;  %831 = vmatpush1.bf16.msra.mxu1 %v3057_v34  ;;  %v996_v41 = vpop.permute.xlu0 %995  ;;  %v984_v36 = vsel %vm373_vm5, %v978_v7, %v983_v17  ;;  %v3077_v20 = vcombine.low %v1189_v31, %v1203_v63  ;;  %v3066_v54 = vcombine.low %v950_v22, %v966_v33  ;;  %v4448_v52 = vmov 0  }
 0x159   : > { %v1250_v46 = vrot.slane %v1247_v50, 4  ;;  %3061 = vmatprep.subr.msk.bf16.mxu1 %vm310_vm8, %v3060_v16  ;;  %1093 = vmatprep.subr.bf16.mxu0 %v3065_v58  ;;  %v998_v49 = vrot.slane %v996_v41, 4  ;;  %v3080_v39 = vcombine.high %v1219_v0, %v1235_v5  ;;  %v3069_v28 = vcombine.high %v3444_v62, %v984_v36 }
 0x15a   : > { %v1280_v13 = vrot.slane %v3717_v40, 4  ;;  %v3079_v44 = vcombine.low %v1219_v0, %v1235_v5  ;;  %v3068_v16 = vcombine.low %v3444_v62, %v984_v36  ;;  %v1028_v62 = vrot.slane %v3721_v53, 4 }
 0x15b   : > { %3049 = vmatmul.mubr.msk.bf16.vlgmr.msra.gmra.mrb[0].mxu0 %vm544_vm11, %v3830_v43  ;;  %v1252_v3 = vsel %vm310_vm8, %v1250_v46, %v1251_v48 }
 0x15c   : > { %v994_v1 = vpop.permute.xlu1 %993  ;;  %833 = vmatpush1.bf16.msra.mxu1 %v819_v30  ;;  %1094 = vmatpush1.bf16.msra.mxu0 %v3064_v45  ;;  %v3254_v37 = vpop.permute.xlu0 %3253  ;;  %v1253_v12 = vsel %vm373_vm5, %v1247_v50, %v1252_v3  ;;  %v3340_v3 = vmov 17  }
 0x15d   : > { %v997_v4 = vrot.slane %v994_v1, 4  ;;  %v3256_v2 = vunpack.i.h.bf16 %v3254_v37  ;;  %v3255_v25 = vunpack.i.l.bf16 %v3254_v37  ;;  %1095 = vmatprep.subr.bf16.mxu0 %v3067_v15  ;;  %1362 = vmatprep.subr.bf16.mxu1 %v3078_v59  ;;  %v3082_v33 = vcombine.high %v3458_v9, %v1253_v12 }
 0x15e   : > { %1125 = vmatprep.mubr.bf16.mxu0 %v4448_v52  ;;  %3260 = vset.pattern.permute.xlu1 %v3340_v3 }
 0x15f   : > { %v999_v21 = vsel %vm310_vm8, %v997_v4, %v998_v49  ;;  %v1281_v26 = vrot.slane %v3256_v2, 4  ;;  %v1012_v7 = vrot.slane %v3255_v25, 4  ;;  %3062 = vmatmul.mubr.msk.bf16.vlgmr.msra.gmra.mrb[0].mxu1 %vm544_vm11, %v3830_v43  ;;  %3259 = vset.pattern.permute.xlu0 %v3340_v3 }
 0x160   : > { %v1263_v8 = vpop.permute.xlu1 %1262  ;;  %1096 = vmatpush1.bf16.msra.mxu0 %v3066_v54  ;;  %1363 = vmatpush1.bf16.msra.mxu1 %v3077_v20  ;;  %v1265_v51 = vpop.permute.xlu0 %1264  ;;  %v1000_v42 = vsel %vm349_vm4, %v994_v1, %v999_v21 }
 0x161   : > { %v1266_v24 = vrot.slane %v1263_v8, 4  ;;  %v1267_v56 = vrot.slane %v1265_v51, 4  ;;  %1097 = vmatprep.subr.bf16.mxu0 %v3069_v28  ;;  %1364 = vmatprep.subr.bf16.mxu1 %v3080_v39  ;;  %v1013_v34 = vsel %vm310_vm8, %v1011_v35, %v1012_v7  ;;  %v1282_v57 = vsel %vm310_vm8, %v1280_v13, %v1281_v26 }
 0x162   : > { %v1014_v10 = vsel %vm449_vm10, %v3712_v32, %v1013_v34  ;;  %1394 = vmatprep.mubr.bf16.mxu1 %v4448_v52  ;;  %v3081_v32 = vcombine.low %v3458_v9, %v1253_v12  ;;  %v1283_v45 = vsel %vm449_vm10, %v3717_v40, %v1282_v57 }
 0x163   : > { %v1268_v58 = vsel %vm310_vm8, %v1266_v24, %v1267_v56  ;;  %v3071_v31 = vcombine.high %v1000_v42, %v1014_v10  ;;  %v3070_v46 = vcombine.low %v1000_v42, %v1014_v10 }
 0x164   : > { %1098 = vmatpush1.bf16.msra.mxu0 %v3068_v16  ;;  %1365 = vmatpush1.bf16.msra.mxu1 %v3079_v44  ;;  %v1024_v50 = vpop.permute.xlu0 %1023  ;;  %v1269_v41 = vsel %vm349_vm4, %v1263_v8, %v1268_v58  ;;  %v1295_v17 = vpop.permute.xlu1 %1294 }
 0x165   : > { %v1027_v14 = vrot.slane %v1024_v50, 4  ;;  %1099 = vmatprep.subr.bf16.mxu0 %v3071_v31  ;;  %1366 = vmatprep.subr.bf16.mxu1 %v3082_v33  ;;  %v3084_v22 = vcombine.high %v1269_v41, %v1283_v45  ;;  %v1297_v48 = vrot.slane %v1295_v17, 4  ;;  %v3083_v0 = vcombine.low %v1269_v41, %v1283_v45 }
 0x167   : > { %v1029_v63 = vsel %vm310_vm8, %v1027_v14, %v1028_v62 }
 0x168   : > { %v1030_v30 = vsel %vm296_vm2, %v1024_v50, %v1029_v63  ;;  %1367 = vmatpush1.bf16.msra.mxu1 %v3081_v32  ;;  %v1293_v5 = vpop.permute.xlu0 %1292  ;;  %1100 = vmatpush1.bf16.msra.mxu0 %v3070_v46 }
 0x169   : > { %v3072_v53 = vcombine.low %v1030_v30, %v1030_v30  ;;  %v3073_v15 = vcombine.high %v1030_v30, %v1030_v30  ;;  %v1296_v59 = vrot.slane %v1293_v5, 4  ;;  %1368 = vmatprep.subr.bf16.mxu1 %v3084_v22 }
 0x16b   : > { %v1298_v9 = vsel %vm310_vm8, %v1296_v59, %v1297_v48  ;;  %3074 = vmatprep.subr.msk.bf16.mxu0 %vm310_vm8, %v3073_v15  ;;  %v1088_v40 = vsel %vm310_vm8, %v3072_v53, 0 }
 0x16c   : > { %v1299_v36 = vsel %vm296_vm2, %v1293_v5, %v1298_v9  ;;  %1102 = vmatpush1.bf16.msra.mxu0 %v1088_v40  ;;  %1369 = vmatpush1.bf16.msra.mxu1 %v3083_v0 }
 0x16d   : > { %v3085_v49 = vcombine.low %v1299_v36, %v1299_v36  ;;  %v3086_v1 = vcombine.high %v1299_v36, %v1299_v36 }
 0x16f   : > { %3075 = vmatmul.mubr.msk.bf16.vlgmr.msra.gmra.mrb[4].mxu0 %vm544_vm11, %v3830_v43  ;;  %3087 = vmatprep.subr.msk.bf16.mxu1 %vm310_vm8, %v3086_v1  ;;  %v1357_v37 = vsel %vm310_vm8, %v3085_v49, 0 }
 0x170   : > { %1371 = vmatpush1.bf16.msra.mxu1 %v1357_v37  ;;  %3183 = vmatprep.mubr.msk.f32.mxu0 %vm327_vm9, %v3673_v60 }
 0x173   : > { %3088 = vmatmul.mubr.msk.bf16.vlgmr.msra.gmra.mrb[4].mxu1 %vm544_vm11, %v3830_v43 }
 0x174   : > { %1811 = vmatprep.mubr.bf16.mxu1 %v4448_v52 }
 0x175   : > { %v492_v39 = vpop.permute.xlu1 %491 }
 0x179   : > { %v487_v4 = vpop.permute.xlu0 %486 }
 0x22e   : > { %v589_v2 = vpop.f32.mrb[0].mxu0 }
 0x22f   : > { %v591_v25 = vpop.f32.mrb[1].mxu0  ;;  %v3891_v35 = vadd.f32 %v589_v2, %v487_v4 }
 0x230   : > { %v593_v20 = vpop.f32.mrb[2].mxu0  ;;  %v3893_v54 = vadd.f32 %v591_v25, %v487_v4 }
 0x231   : > { %v595_v21 = vpop.f32.mrb[3].mxu0  ;;  %v598_v26 = vmax.f32 %v3891_v35, 0.0  ;;  %v3899_v8 = vadd.f32 %v593_v20, %v492_v39 }
 0x232   : > { %v858_v7 = vpop.f32.mrb[0].mxu1  ;;  %v599_v43 = vmax.f32 %v3893_v54, 0.0  ;;  %v3901_v51 = vadd.f32 %v595_v21, %v492_v39 }
 0x233   : > { %v3897_v28 = vadd.f32 %v858_v7, %v487_v4  ;;  %v860_v12 = vpop.f32.mrb[1].mxu1  ;;  %v600_v31 = vmax.f32 %v3899_v8, 0.0 }
 0x234   : > { %v3903_v13 = vadd.f32 %v860_v12, %v487_v4  ;;  %v862_v24 = vpop.f32.mrb[2].mxu1  ;;  %v606_v56 = vadd.f32 %v599_v43, %v598_v26  ;;  %v601_v33 = vmax.f32 %v3901_v51, 0.0  ;;  %v1622_v12 = vld [vmem:[#allocation2 + $0xc] sm:$0xf] }
 0x235   : > { %v867_v34 = vmax.f32 %v3897_v28, 0.0  ;;  %v3910_v44 = vadd.f32 %v862_v24, %v492_v39  ;;  %v864_v16 = vpop.f32.mrb[3].mxu1  ;;  %v1624_v24 = vmul.bf16 %v1622_v12, %v3509_v38 }
 0x236   : > { %v868_v42 = vmax.f32 %v3903_v13, 0.0  ;;  %v3913_v10 = vadd.f32 %v864_v16, %v492_v39  ;;  %607 = vadd.xlane.f32.xlu1 %v606_v56  ;;  %v609_v62 = vadd.f32 %v601_v33, %v600_v31  ;;  %v1948_v56 = vld [vmem:[#allocation2 + $0xc] sm:$0xf] }
 0x237   : > { %v869_v58 = vmax.f32 %v3910_v44, 0.0  ;;  %v1950_v16 = vmul.bf16 %v1948_v56, %v3509_v38 }
 0x238   : > { %v870_v57 = vmax.f32 %v3913_v10, 0.0  ;;  %v875_v50 = vadd.f32 %v868_v42, %v867_v34 }
 0x23a   : > { %876 = vadd.xlane.f32.xlu0 %v875_v50  ;;  %v878_v41 = vadd.f32 %v870_v57, %v869_v58  ;;  %v1638_v50 = vld [vmem:[#allocation2 + $0xc] sm:$0xf] }
 0x23c   : > { %879 = vadd.xlane.f32.xlu1 %v878_v41  ;;  %v1640_v41 = vmul.bf16 %v1638_v50, %v3522_v47 }
 0x23e   : > { %610 = vadd.xlane.f32.xlu0 %v609_v62 }
 0x242   : > { %v1127_v14 = vpop.f32.mrb[4].mxu0 }
 0x243   : > { %v3931_v32 = vadd.f32 %v1127_v14, %v487_v4  ;;  %v1129_v17 = vpop.f32.mrb[5].mxu0 }
 0x244   : > { %v3933_v46 = vadd.f32 %v1129_v17, %v487_v4  ;;  %v1131_v45 = vpop.f32.mrb[6].mxu0 }
 0x245   : > { %v1136_v63 = vmax.f32 %v3931_v32, 0.0  ;;  %v3936_v22 = vadd.f32 %v1131_v45, %v492_v39  ;;  %v1133_v30 = vpop.f32.mrb[7].mxu0 }
 0x246   : > { %v1137_v5 = vmax.f32 %v3933_v46, 0.0  ;;  %v3939_v48 = vadd.f32 %v1133_v30, %v492_v39  ;;  %v1396_v53 = vpop.f32.mrb[4].mxu1 }
 0x247   : > { %v1138_v15 = vmax.f32 %v3936_v22, 0.0  ;;  %v3942_v59 = vadd.f32 %v1396_v53, %v487_v4  ;;  %v1398_v0 = vpop.f32.mrb[5].mxu1 }
 0x248   : > { %v1139_v9 = vmax.f32 %v3939_v48, 0.0  ;;  %v3945_v40 = vadd.f32 %v1398_v0, %v487_v4  ;;  %v1400_v36 = vpop.f32.mrb[6].mxu1  ;;  %v1144_v49 = vadd.f32 %v1137_v5, %v1136_v63 }
 0x249   : > { %v1405_v1 = vmax.f32 %v3942_v59, 0.0  ;;  %v3952_v37 = vadd.f32 %v1400_v36, %v492_v39  ;;  %v1402_v3 = vpop.f32.mrb[7].mxu1 }
 0x24a   : > { %v1406_v2 = vmax.f32 %v3945_v40, 0.0  ;;  %v3955_v25 = vadd.f32 %v1402_v3, %v492_v39  ;;  %1145 = vadd.xlane.f32.xlu0 %v1144_v49  ;;  %v1147_v4 = vadd.f32 %v1139_v9, %v1138_v15 }
 0x24b   : > { %v1407_v20 = vmax.f32 %v3952_v37, 0.0 }
 0x24c   : > { %v1408_v21 = vmax.f32 %v3955_v25, 0.0  ;;  %1148 = vadd.xlane.f32.xlu1 %v1147_v4  ;;  %v1413_v7 = vadd.f32 %v1406_v2, %v1405_v1 }
 0x24e   : > { %1414 = vadd.xlane.f32.xlu0 %v1413_v7  ;;  %v1416_v39 = vadd.f32 %v1408_v21, %v1407_v20 }
 0x250   : > { %1417 = vadd.xlane.f32.xlu1 %v1416_v39 }
 0x261   : > { %1435 = vperm.xlu1 %3260, %v3660_v55  }
 0x264   : > { %1431 = vperm.xlu0 %3259, %v3673_v60  }
 0x265   : > { %1629 = vrot.lane.b32.xlu1 %v1624_v24, %s3331_s27 }
 0x266   : > { %3261 = vset.pattern.permute.xlu1 %v4448_v52 }
 0x269   : > { %1955 = vrot.lane.b32.xlu1 %v1950_v16, %s3331_s27 }
 0x26d   : > { %1645 = vrot.lane.b32.xlu1 %v1640_v41, %s3334_s30 }
 0x2c3   : > { %v608_v14 = vpop.xlane.xlu1 %607 }
 0x2c4   : > { %v612_v4 = vmul.f32 0.00390625, %v608_v14  ;;  %v3341_v14 = vmov 3  }
 0x2c5   : > { %3264 = vset.pattern.permute.xlu0 %v3341_v14 }
 0x2c7   : > { %v877_v62 = vpop.xlane.xlu0 %876 }
 0x2c8   : > { %v881_v60 = vmul.f32 0.00390625, %v877_v62 }
 0x2c9   : > { %v880_v45 = vpop.xlane.xlu1 %879 }
 0x2ca   : > { %v882_v7 = vmul.f32 0.00390625, %v880_v45  ;;  %v1422_v24 = vsel %vm388_vm6, %v612_v4, %v881_v60 }
 0x2cb   : > { %v611_v17 = vpop.xlane.xlu0 %610 }
 0x2cc   : > { %v613_v0 = vmul.f32 0.00390625, %v611_v17 }
 0x2ce   : > { %v1423_v56 = vsel %vm388_vm6, %v613_v0, %v882_v7 }
 0x2d7   : > { %v1146_v30 = vpop.xlane.xlu0 %1145 }
 0x2d8   : > { %v1150_v36 = vmul.f32 0.00390625, %v1146_v30 }
 0x2d9   : > { %v1149_v53 = vpop.xlane.xlu1 %1148 }
 0x2da   : > { %v1151_v49 = vmul.f32 0.00390625, %v1149_v53  ;;  %v1425_v50 = vsel %vm1424_vm12, %v1422_v24, %v1150_v36 }
 0x2db   : > { %v1415_v3 = vpop.xlane.xlu0 %1414 }
 0x2dc   : > { %v1419_v39 = vmul.f32 0.00390625, %v1415_v3  ;;  %v1426_v41 = vsel %vm1424_vm12, %v1423_v56, %v1151_v49 }
 0x2dd   : > { %v1418_v12 = vpop.xlane.xlu1 %1417 }
 0x2de   : > { %v1420_v16 = vmul.f32 0.00390625, %v1418_v12  ;;  %v1428_v62 = vsel %vm1427_vm13, %v1425_v50, %v1419_v39 }
 0x2e0   : > { %v1429_v17 = vsel %vm1427_vm13, %v1426_v41, %v1420_v16  ;;  %v1668_v16 = vld [vmem:[#allocation2 + $0xc] sm:$0xf] }
 0x2e1   : > { %v3207_v30 = vpack.c.bf16 %v1429_v17, %v1428_v62  ;;  %v1436_v45 = vpop.permute.xlu1 %1435  ;;  %v1670_v41 = vmul.bf16 %v1668_v16, %v3488_v27  ;;  %v1994_v62 = vld [vmem:[#allocation2 + $0xc] sm:$0xf]  ;;  %v3342_v17 = vmov 1  }
 0x2e3   : > { %3208 = vmatprep.subr.bf16.mxu0 %v3207_v30  ;;  %v1432_v49 = vpop.permute.xlu0 %1431 }
 0x2e4   : > { %3210 = vmatpush3.bf16.msra.mxu0 %v3207_v30  ;;  %v1996_v30 = vmul.bf16 %v1994_v62, %v3488_v27 }
 0x2e7   : > { %3184 = vmatmul.mubr.msk.f32.vlgmr.msra.gmra.mrb[8].mxu0 %vm327_vm9, %v3660_v55 }
 0x2e8   : > { %2101 = vmatprep.mubr.bf16.mxu0 %v4448_v52 }
 0x3ba   : > { %v3185_v53 = vpop.f32.mrb[8].mxu0 }
 0x3bb   : > { %v1515_v60 = vadd.f32 %v3185_v53, %v1436_v45  ;;  %v1509_v0 = vpop.f32.mrb[9].mxu0  ;;  %v2238_v45 = vld [vmem:[#allocation2 + $0xc] sm:$0xf]  ;;  %v3343_v53 = vmov 2  }
 0x3bc   : > { %v1510_v4 = vadd.f32 %v1509_v0, %v1432_v49  ;;  %v2528_v0 = vld [vmem:[#allocation2 + $0xc] sm:$0xf] }
 0x3bd   : > { %v1519_v36 = vsub.f32 0.0, %v1515_v60  ;;  %v2240_v60 = vmul.bf16 %v2238_v45, %v3509_v38  ;;  %v1980_v49 = vld [vmem:[#allocation2 + $0xc] sm:$0xf] }
 0x3be   : > { %v1518_v7 = vsub.f32 0.0, %v1510_v4  ;;  %v2530_v4 = vmul.bf16 %v2528_v0, %v3509_v38  ;;  %v2270_v38 = vld [vmem:[#allocation2 + $0xc] sm:$0xf] }
 0x3bf   : > { %v1522_v3 = vmul.f32 1.442695, %v1519_v36  ;;  %v1654_v36 = vld [vmem:[#allocation2 + $0xc] sm:$0xf] }
 0x3c0   : > { %v1520_v39 = vmul.f32 1.442695, %v1518_v7  ;;  %v3266_v7 = vpack.i.bf16 %v1980_v49, %v1654_v36 }
 0x3c1   : > { %3298 = vpow2.f32 %v1522_v3 }
 0x3c2   : > { %3300 = vpow2.f32 %v1520_v39  ;;  %v2254_v39 = vld [vmem:[#allocation2 + $0xc] sm:$0xf] }
 0x3cb   : > { %v3299_v12 = vpop.eup %3298 }
 0x3cc   : > { %v1525_v24 = vadd.f32 1.0, %v3299_v12  ;;  %v3301_v55 = vpop.eup %3300  ;;  %v2256_v12 = vmul.bf16 %v2254_v39, %v3522_v47 }
 0x3cd   : > { %v1524_v50 = vadd.f32 1.0, %v3301_v55 }
 0x3ce   : > { %3302 = vrcp.f32 %v1525_v24  ;;  %v1964_v24 = vld [vmem:[#allocation2 + $0xc] sm:$0xf] }
 0x3cf   : > { %3304 = vrcp.f32 %v1524_v50  ;;  %v1966_v55 = vmul.bf16 %v1964_v24, %v3522_v47  ;;  %v4008_v50 = vpop.permute.xlu1 %1629 }
 0x3d8   : > { %v3303_v56 = vpop.eup %3302 }
 0x3d9   : > { %2447 = vperm.xlu0 %3264, %v3303_v56   ;;  %1541 = vperm.xlu1 %3261, %v3303_v56   ;;  %v3305_v3 = vpop.eup %3304 }
 0x3dd   : > { %1675 = vrot.lane.b32.xlu0 %v1670_v41, %s3332_s28  ;;  %3262 = vset.pattern.permute.xlu1 %v3342_v17  ;;  %v4010_v41 = vpop.permute.xlu1 %1955 }
 0x3de   : > { %1867 = vperm.xlu1 %3262, %v3303_v56   ;;  %3279 = vset.pattern.permute.xlu0 %v4448_v52 }
 0x3e1   : > { %2001 = vrot.lane.b32.xlu0 %v1996_v30, %s3332_s28  ;;  %v4012_v62 = vpop.permute.xlu1 %1645 }
 0x3e2   : > { %3263 = vset.pattern.permute.xlu1 %v3343_v53 }
 0x3e3   : > { %2157 = vperm.xlu1 %3263, %v3303_v56   ;;  %v2560_v56 = vld [vmem:[#allocation2 + $0xc] sm:$0xf] }
 0x3e4   : > { %v3272_v16 = vpack.i.bf16 %v2560_v56, %v2270_v38 }
 0x3e5   : > { %2245 = vrot.lane.b32.xlu0 %v2240_v60, %s3331_s27 }
 0x3e7   : > { %3265 = vset.pattern.permute.xlu1 %v4448_v52 }
 0x3e8   : > { %1532 = vperm.xlu1 %3265, %v3305_v3  }
 0x3e9   : > { %2535 = vrot.lane.b32.xlu0 %v2530_v4, %s3331_s27 }
 0x3ec   : > { %3267 = vrot.lane.b32.xlu1 %v3266_v7, %s3337_s7 }
 0x3ed   : > { %2261 = vrot.lane.b32.xlu0 %v2256_v12, %s3334_s30  ;;  %3271 = vset.pattern.permute.xlu1 %v3342_v17 }
 0x3f0   : > { %1859 = vperm.xlu1 %3271, %v3305_v3  }
 0x3f1   : > { %3273 = vrot.lane.b32.xlu0 %v3272_v16, %s3337_s7 }
 0x3f4   : > { %1971 = vrot.lane.b32.xlu1 %v1966_v55, %s3334_s30 }
 0x3f5   : > { %3277 = vset.pattern.permute.xlu1 %v3343_v53 }
 0x3f8   : > { %2149 = vperm.xlu1 %3277, %v3305_v3  }
 0x3fc   : > { %3278 = vset.pattern.permute.xlu1 %v3341_v14 }
 0x3fd   : > { %2439 = vperm.xlu1 %3278, %v3305_v3  }
 0x401   : > { %3280 = vset.pattern.permute.xlu1 %v4448_v52 }
 0x458   : > { %v1542_v30 = vpop.permute.xlu1 %1541 }
 0x459   : > { %v1544_v53 = vmul.f32 %v1542_v30, %v600_v31  ;;  %v1545_v36 = vmul.f32 %v1542_v30, %v601_v33 }
 0x45d   : > { %v1868_v45 = vpop.permute.xlu1 %1867 }
 0x45e   : > { %v1870_v8 = vmul.f32 %v1868_v45, %v869_v58  ;;  %v1871_v51 = vmul.f32 %v1868_v45, %v870_v57 }
 0x462   : > { %v2158_v60 = vpop.permute.xlu1 %2157 }
 0x463   : > { %v2160_v28 = vmul.f32 %v2158_v60, %v1138_v15 }
 0x467   : > { %v1533_v0 = vpop.permute.xlu1 %1532 }
 0x468   : > { %v1535_v14 = vmul.f32 %v1533_v0, %v598_v26  ;;  %v1536_v49 = vmul.f32 %v1533_v0, %v599_v43 }
 0x46a   : > { %v1546_v3 = vadd.f32 %v1544_v53, %v1535_v14  ;;  %v1547_v4 = vadd.f32 %v1545_v36, %v1536_v49 }
 0x46b   : > { %v4022_v7 = vpop.permute.xlu1 %3267 }
 0x46c   : > { %v4024_v39 = vpack.c.bf16 %v1547_v4, %v1546_v3  ;;  %v4449_v3 = vld [vmem:[#allocation6_spill] sm:$0xff] }
 0x46e   : > { %1556 = vst [vmem:[#allocation2 + $0x4] sm:$0xff] %v4024_v39  ;;  %v1639_v4 = vmul.bf16 %v4024_v39, %v4449_v3 }
 0x46f   : > { %v1860_v12 = vpop.permute.xlu1 %1859 }
 0x470   : > { %v1862_v35 = vmul.f32 %v1860_v12, %v867_v34  ;;  %v1863_v54 = vmul.f32 %v1860_v12, %v868_v42  ;;  %v2161_v34 = vmul.f32 %v2158_v60, %v1139_v9  ;;  %v4450_v12 = vld [vmem:[#allocation5_spill] sm:$0xff] }
 0x472   : > { %v1872_v26 = vadd.f32 %v1870_v8, %v1862_v35  ;;  %v1873_v43 = vadd.f32 %v1871_v51, %v1863_v54  ;;  %v1669_v8 = vmul.bf16 %v4024_v39, %v4450_v12 }
 0x473   : > { %v4035_v31 = vpop.permute.xlu1 %1971 }
 0x474   : > { %v4037_v33 = vpack.c.bf16 %v1873_v43, %v1872_v26 }
 0x475   : > { %v1574_v24 = vld [vmem:[#allocation2 + $0x8] sm:$0xf]  ;;  %v1573_v55 = vld [vmem:[#allocation2] sm:$0xff] }
 0x476   : > { %v1588_v38 = vld [vmem:[#allocation2 + $0x8] sm:$0xf]  ;;  %1579 = vrot.lane.b32.xlu1 %v1574_v24, %s3338_s8  ;;  %1577 = vrot.lane.b32.xlu0 %v1573_v55, %s3338_s8  ;;  %v1559_v57 = vmul.bf16 %v1573_v55, %v3539_v61  ;;  %v1589_v48 = vmul.bf16 %v1573_v55, %v3560_v6  ;;  %v1605_v53 = vmul.bf16 %v1573_v55, %v3571_v11 }
 0x477   : > { %v1604_v44 = vld [vmem:[#allocation2 + $0x8] sm:$0xf]  ;;  %v2150_v13 = vpop.permute.xlu1 %2149  ;;  %v1590_v36 = vmul.bf16 %v1588_v38, %v3482_v23  ;;  %v1995_v38 = vmul.bf16 %v4037_v33, %v4450_v12 }
 0x478   : > { %v1558_v10 = vld [vmem:[#allocation2 + $0x8] sm:$0xf]  ;;  %v2152_v42 = vmul.f32 %v2150_v13, %v1136_v63  ;;  %v2153_v58 = vmul.f32 %v2150_v13, %v1137_v5  ;;  %v2448_v63 = vpop.permute.xlu0 %2447 }
 0x479   : > { %1882 = vst [vmem:[#allocation2 + $0x4] sm:$0xff] %v4037_v33  ;;  %v1560_v32 = vmul.bf16 %v1558_v10, %v3473_v19  ;;  %v2450_v14 = vmul.f32 %v2448_v63, %v1407_v20  ;;  %v2451_v49 = vmul.f32 %v2448_v63, %v1408_v21  ;;  %v1949_v10 = vmul.bf16 %v4037_v33, %v3594_v18 }
 0x47a   : > { %v2162_v56 = vadd.f32 %v2160_v28, %v2152_v42  ;;  %v2163_v16 = vadd.f32 %v2161_v34, %v2153_v58  ;;  %1657 = vrot.lane.b32.xlu0 %v4024_v39, %s3337_s7  ;;  %1563 = vrot.lane.b32.xlu1 %v1559_v57, %s3335_s5  ;;  %v1965_v28 = vmul.bf16 %v4037_v33, %v4449_v3 }
 0x47c   : > { %v4054_v22 = vpack.c.bf16 %v2163_v16, %v2162_v56  ;;  %v2440_v15 = vpop.permute.xlu1 %2439 }
 0x47d   : > { %v2442_v30 = vmul.f32 %v2440_v15, %v1405_v1  ;;  %v2443_v45 = vmul.f32 %v2440_v15, %v1406_v2  ;;  %v1623_v1 = vmul.bf16 %v4024_v39, %v3594_v18  ;;  %v1606_v2 = vmul.bf16 %v1604_v44, %v3494_v29 }
 0x47e   : > { %1593 = vrot.lane.b32.xlu0 %v1589_v48, %s3336_s6  ;;  %1565 = vrot.lane.b32.xlu1 %v1560_v32, %s3335_s5  ;;  %v2239_v16 = vmul.bf16 %v4054_v22, %v3594_v18  ;;  %v2255_v15 = vmul.bf16 %v4054_v22, %v4449_v3 }
 0x47f   : > { %v2452_v59 = vadd.f32 %v2450_v14, %v2442_v30  ;;  %v2453_v40 = vadd.f32 %v2451_v49, %v2443_v45 }
 0x480   : > { %v1900_v46 = vld [vmem:[#allocation2 + $0x8] sm:$0xf]  ;;  %v1899_v5 = vld [vmem:[#allocation2] sm:$0xff] }
 0x481   : > { %v1884_v9 = vld [vmem:[#allocation2 + $0x8] sm:$0xf]  ;;  %v4078_v37 = vpack.c.bf16 %v2453_v40, %v2452_v59  ;;  %v1885_v43 = vmul.bf16 %v1899_v5, %v3539_v61  ;;  %v1915_v55 = vmul.bf16 %v1899_v5, %v3560_v6  ;;  %v1931_v44 = vmul.bf16 %v1899_v5, %v3571_v11 }
 0x482   : > { %v1914_v60 = vld [vmem:[#allocation2 + $0x8] sm:$0xf]  ;;  %1609 = vrot.lane.b32.xlu0 %v1605_v53, %s3333_s29  ;;  %1595 = vrot.lane.b32.xlu1 %v1590_v36, %s3336_s6  ;;  %v1886_v54 = vmul.bf16 %v1884_v9, %v3473_v19  ;;  %v4144_v53 = vpop.permute.xlu0 %1675 }
 0x483   : > { %v1930_v0 = vld [vmem:[#allocation2 + $0x8] sm:$0xf]  ;;  %v1916_v26 = vmul.bf16 %v1914_v60, %v3482_v23  ;;  %v2529_v49 = vmul.bf16 %v4078_v37, %v3594_v18  ;;  %v2545_v40 = vmul.bf16 %v4078_v37, %v4449_v3  ;;  %v4183_v18 = vld [vmem:[%s4434_s1 + $0x30] sm:$0xff]  ;;  %v4200_v3 = vld [vmem:[%s4434_s1 + $0x40] sm:$0xff] }
 0x484   : > { %2172 = vst [vmem:[#allocation2 + $0x4] sm:$0xff] %v4054_v22  ;;  %v1932_v24 = vmul.bf16 %v1930_v0, %v3494_v29 }
 0x486   : > { %1627 = vrot.lane.b32.xlu0 %v1623_v1, %s3331_s27  ;;  %1611 = vrot.lane.b32.xlu1 %v1606_v2, %s3333_s29  ;;  %v4152_v36 = vpop.permute.xlu0 %2001  ;;  %v2574_v1 = vld [vmem:[#allocation2 + $0xc] sm:$0xf] }
 0x487   : > { %v2576_v2 = vmul.bf16 %v2574_v1, %v3488_v27  ;;  %v1678_v1 = vrot.slane %v4144_v53, 4 }
 0x48a   : > { %1643 = vrot.lane.b32.xlu0 %v1639_v4, %s3334_s30  ;;  %1673 = vrot.lane.b32.xlu1 %v1669_v8, %s3332_s28  ;;  %v4162_v14 = vpop.permute.xlu0 %2245 }
 0x48b   : > { %v2189_v20 = vld [vmem:[#allocation2] sm:$0xff]  ;;  %v2190_v25 = vld [vmem:[#allocation2 + $0x8] sm:$0xf] }
 0x48c   : > { %v2174_v21 = vld [vmem:[#allocation2 + $0x8] sm:$0xf]  ;;  %v2175_v13 = vmul.bf16 %v2189_v20, %v3539_v61  ;;  %v2205_v42 = vmul.bf16 %v2189_v20, %v3560_v6  ;;  %v2221_v57 = vmul.bf16 %v2189_v20, %v3571_v11 }
 0x48d   : > { %v2204_v51 = vld [vmem:[#allocation2 + $0x8] sm:$0xf]  ;;  %v2176_v34 = vmul.bf16 %v2174_v21, %v3473_v19  ;;  %v4188_v21 = vld [vmem:[%s4434_s1 + $0x38] sm:$0xff] }
 0x48e   : > { %v2220_v35 = vld [vmem:[#allocation2 + $0x8] sm:$0xf]  ;;  %1905 = vrot.lane.b32.xlu1 %v1900_v46, %s3338_s8  ;;  %1903 = vrot.lane.b32.xlu0 %v1899_v5, %s3338_s8  ;;  %v2206_v58 = vmul.bf16 %v2204_v51, %v3482_v23  ;;  %v4169_v59 = vpop.permute.xlu0 %2535 }
 0x48f   : > { %2462 = vst [vmem:[#allocation2 + $0x4] sm:$0xff] %v4078_v37  ;;  %v2222_v56 = vmul.bf16 %v2220_v35, %v3494_v29 }
 0x492   : > { %1983 = vrot.lane.b32.xlu0 %v4037_v33, %s3337_s7  ;;  %1891 = vrot.lane.b32.xlu1 %v1886_v54, %s3335_s5 }
 0x496   : > { %1921 = vrot.lane.b32.xlu1 %v1916_v26, %s3336_s6  ;;  %1889 = vrot.lane.b32.xlu0 %v1885_v43, %s3335_s5  ;;  %v2480_v48 = vld [vmem:[#allocation2 + $0x8] sm:$0xf]  ;;  %v2479_v46 = vld [vmem:[#allocation2] sm:$0xff] }
 0x497   : > { %v2464_v32 = vld [vmem:[#allocation2 + $0x8] sm:$0xf]  ;;  %v2465_v30 = vmul.bf16 %v2479_v46, %v3539_v61  ;;  %v2495_v0 = vmul.bf16 %v2479_v46, %v3560_v6  ;;  %v2511_v61 = vmul.bf16 %v2479_v46, %v3571_v11  ;;  %v2284_v6 = vld [vmem:[#allocation2 + $0xc] sm:$0xf] }
 0x498   : > { %v2466_v63 = vmul.bf16 %v2464_v32, %v3473_v19  ;;  %v2494_v5 = vld [vmem:[#allocation2 + $0x8] sm:$0xf]  ;;  %v2544_v19 = vld [vmem:[#allocation2 + $0xc] sm:$0xf]  ;;  %v2286_v11 = vmul.bf16 %v2284_v6, %v3488_v27 }
 0x499   : > { %v2496_v9 = vmul.bf16 %v2494_v5, %v3482_v23  ;;  %v2510_v45 = vld [vmem:[#allocation2 + $0x8] sm:$0xf]  ;;  %v2546_v23 = vmul.bf16 %v2544_v19, %v3522_v47  ;;  %v2575_v47 = vmul.bf16 %v4078_v37, %v4450_v12 }
 0x49a   : > { %1937 = vrot.lane.b32.xlu1 %v1932_v24, %s3333_s29  ;;  %1919 = vrot.lane.b32.xlu0 %v1915_v55, %s3336_s6  ;;  %v2512_v60 = vmul.bf16 %v2510_v45, %v3494_v29  ;;  %v2285_v29 = vmul.bf16 %v4054_v22, %v4450_v12  ;;  %v4195_v27 = vld [vmem:[%s4434_s1 + $0x48] sm:$0xff] }
 0x49e   : > { %1999 = vrot.lane.b32.xlu1 %v1995_v38, %s3332_s28  ;;  %1935 = vrot.lane.b32.xlu0 %v1931_v44, %s3333_s29 }
 0x4a2   : > { %1953 = vrot.lane.b32.xlu0 %v1949_v10, %s3331_s27  ;;  %2193 = vrot.lane.b32.xlu1 %v2189_v20, %s3338_s8  ;;  %v4175_v20 = vpop.permute.xlu0 %2261 }
 0x4a6   : > { %1969 = vrot.lane.b32.xlu0 %v1965_v28, %s3334_s30  ;;  %2273 = vrot.lane.b32.xlu1 %v4054_v22, %s3337_s7 }
 0x4aa   : > { %2195 = vrot.lane.b32.xlu0 %v2190_v25, %s3338_s8  ;;  %2179 = vrot.lane.b32.xlu1 %v2175_v13, %s3335_s5  ;;  %v4178_v25 = vpop.permute.xlu0 %3273 }
 0x4ae   : > { %2181 = vrot.lane.b32.xlu0 %v2176_v34, %s3335_s5  ;;  %2209 = vrot.lane.b32.xlu1 %v2205_v42, %s3336_s6 }
 0x4b2   : > { %2211 = vrot.lane.b32.xlu0 %v2206_v58, %s3336_s6  ;;  %2225 = vrot.lane.b32.xlu1 %v2221_v57, %s3333_s29 }
 0x4b6   : > { %2227 = vrot.lane.b32.xlu0 %v2222_v56, %s3333_s29  ;;  %2243 = vrot.lane.b32.xlu1 %v2239_v16, %s3331_s27 }
 0x4ba   : > { %2259 = vrot.lane.b32.xlu1 %v2255_v15, %s3334_s30  ;;  %2485 = vrot.lane.b32.xlu0 %v2480_v48, %s3338_s8  ;;  %v1632_v15 = vrot.slane %v4008_v50, 4 }
 0x4be   : > { %2483 = vrot.lane.b32.xlu1 %v2479_v46, %s3338_s8  ;;  %2471 = vrot.lane.b32.xlu0 %v2466_v63, %s3335_s5  ;;  %v3269_v46 = vunpack.i.l.bf16 %v4022_v7 }
 0x4c0   : > { %v1662_v6 = vrot.slane %v3269_v46, 4 }
 0x4c2   : > { %2501 = vrot.lane.b32.xlu0 %v2496_v9, %s3336_s6  ;;  %2469 = vrot.lane.b32.xlu1 %v2465_v30, %s3335_s5 }
 0x4c6   : > { %2517 = vrot.lane.b32.xlu0 %v2512_v60, %s3333_s29  ;;  %2499 = vrot.lane.b32.xlu1 %v2495_v0, %s3336_s6 }
 0x4ca   : > { %2551 = vrot.lane.b32.xlu0 %v2546_v23, %s3334_s30  ;;  %2515 = vrot.lane.b32.xlu1 %v2511_v61, %s3333_s29  ;;  %v1648_v23 = vrot.slane %v4012_v62, 4 }
 0x4ce   : > { %2289 = vrot.lane.b32.xlu0 %v2285_v29, %s3332_s28  ;;  %2563 = vrot.lane.b32.xlu1 %v4078_v37, %s3337_s7 }
 0x4d2   : > { %2579 = vrot.lane.b32.xlu0 %v2575_v47, %s3332_s28  ;;  %2291 = vrot.lane.b32.xlu1 %v2286_v11, %s3332_s28 }
 0x4d6   : > { %2533 = vrot.lane.b32.xlu1 %v2529_v49, %s3331_s27  ;;  %1694 = vperm.xlu0 %3279, %v4183_v18  }
 0x4da   : > { %2549 = vrot.lane.b32.xlu1 %v2545_v40, %s3334_s30  ;;  %1709 = vperm.xlu0 %3279, %v4195_v27  }
 0x4de   : > { %2581 = vrot.lane.b32.xlu1 %v2576_v2, %s3332_s28  ;;  %3281 = vset.pattern.permute.xlu0 %v3342_v17 }
 0x4e2   : > { %1699 = vperm.xlu1 %3280, %v4188_v21  }
 0x4e6   : > { %1704 = vperm.xlu1 %3280, %v4200_v3  }
 0x4e8   : > { %v1580_v4 = vpop.permute.xlu1 %1579  ;;  %v1578_v12 = vpop.permute.xlu0 %1577 }
 0x4e9   : > { %v1582_v35 = vrot.slane %v1580_v4, 4  ;;  %v1581_v54 = vrot.slane %v1578_v12, 4 }
 0x4ea   : > { %3282 = vset.pattern.permute.xlu1 %v3342_v17 }
 0x4eb   : > { %v1583_v24 = vsel %vm310_vm8, %v1581_v54, %v1582_v35 }
 0x4ec   : > { %v1564_v8 = vpop.permute.xlu1 %1563  ;;  %v1658_v51 = vpop.permute.xlu0 %1657  ;;  %v1584_v10 = vsel %vm327_vm9, %v1578_v12, %v1583_v24 }
 0x4ed   : > { %v1567_v55 = vrot.slane %v1564_v8, 4  ;;  %v1661_v45 = vrot.slane %v1658_v51, 4 }
 0x4ef   : > { %v1663_v2 = vsel %vm310_vm8, %v1661_v45, %v1662_v6 }
 0x4f0   : > { %v1566_v26 = vpop.permute.xlu1 %1565  ;;  %v1594_v43 = vpop.permute.xlu0 %1593  ;;  %v1664_v54 = vsel %vm449_vm10, %v1658_v51, %v1663_v2  ;;  %v1958_v2 = vrot.slane %v4010_v41, 4 }
 0x4f1   : > { %v1568_v38 = vrot.slane %v1566_v26, 4  ;;  %v1597_v17 = vrot.slane %v1594_v43, 4 }
 0x4f3   : > { %v1569_v44 = vsel %vm310_vm8, %v1567_v55, %v1568_v38 }
 0x4f4   : > { %v1596_v28 = vpop.permute.xlu1 %1595  ;;  %v1610_v13 = vpop.permute.xlu0 %1609  ;;  %v1570_v34 = vsel %vm312_vm3, %v1564_v8, %v1569_v44 }
 0x4f5   : > { %v3094_v42 = vcombine.low %v1570_v34, %v1584_v10  ;;  %v3095_v58 = vcombine.high %v1570_v34, %v1584_v10  ;;  %v1598_v57 = vrot.slane %v1596_v28, 4  ;;  %v1613_v48 = vrot.slane %v1610_v13, 4 }
 0x4f7   : > { %1779 = vmatprep.subr.bf16.mxu1 %v3095_v58  ;;  %v1599_v5 = vsel %vm310_vm8, %v1597_v17, %v1598_v57 }
 0x4f8   : > { %v1612_v56 = vpop.permute.xlu1 %1611  ;;  %1780 = vmatpush1.bf16.msra.mxu1 %v3094_v42  ;;  %v1628_v16 = vpop.permute.xlu0 %1627  ;;  %v1600_v29 = vsel %vm364_vm7, %v1594_v43, %v1599_v5 }
 0x4f9   : > { %v1614_v32 = vrot.slane %v1612_v56, 4  ;;  %v1631_v63 = vrot.slane %v1628_v16, 4 }
 0x4fb   : > { %v1615_v9 = vsel %vm310_vm8, %v1613_v48, %v1614_v32  ;;  %v1633_v30 = vsel %vm310_vm8, %v1631_v63, %v1632_v15  ;;  %v4239_v32 = vld [vmem:[%s4433_s0 + $0x18] ss:$8 sps:$4 sm:$0xff]  }
 0x4fc   : > { %v1674_v60 = vpop.permute.xlu1 %1673  ;;  %v1644_v0 = vpop.permute.xlu0 %1643  ;;  %v1616_v19 = vsel %vm388_vm6, %v1610_v13, %v1615_v9  ;;  %v1634_v50 = vsel %vm373_vm5, %v1628_v16, %v1633_v30 }
 0x4fd   : > { %v1647_v61 = vrot.slane %v1644_v0, 4  ;;  %v1677_v47 = vrot.slane %v1674_v60, 4  ;;  %v3096_v11 = vcombine.low %v1600_v29, %v1616_v19  ;;  %v3097_v49 = vcombine.high %v1600_v29, %v1616_v19 }
 0x4fe   : > { %v3099_v4 = vcombine.high %v4024_v39, %v1634_v50  ;;  %v3098_v26 = vcombine.low %v4024_v39, %v1634_v50 }
 0x4ff   : > { %v1649_v40 = vsel %vm310_vm8, %v1647_v61, %v1648_v23  ;;  %1781 = vmatprep.subr.bf16.mxu1 %v3097_v49  ;;  %v1679_v35 = vsel %vm310_vm8, %v1677_v47, %v1678_v1  ;;  %v3270_v23 = vunpack.i.h.bf16 %v4022_v7 }
 0x500   : > { %v1906_v12 = vpop.permute.xlu1 %1905  ;;  %v1904_v62 = vpop.permute.xlu0 %1903  ;;  %v1650_v8 = vsel %vm349_vm4, %v1644_v0, %v1649_v40  ;;  %1782 = vmatpush1.bf16.msra.mxu1 %v3096_v11  ;;  %v1680_v55 = vsel %vm296_vm2, %v1674_v60, %v1679_v35  ;;  %v4252_v11 = vld [vmem:[%s4433_s0 + $0x28] ss:$8 sps:$4 sm:$0xff]  }
 0x501   : > { %1783 = vmatprep.subr.bf16.mxu1 %v3099_v4  ;;  %v3101_v43 = vcombine.high %v1650_v8, %v1664_v54  ;;  %v1908_v38 = vrot.slane %v1906_v12, 4  ;;  %v1907_v44 = vrot.slane %v1904_v62, 4  ;;  %v3100_v10 = vcombine.low %v1650_v8, %v1664_v54 }
 0x502   : > { %v3102_v28 = vcombine.low %v1680_v55, %v1680_v55  ;;  %v3103_v13 = vcombine.high %v1680_v55, %v1680_v55  ;;  %v1988_v12 = vrot.slane %v3270_v23, 4 }
 0x503   : > { %v1909_v58 = vsel %vm310_vm8, %v1907_v44, %v1908_v38 }
 0x504   : > { %v1892_v24 = vpop.permute.xlu1 %1891  ;;  %v4227_v53 = vpop.permute.xlu0 %1983  ;;  %1784 = vmatpush1.bf16.msra.mxu1 %v3098_v26  ;;  %v1910_v17 = vsel %vm327_vm9, %v1904_v62, %v1909_v58  ;;  %v1774_v15 = vsel %vm310_vm8, %v3102_v28, 0  ;;  %v2004_v62 = vrot.slane %v4152_v36, 4  ;;  %v1974_v26 = vrot.slane %v4035_v31, 4 }
 0x505   : > { %1785 = vmatprep.subr.bf16.mxu1 %v3101_v43  ;;  %v1894_v51 = vrot.slane %v1892_v24, 4  ;;  %v1987_v49 = vrot.slane %v4227_v53, 4 }
 0x507   : > { %v1989_v43 = vsel %vm310_vm8, %v1987_v49, %v1988_v12 }
 0x508   : > { %v1922_v34 = vpop.permute.xlu1 %1921  ;;  %v1890_v42 = vpop.permute.xlu0 %1889  ;;  %1786 = vmatpush1.bf16.msra.mxu1 %v3100_v10  ;;  %v1990_v10 = vsel %vm449_vm10, %v4227_v53, %v1989_v43 }
 0x509   : > { %v1893_v39 = vrot.slane %v1890_v42, 4  ;;  %3104 = vmatprep.subr.msk.bf16.mxu1 %vm310_vm8, %v3103_v13  ;;  %v1924_v9 = vrot.slane %v1922_v34, 4 }
 0x50b   : > { %v1895_v57 = vsel %vm310_vm8, %v1893_v39, %v1894_v51 }
 0x50c   : > { %v1896_v56 = vsel %vm312_vm3, %v1890_v42, %v1895_v57  ;;  %v1938_v16 = vpop.permute.xlu1 %1937  ;;  %v1920_v48 = vpop.permute.xlu0 %1919  ;;  %1788 = vmatpush1.bf16.msra.mxu1 %v1774_v15 }
 0x50d   : > { %v3108_v63 = vcombine.low %v1896_v56, %v1910_v17  ;;  %v3109_v46 = vcombine.high %v1896_v56, %v1910_v17  ;;  %v1923_v5 = vrot.slane %v1920_v48, 4  ;;  %v1940_v60 = vrot.slane %v1938_v16, 4 }
 0x50f   : > { %2069 = vmatprep.subr.bf16.mxu0 %v3109_v46  ;;  %3105 = vmatmul.mubr.msk.bf16.vlgmr.msra.gmra.mrb[8].mxu1 %vm544_vm11, %v4239_v32  ;;  %v1925_v0 = vsel %vm310_vm8, %v1923_v5, %v1924_v9 }
 0x510   : > { %v2000_v30 = vpop.permute.xlu1 %1999  ;;  %2070 = vmatpush1.bf16.msra.mxu0 %v3108_v63  ;;  %v1936_v45 = vpop.permute.xlu0 %1935  ;;  %1821 = vmatprep.mubr.bf16.mxu1 %v4448_v52  ;;  %v1926_v61 = vsel %vm364_vm7, %v1920_v48, %v1925_v0 }
 0x511   : > { %v1939_v19 = vrot.slane %v1936_v45, 4  ;;  %v2003_v7 = vrot.slane %v2000_v30, 4 }
 0x513   : > { %v1941_v50 = vsel %vm310_vm8, %v1939_v19, %v1940_v60  ;;  %v2005_v36 = vsel %vm310_vm8, %v2003_v7, %v2004_v62 }
 0x514   : > { %v1942_v29 = vsel %vm388_vm6, %v1936_v45, %v1941_v50  ;;  %v2194_v6 = vpop.permute.xlu1 %2193  ;;  %v1954_v47 = vpop.permute.xlu0 %1953  ;;  %v2006_v34 = vsel %vm296_vm2, %v2000_v30, %v2005_v36 }
 0x515   : > { %v3110_v40 = vcombine.low %v1926_v61, %v1942_v29  ;;  %v3111_v1 = vcombine.high %v1926_v61, %v1942_v29  ;;  %v1957_v4 = vrot.slane %v1954_v47, 4  ;;  %v2197_v39 = vrot.slane %v2194_v6, 4 }
 0x516   : > { %v3116_v57 = vcombine.low %v2006_v34, %v2006_v34  ;;  %v2248_v61 = vrot.slane %v4162_v14, 4  ;;  %v2264_v14 = vrot.slane %v4175_v20, 4 }
 0x517   : > { %2071 = vmatprep.subr.bf16.mxu0 %v3111_v1  ;;  %v1959_v8 = vsel %vm310_vm8, %v1957_v4, %v1958_v2  ;;  %3106 = vmatmul.mubr.msk.bf16.gmra.mrb[12].mxu1 %vm544_vm11, %v4252_v11 }
 0x518   : > { %v4258_v35 = vpop.permute.xlu1 %2273  ;;  %2072 = vmatpush1.bf16.msra.mxu0 %v3110_v40  ;;  %v1970_v54 = vpop.permute.xlu0 %1969  ;;  %v1960_v41 = vsel %vm373_vm5, %v1954_v47, %v1959_v8  ;;  %2391 = vmatprep.mubr.bf16.mxu1 %v4448_v52  ;;  %v2064_v46 = vsel %vm310_vm8, %v3116_v57, 0 }
 0x519   : > { %v1973_v24 = vrot.slane %v1970_v54, 4  ;;  %v3112_v55 = vcombine.low %v4037_v33, %v1960_v41  ;;  %v3113_v38 = vcombine.high %v4037_v33, %v1960_v41  ;;  %v3117_v33 = vcombine.high %v2006_v34, %v2006_v34 }
 0x51a   : > { %v2277_v7 = vrot.slane %v4258_v35, 4 }
 0x51b   : > { %v1975_v44 = vsel %vm310_vm8, %v1973_v24, %v1974_v26  ;;  %2073 = vmatprep.subr.bf16.mxu0 %v3113_v38 }
 0x51c   : > { %v1976_v31 = vsel %vm349_vm4, %v1970_v54, %v1975_v44  ;;  %v2180_v28 = vpop.permute.xlu1 %2179  ;;  %v2196_v13 = vpop.permute.xlu0 %2195  ;;  %2074 = vmatpush1.bf16.msra.mxu0 %v3112_v55 }
 0x51d   : > { %v3114_v42 = vcombine.low %v1976_v31, %v1990_v10  ;;  %v3115_v58 = vcombine.high %v1976_v31, %v1990_v10  ;;  %v2198_v51 = vrot.slane %v2196_v13, 4  ;;  %v2183_v16 = vrot.slane %v2180_v28, 4 }
 0x51f   : > { %2075 = vmatprep.subr.bf16.mxu0 %v3115_v58  ;;  %v2199_v53 = vsel %vm310_vm8, %v2197_v39, %v2198_v51 }
 0x520   : > { %v2210_v17 = vpop.permute.xlu1 %2209  ;;  %v2182_v56 = vpop.permute.xlu0 %2181  ;;  %2076 = vmatpush1.bf16.msra.mxu0 %v3114_v42  ;;  %v2200_v30 = vsel %vm327_vm9, %v2194_v6, %v2199_v53  ;;  %v3275_v6 = vunpack.i.l.bf16 %v4178_v25 }
 0x521   : > { %v2184_v15 = vrot.slane %v2182_v56, 4  ;;  %3118 = vmatprep.subr.msk.bf16.mxu0 %vm310_vm8, %v3117_v33  ;;  %v2213_v19 = vrot.slane %v2210_v17, 4 }
 0x522   : > { %v2278_v43 = vrot.slane %v3275_v6, 4 }
 0x523   : > { %v2185_v48 = vsel %vm310_vm8, %v2183_v16, %v2184_v15 }
 0x524   : > { %v2226_v63 = vpop.permute.xlu1 %2225  ;;  %v2212_v5 = vpop.permute.xlu0 %2211  ;;  %v2186_v9 = vsel %vm312_vm3, %v2180_v28, %v2185_v48  ;;  %2078 = vmatpush1.bf16.msra.mxu0 %v2064_v46  ;;  %v2279_v55 = vsel %vm310_vm8, %v2277_v7, %v2278_v43  ;;  %v2538_v7 = vrot.slane %v4169_v59, 4 }
 0x525   : > { %v3122_v45 = vcombine.low %v2186_v9, %v2200_v30  ;;  %v3123_v60 = vcombine.high %v2186_v9, %v2200_v30  ;;  %v2214_v0 = vrot.slane %v2212_v5, 4  ;;  %v2229_v29 = vrot.slane %v2226_v63, 4 }
 0x526   : > { %v2280_v28 = vsel %vm449_vm10, %v4258_v35, %v2279_v55 }
 0x527   : > { %2359 = vmatprep.subr.bf16.mxu1 %v3123_v60  ;;  %3119 = vmatmul.mubr.msk.bf16.vlgmr.msra.gmra.mrb[12].mxu0 %vm544_vm11, %v4239_v32  ;;  %v2215_v40 = vsel %vm310_vm8, %v2213_v19, %v2214_v0 }
 0x528   : > { %v2244_v23 = vpop.permute.xlu1 %2243  ;;  %2360 = vmatpush1.bf16.msra.mxu1 %v3122_v45  ;;  %v2228_v50 = vpop.permute.xlu0 %2227  ;;  %2111 = vmatprep.mubr.bf16.mxu0 %v4448_v52  ;;  %v2216_v26 = vsel %vm364_vm7, %v2210_v17, %v2215_v40 }
 0x529   : > { %v2247_v47 = vrot.slane %v2244_v23, 4  ;;  %v2230_v49 = vrot.slane %v2228_v50, 4 }
 0x52b   : > { %v2249_v1 = vsel %vm310_vm8, %v2247_v47, %v2248_v61  ;;  %v2231_v2 = vsel %vm310_vm8, %v2229_v29, %v2230_v49 }
 0x52c   : > { %v2260_v4 = vpop.permute.xlu1 %2259  ;;  %v2486_v12 = vpop.permute.xlu0 %2485  ;;  %v2232_v62 = vsel %vm388_vm6, %v2226_v63, %v2231_v2  ;;  %v2250_v8 = vsel %vm373_vm5, %v2244_v23, %v2249_v1  ;;  %v3276_v1 = vunpack.i.h.bf16 %v4178_v25 }
 0x52d   : > { %v2263_v54 = vrot.slane %v2260_v4, 4  ;;  %v3124_v41 = vcombine.low %v2216_v26, %v2232_v62  ;;  %v3125_v24 = vcombine.high %v2216_v26, %v2232_v62  ;;  %v3127_v38 = vcombine.high %v4054_v22, %v2250_v8 }
 0x52e   : > { %v3126_v13 = vcombine.low %v4054_v22, %v2250_v8  ;;  %v2488_v34 = vrot.slane %v2486_v12, 4  ;;  %v2568_v26 = vrot.slane %v3276_v1, 4 }
 0x52f   : > { %v2265_v36 = vsel %vm310_vm8, %v2263_v54, %v2264_v14  ;;  %2361 = vmatprep.subr.bf16.mxu1 %v3125_v24  ;;  %3120 = vmatmul.mubr.msk.bf16.gmra.mrb[16].mxu0 %vm544_vm11, %v4252_v11 }
 0x530   : > { %v2484_v44 = vpop.permute.xlu1 %2483  ;;  %v2472_v10 = vpop.permute.xlu0 %2471  ;;  %v2266_v20 = vsel %vm349_vm4, %v2260_v4, %v2265_v36  ;;  %2362 = vmatpush1.bf16.msra.mxu1 %v3124_v41  ;;  %2681 = vmatprep.mubr.bf16.mxu0 %v4448_v52 }
 0x531   : > { %v2487_v31 = vrot.slane %v2484_v44, 4  ;;  %2363 = vmatprep.subr.bf16.mxu1 %v3127_v38  ;;  %v3129_v42 = vcombine.high %v2266_v20, %v2280_v28  ;;  %v2474_v57 = vrot.slane %v2472_v10, 4  ;;  %v3128_v17 = vcombine.low %v2266_v20, %v2280_v28 }
 0x533   : > { %v2489_v39 = vsel %vm310_vm8, %v2487_v31, %v2488_v34 }
 0x534   : > { %v2470_v58 = vpop.permute.xlu1 %2469  ;;  %v2502_v51 = vpop.permute.xlu0 %2501  ;;  %2364 = vmatpush1.bf16.msra.mxu1 %v3126_v13  ;;  %v2490_v16 = vsel %vm327_vm9, %v2484_v44, %v2489_v39 }
 0x535   : > { %v2473_v33 = vrot.slane %v2470_v58, 4  ;;  %2365 = vmatprep.subr.bf16.mxu1 %v3129_v42  ;;  %v2504_v46 = vrot.slane %v2502_v51, 4 }
 0x537   : > { %v2475_v56 = vsel %vm310_vm8, %v2473_v33, %v2474_v57 }
 0x538   : > { %v2476_v53 = vsel %vm312_vm3, %v2470_v58, %v2475_v56  ;;  %v2500_v35 = vpop.permute.xlu1 %2499  ;;  %v2518_v15 = vpop.permute.xlu0 %2517  ;;  %2366 = vmatpush1.bf16.msra.mxu1 %v3128_v17 }
 0x539   : > { %v3136_v22 = vcombine.low %v2476_v53, %v2490_v16  ;;  %v3137_v48 = vcombine.high %v2476_v53, %v2490_v16  ;;  %v2503_v63 = vrot.slane %v2500_v35, 4  ;;  %v2520_v45 = vrot.slane %v2518_v15, 4 }
 0x53b   : > { %2649 = vmatprep.subr.bf16.mxu0 %v3137_v48  ;;  %v2505_v30 = vsel %vm310_vm8, %v2503_v63, %v2504_v46 }
 0x53c   : > { %v2516_v5 = vpop.permute.xlu1 %2515  ;;  %2650 = vmatpush1.bf16.msra.mxu0 %v3136_v22  ;;  %v2552_v9 = vpop.permute.xlu0 %2551  ;;  %v2506_v19 = vsel %vm364_vm7, %v2500_v35, %v2505_v30 }
 0x53d   : > { %v2519_v60 = vrot.slane %v2516_v5, 4  ;;  %v2554_v24 = vrot.slane %v2552_v9, 4 }
 0x53f   : > { %v2521_v0 = vsel %vm310_vm8, %v2519_v60, %v2520_v45 }
 0x540   : > { %v2522_v23 = vsel %vm388_vm6, %v2516_v5, %v2521_v0  ;;  %v2564_v50 = vpop.permute.xlu1 %2563  ;;  %v2290_v47 = vpop.permute.xlu0 %2289 }
 0x541   : > { %v3138_v61 = vcombine.low %v2506_v19, %v2522_v23  ;;  %v3139_v29 = vcombine.high %v2506_v19, %v2522_v23  ;;  %v2293_v6 = vrot.slane %v2290_v47, 4  ;;  %v2567_v62 = vrot.slane %v2564_v50, 4 }
 0x543   : > { %2651 = vmatprep.subr.bf16.mxu0 %v3139_v29  ;;  %v2569_v59 = vsel %vm310_vm8, %v2567_v62, %v2568_v26 }
 0x544   : > { %v2292_v49 = vpop.permute.xlu1 %2291  ;;  %2652 = vmatpush1.bf16.msra.mxu0 %v3138_v61  ;;  %v2580_v10 = vpop.permute.xlu0 %2579  ;;  %v2570_v31 = vsel %vm449_vm10, %v2564_v50, %v2569_v59 }
 0x545   : > { %v2294_v40 = vrot.slane %v2292_v49, 4  ;;  %v2583_v34 = vrot.slane %v2580_v10, 4 }
 0x547   : > { %v2295_v2 = vsel %vm310_vm8, %v2293_v6, %v2294_v40 }
 0x548   : > { %v2296_v4 = vsel %vm296_vm2, %v2290_v47, %v2295_v2  ;;  %v2534_v12 = vpop.permute.xlu1 %2533 }
 0x549   : > { %v2537_v14 = vrot.slane %v2534_v12, 4  ;;  %v3131_v8 = vcombine.high %v2296_v4, %v2296_v4  ;;  %v3130_v54 = vcombine.low %v2296_v4, %v2296_v4 }
 0x54b   : > { %v2539_v43 = vsel %vm310_vm8, %v2537_v14, %v2538_v7  ;;  %3132 = vmatprep.subr.msk.bf16.mxu1 %vm310_vm8, %v3131_v8  ;;  %v2354_v41 = vsel %vm310_vm8, %v3130_v54, 0 }
 0x54c   : > { %v2540_v25 = vsel %vm373_vm5, %v2534_v12, %v2539_v43  ;;  %v2550_v36 = vpop.permute.xlu1 %2549  ;;  %2368 = vmatpush1.bf16.msra.mxu1 %v2354_v41 }
 0x54d   : > { %v3140_v55 = vcombine.low %v4078_v37, %v2540_v25  ;;  %v3141_v38 = vcombine.high %v4078_v37, %v2540_v25  ;;  %v2553_v44 = vrot.slane %v2550_v36, 4 }
 0x54f   : > { %v2555_v20 = vsel %vm310_vm8, %v2553_v44, %v2554_v24  ;;  %3133 = vmatmul.mubr.msk.bf16.vlgmr.msra.gmra.mrb[16].mxu1 %vm544_vm11, %v4239_v32  ;;  %2653 = vmatprep.subr.bf16.mxu0 %v3141_v38 }
 0x550   : > { %v2556_v28 = vsel %vm349_vm4, %v2550_v36, %v2555_v20  ;;  %v2582_v13 = vpop.permute.xlu1 %2581  ;;  %2654 = vmatpush1.bf16.msra.mxu0 %v3140_v55  ;;  %2401 = vmatprep.mubr.bf16.mxu1 %v4448_v52 }
 0x551   : > { %v3142_v42 = vcombine.low %v2556_v28, %v2570_v31  ;;  %v3143_v58 = vcombine.high %v2556_v28, %v2570_v31  ;;  %v2584_v37 = vrot.slane %v2582_v13, 4 }
 0x553   : > { %v2585_v51 = vsel %vm310_vm8, %v2583_v34, %v2584_v37  ;;  %2655 = vmatprep.subr.bf16.mxu0 %v3143_v58 }
 0x554   : > { %v2586_v39 = vsel %vm296_vm2, %v2580_v10, %v2585_v51  ;;  %2656 = vmatpush1.bf16.msra.mxu0 %v3142_v42 }
 0x555   : > { %v3145_v57 = vcombine.high %v2586_v39, %v2586_v39  ;;  %v3144_v33 = vcombine.low %v2586_v39, %v2586_v39  ;;  %v4339_v56 = vpop.permute.xlu0 %1694 }
 0x557   : > { %3134 = vmatmul.mubr.msk.bf16.gmra.mrb[20].mxu1 %vm544_vm11, %v4252_v11  ;;  %3146 = vmatprep.subr.msk.bf16.mxu0 %vm310_vm8, %v3145_v57  ;;  %v2644_v17 = vsel %vm310_vm8, %v3144_v33, 0 }
 0x558   : > { %2658 = vmatpush1.bf16.msra.mxu0 %v2644_v17 }
 0x559   : > { %v4349_v19 = vpop.permute.xlu0 %1709 }
 0x55b   : > { %3147 = vmatmul.mubr.msk.bf16.vlgmr.msra.gmra.mrb[20].mxu0 %vm544_vm11, %v4239_v32 }
 0x55c   : > { %2691 = vmatprep.mubr.bf16.mxu0 %v4448_v52 }
 0x561   : > { %v4341_v53 = vpop.permute.xlu1 %1699 }
 0x563   : > { %3148 = vmatmul.mubr.msk.bf16.gmra.mrb[24].mxu0 %vm544_vm11, %v4252_v11 }
 0x565   : > { %v4347_v45 = vpop.permute.xlu1 %1704 }
 0x5e2   : > { %v1813_v16 = vpop.f32.mrb[8].mxu1 }
 0x5e3   : > { %v1815_v35 = vpop.f32.mrb[9].mxu1  ;;  %v1814_v15 = vadd.f32 %v1813_v16, %v4339_v56 }
 0x5e4   : > { %v1817_v22 = vpop.f32.mrb[10].mxu1  ;;  %v1816_v48 = vadd.f32 %v1815_v35, %v4339_v56 }
 0x5e5   : > { %v1818_v63 = vadd.f32 %v1817_v22, %v4341_v53  ;;  %v1819_v46 = vpop.f32.mrb[11].mxu1  ;;  %v1832_v32 = vmax.f32 %v1814_v15, 0.0 }
 0x5e6   : > { %v1820_v52 = vadd.f32 %v1819_v46, %v4341_v53  ;;  %v1833_v5 = vmax.f32 %v1816_v48, 0.0 }
 0x5e7   : > { %v1834_v9 = vmax.f32 %v1818_v63, 0.0 }
 0x5e8   : > { %v1835_v11 = vmax.f32 %v1820_v52, 0.0  ;;  %v1840_v30 = vadd.f32 %v1833_v5, %v1832_v32 }
 0x5ea   : > { %v1843_v60 = vadd.f32 %v1835_v11, %v1834_v9  ;;  %v1823_v0 = vpop.f32.mrb[12].mxu1  ;;  %1841 = vadd.xlane.f32.xlu1 %v1840_v30 }
 0x5eb   : > { %v1825_v23 = vpop.f32.mrb[13].mxu1  ;;  %v1824_v50 = vadd.f32 %v1823_v0, %v4347_v45 }
 0x5ec   : > { %v1827_v61 = vpop.f32.mrb[14].mxu1  ;;  %1844 = vadd.xlane.f32.xlu0 %v1843_v60  ;;  %v1826_v29 = vadd.f32 %v1825_v23, %v4347_v45 }
 0x5ed   : > { %v1829_v47 = vpop.f32.mrb[15].mxu1  ;;  %v1836_v49 = vmax.f32 %v1824_v50, 0.0  ;;  %v1828_v6 = vadd.f32 %v1827_v61, %v4349_v19 }
 0x5ee   : > { %v1837_v40 = vmax.f32 %v1826_v29, 0.0  ;;  %v1830_v1 = vadd.f32 %v1829_v47, %v4349_v19 }
 0x5ef   : > { %v1838_v2 = vmax.f32 %v1828_v6, 0.0 }
 0x5f0   : > { %v1846_v7 = vadd.f32 %v1837_v40, %v1836_v49  ;;  %v1839_v4 = vmax.f32 %v1830_v1, 0.0 }
 0x5f2   : > { %v1849_v12 = vadd.f32 %v1839_v4, %v1838_v2 }
 0x5fa   : > { %v2103_v62 = vpop.f32.mrb[12].mxu0 }
 0x5fb   : > { %v2104_v14 = vadd.f32 %v2103_v62, %v4339_v56  ;;  %v2105_v8 = vpop.f32.mrb[13].mxu0 }
 0x5fc   : > { %v2106_v54 = vadd.f32 %v2105_v8, %v4339_v56  ;;  %v2107_v26 = vpop.f32.mrb[14].mxu0 }
 0x5fd   : > { %v2122_v43 = vmax.f32 %v2104_v14, 0.0  ;;  %v2108_v41 = vadd.f32 %v2107_v26, %v4341_v53  ;;  %v2109_v24 = vpop.f32.mrb[15].mxu0 }
 0x5fe   : > { %v2123_v25 = vmax.f32 %v2106_v54, 0.0  ;;  %v2110_v36 = vadd.f32 %v2109_v24, %v4341_v53 }
 0x5ff   : > { %v2124_v59 = vmax.f32 %v2108_v41, 0.0 }
 0x600   : > { %v2130_v55 = vadd.f32 %v2123_v25, %v2122_v43  ;;  %v2125_v38 = vmax.f32 %v2110_v36, 0.0 }
 0x602   : > { %v2133_v44 = vadd.f32 %v2125_v38, %v2124_v59  ;;  %v2113_v10 = vpop.f32.mrb[16].mxu0  ;;  %2131 = vadd.xlane.f32.xlu0 %v2130_v55 }
 0x603   : > { %v2114_v20 = vadd.f32 %v2113_v10, %v4347_v45  ;;  %v2115_v31 = vpop.f32.mrb[17].mxu0 }
 0x604   : > { %v2116_v28 = vadd.f32 %v2115_v31, %v4347_v45  ;;  %v2117_v13 = vpop.f32.mrb[18].mxu0  ;;  %2134 = vadd.xlane.f32.xlu1 %v2133_v44 }
 0x605   : > { %v2126_v34 = vmax.f32 %v2114_v20, 0.0  ;;  %v2118_v42 = vadd.f32 %v2117_v13, %v4349_v19  ;;  %v2119_v58 = vpop.f32.mrb[19].mxu0 }
 0x606   : > { %v2127_v37 = vmax.f32 %v2116_v28, 0.0  ;;  %v2120_v51 = vadd.f32 %v2119_v58, %v4349_v19  ;;  %1847 = vadd.xlane.f32.xlu0 %v1846_v7 }
 0x607   : > { %v2128_v39 = vmax.f32 %v2118_v42, 0.0 }
 0x608   : > { %v2136_v57 = vadd.f32 %v2127_v37, %v2126_v34  ;;  %v2129_v33 = vmax.f32 %v2120_v51, 0.0  ;;  %1850 = vadd.xlane.f32.xlu1 %v1849_v12 }
 0x60a   : > { %v2139_v17 = vadd.f32 %v2129_v33, %v2128_v39  ;;  %2137 = vadd.xlane.f32.xlu0 %v2136_v57 }
 0x60c   : > { %2140 = vadd.xlane.f32.xlu1 %v2139_v17 }
 0x622   : > { %v2393_v16 = vpop.f32.mrb[16].mxu1 }
 0x623   : > { %v2394_v35 = vadd.f32 %v2393_v16, %v4339_v56  ;;  %v2395_v15 = vpop.f32.mrb[17].mxu1 }
 0x624   : > { %v2396_v22 = vadd.f32 %v2395_v15, %v4339_v56  ;;  %v2397_v48 = vpop.f32.mrb[18].mxu1 }
 0x625   : > { %v2412_v63 = vmax.f32 %v2394_v35, 0.0  ;;  %v2398_v46 = vadd.f32 %v2397_v48, %v4341_v53  ;;  %v2399_v32 = vpop.f32.mrb[19].mxu1 }
 0x626   : > { %v2413_v52 = vmax.f32 %v2396_v22, 0.0  ;;  %v2400_v5 = vadd.f32 %v2399_v32, %v4341_v53 }
 0x627   : > { %v2414_v9 = vmax.f32 %v2398_v46, 0.0 }
 0x628   : > { %v2420_v11 = vadd.f32 %v2413_v52, %v2412_v63  ;;  %v2415_v30 = vmax.f32 %v2400_v5, 0.0 }
 0x62a   : > { %v2423_v60 = vadd.f32 %v2415_v30, %v2414_v9  ;;  %v2403_v0 = vpop.f32.mrb[20].mxu1  ;;  %2421 = vadd.xlane.f32.xlu0 %v2420_v11 }
 0x62b   : > { %v2404_v23 = vadd.f32 %v2403_v0, %v4347_v45  ;;  %v2405_v50 = vpop.f32.mrb[21].mxu1 }
 0x62c   : > { %v2406_v61 = vadd.f32 %v2405_v50, %v4347_v45  ;;  %v2407_v29 = vpop.f32.mrb[22].mxu1  ;;  %2424 = vadd.xlane.f32.xlu1 %v2423_v60 }
 0x62d   : > { %v2416_v47 = vmax.f32 %v2404_v23, 0.0  ;;  %v2408_v49 = vadd.f32 %v2407_v29, %v4349_v19  ;;  %v2409_v6 = vpop.f32.mrb[23].mxu1 }
 0x62e   : > { %v2417_v40 = vmax.f32 %v2406_v61, 0.0  ;;  %v2410_v1 = vadd.f32 %v2409_v6, %v4349_v19  ;;  %v2683_v2 = vpop.f32.mrb[20].mxu0 }
 0x62f   : > { %v2418_v7 = vmax.f32 %v2408_v49, 0.0  ;;  %v2684_v4 = vadd.f32 %v2683_v2, %v4339_v56  ;;  %v2685_v12 = vpop.f32.mrb[21].mxu0 }
 0x630   : > { %v2426_v62 = vadd.f32 %v2417_v40, %v2416_v47  ;;  %v2419_v14 = vmax.f32 %v2410_v1, 0.0  ;;  %v2686_v8 = vadd.f32 %v2685_v12, %v4339_v56  ;;  %v2687_v54 = vpop.f32.mrb[22].mxu0 }
 0x631   : > { %v2702_v26 = vmax.f32 %v2684_v4, 0.0  ;;  %v2688_v43 = vadd.f32 %v2687_v54, %v4341_v53  ;;  %v2689_v41 = vpop.f32.mrb[23].mxu0 }
 0x632   : > { %v2429_v24 = vadd.f32 %v2419_v14, %v2418_v7  ;;  %v2703_v25 = vmax.f32 %v2686_v8, 0.0  ;;  %v2690_v36 = vadd.f32 %v2689_v41, %v4341_v53 }
 0x633   : > { %v2704_v59 = vmax.f32 %v2688_v43, 0.0 }
 0x634   : > { %v2710_v55 = vadd.f32 %v2703_v25, %v2702_v26  ;;  %v2705_v38 = vmax.f32 %v2690_v36, 0.0 }
 0x636   : > { %v2713_v44 = vadd.f32 %v2705_v38, %v2704_v59  ;;  %v2693_v10 = vpop.f32.mrb[24].mxu0  ;;  %2711 = vadd.xlane.f32.xlu0 %v2710_v55  ;;  %v233_v38 = vld [vmem:[%s4434_s1 + $0x18] sm:$0xff] }
 0x637   : > { %v2694_v20 = vadd.f32 %v2693_v10, %v4347_v45  ;;  %v2695_v31 = vpop.f32.mrb[25].mxu0  ;;  %v235_v10 = vld [vmem:[%s4434_s1 + $0x28] sm:$0xff] }
 0x638   : > { %v2696_v56 = vadd.f32 %v2695_v31, %v4347_v45  ;;  %v2697_v28 = vpop.f32.mrb[26].mxu0  ;;  %2714 = vadd.xlane.f32.xlu1 %v2713_v44  ;;  %v232_v45 = vld [vmem:[%s4434_s1 + $0x10] sm:$0xff]  ;;  %v234_v44 = vld [vmem:[%s4434_s1 + $0x20] sm:$0xff] }
 0x639   : > { %v2706_v13 = vmax.f32 %v2694_v20, 0.0  ;;  %v2698_v34 = vadd.f32 %v2697_v28, %v4349_v19  ;;  %v2699_v42 = vpop.f32.mrb[27].mxu0  ;;  %3194 = vmatprep.mubr.msk.f32.mxu1 %vm2754_vm14, %v232_v45  ;;  %v3344_v20 = vmov 0.0|0.0   ;;  %v240_v31 = vld [vmem:[%s4434_s1 + $0x50] sm:$0x3] }
 0x63a   : > { %v2707_v58 = vmax.f32 %v2696_v56, 0.0  ;;  %v2700_v53 = vadd.f32 %v2699_v42, %v4349_v19  ;;  %2427 = vadd.xlane.f32.xlu0 %v2426_v62  ;;  %v4451_v19 = vmov 16   ;;  %3219 = vmatprep.subr.bf16.mxu0 %v3344_v20  ;;  %v3346_v56 = vmov 0.0  }
 0x63b   : > { %v2708_v37 = vmax.f32 %v2698_v34, 0.0  ;;  %3204 = vmatprep.mubr.msk.f32.mxu0 %vm3345_vm15, %v3346_v56 }
 0x63c   : > { %v2716_v51 = vadd.f32 %v2707_v58, %v2706_v13  ;;  %v2709_v39 = vmax.f32 %v2700_v53, 0.0  ;;  %2430 = vadd.xlane.f32.xlu1 %v2429_v24 }
 0x63e   : > { %v2719_v57 = vadd.f32 %v2709_v39, %v2708_v37  ;;  %2717 = vadd.xlane.f32.xlu0 %v2716_v51 }
 0x640   : > { %2720 = vadd.xlane.f32.xlu1 %v2719_v57 }
 0x651   : > { %2743 = vperm.xlu1 %3282, %v4188_v21  }
 0x654   : > { %2739 = vperm.xlu0 %3281, %v4183_v18  }
 0x655   : > { %2747 = vperm.xlu1 %3282, %v4200_v3  }
 0x658   : > { %3284 = vset.pattern.permute.xlu0 %v4451_v19 }
 0x659   : > { %2751 = vperm.xlu1 %3282, %v4195_v27  }
 0x65d   : > { %3283 = vset.pattern.permute.xlu1 %v4451_v19 }
 0x65e   : > { %2880 = vperm.xlu1 %3283, %v240_v31  }
 0x677   : > { %v1842_v17 = vpop.xlane.xlu1 %1841 }
 0x678   : > { %v1852_v46 = vmul.f32 0.00390625, %v1842_v17 }
 0x679   : > { %v1845_v33 = vpop.xlane.xlu0 %1844 }
 0x67a   : > { %v1853_v32 = vmul.f32 0.00390625, %v1845_v33 }
 0x68f   : > { %v2132_v21 = vpop.xlane.xlu0 %2131 }
 0x690   : > { %v2142_v3 = vmul.f32 0.00390625, %v2132_v21 }
 0x691   : > { %v2135_v16 = vpop.xlane.xlu1 %2134 }
 0x692   : > { %v2143_v52 = vmul.f32 0.00390625, %v2135_v16  ;;  %v2726_v0 = vsel %vm388_vm6, %v1852_v46, %v2142_v3 }
 0x693   : > { %v1848_v35 = vpop.xlane.xlu0 %1847 }
 0x694   : > { %v2727_v60 = vsel %vm388_vm6, %v1853_v32, %v2143_v52  ;;  %v1854_v2 = vmul.f32 0.00390625, %v1848_v35 }
 0x695   : > { %v1851_v15 = vpop.xlane.xlu1 %1850 }
 0x696   : > { %v1855_v1 = vmul.f32 0.00390625, %v1851_v15 }
 0x697   : > { %v2138_v22 = vpop.xlane.xlu0 %2137 }
 0x698   : > { %v2144_v4 = vmul.f32 0.00390625, %v2138_v22 }
 0x699   : > { %v2141_v48 = vpop.xlane.xlu1 %2140 }
 0x69a   : > { %v2145_v7 = vmul.f32 0.00390625, %v2141_v48  ;;  %v2728_v43 = vsel %vm388_vm6, %v1854_v2, %v2144_v4 }
 0x69c   : > { %v2729_v26 = vsel %vm388_vm6, %v1855_v1, %v2145_v7 }
 0x6b7   : > { %v2422_v63 = vpop.xlane.xlu0 %2421 }
 0x6b8   : > { %v2432_v5 = vmul.f32 0.00390625, %v2422_v63 }
 0x6b9   : > { %v2425_v18 = vpop.xlane.xlu1 %2424 }
 0x6ba   : > { %v2433_v9 = vmul.f32 0.00390625, %v2425_v18  ;;  %v2730_v50 = vsel %vm1424_vm12, %v2726_v0, %v2432_v5 }
 0x6bc   : > { %v2731_v61 = vsel %vm1424_vm12, %v2727_v60, %v2433_v9 }
 0x6c3   : > { %v2712_v11 = vpop.xlane.xlu0 %2711 }
 0x6c4   : > { %v2722_v27 = vmul.f32 0.00390625, %v2712_v11 }
 0x6c5   : > { %v2715_v30 = vpop.xlane.xlu1 %2714 }
 0x6c6   : > { %v2723_v23 = vmul.f32 0.00390625, %v2715_v30  ;;  %v4394_v47 = vsel %vm1427_vm13, %v2730_v50, %v2722_v27 }
 0x6c7   : > { %v2428_v29 = vpop.xlane.xlu0 %2427 }
 0x6c8   : > { %v4397_v49 = vsel %vm1427_vm13, %v2731_v61, %v2723_v23  ;;  %v2434_v12 = vmul.f32 0.00390625, %v2428_v29 }
 0x6c9   : > { %v2431_v6 = vpop.xlane.xlu1 %2430  ;;  %v3211_v40 = vpack.c.bf16 %v4397_v49, %v4394_v47 }
 0x6ca   : > { %v2435_v62 = vmul.f32 0.00390625, %v2431_v6  ;;  %v2732_v24 = vsel %vm1424_vm12, %v2728_v43, %v2434_v12 }
 0x6cb   : > { %3212 = vmatprep.subr.bf16.mxu1 %v3211_v40  ;;  %v2718_v14 = vpop.xlane.xlu0 %2717 }
 0x6cc   : > { %v2724_v8 = vmul.f32 0.00390625, %v2718_v14  ;;  %3214 = vmatpush3.bf16.msra.mxu1 %v3211_v40  ;;  %v2733_v25 = vsel %vm1424_vm12, %v2729_v26, %v2435_v62 }
 0x6cd   : > { %v2721_v54 = vpop.xlane.xlu1 %2720 }
 0x6ce   : > { %v2725_v41 = vmul.f32 0.00390625, %v2721_v54  ;;  %v2736_v36 = vsel %vm1427_vm13, %v2732_v24, %v2724_v8 }
 0x6d0   : > { %v2737_v59 = vsel %vm1427_vm13, %v2733_v25, %v2725_v41 }
 0x6d1   : > { %v3215_v55 = vpack.c.bf16 %v2737_v59, %v2736_v36  ;;  %v2744_v28 = vpop.permute.xlu1 %2743 }
 0x6d3   : > { %3216 = vmatprep.subr.bf16.mxu1 %v3215_v55  ;;  %v2740_v34 = vpop.permute.xlu0 %2739 }
 0x6d4   : > { %3218 = vmatpush3.bf16.msra.mxu1 %v3215_v55 }
 0x6d5   : > { %v2748_v13 = vpop.permute.xlu1 %2747 }
 0x6d7   : > { %3195 = vmatmul.mubr.msk.f32.vlgmr.msra.gmra.mrb[24].mxu1 %vm2754_vm14, %v233_v38 }
 0x6d8   : > { %3197 = vmatprep.mubr.msk.f32.mxu1 %vm2754_vm14, %v234_v44 }
 0x6d9   : > { %v2752_v39 = vpop.permute.xlu1 %2751 }
 0x6db   : > { %3198 = vmatmul.mubr.msk.f32.gmra.mrb[26].mxu1 %vm2754_vm14, %v235_v10 }
 0x6dd   : > { %v2881_v1 = vpop.permute.xlu1 %2880 }
 0x7aa   : > { %v3196_v42 = vpop.f32.mrb[24].mxu1 }
 0x7ab   : > { %v2839_v58 = vadd.f32 %v3196_v42, %v2744_v28  ;;  %v2833_v53 = vpop.f32.mrb[25].mxu1 }
 0x7ac   : > { %v2834_v37 = vadd.f32 %v2833_v53, %v2740_v34 }
 0x7ad   : > { %v2853_v51 = vsub.f32 0.0, %v2839_v58 }
 0x7ae   : > { %v2852_v57 = vsub.f32 0.0, %v2834_v37  ;;  %v3199_v45 = vpop.f32.mrb[26].mxu1 }
 0x7af   : > { %v2858_v19 = vmul.f32 1.442695, %v2853_v51  ;;  %v2849_v33 = vadd.f32 %v3199_v45, %v2752_v39  ;;  %v2843_v17 = vpop.f32.mrb[27].mxu1 }
 0x7b0   : > { %v2856_v21 = vmul.f32 1.442695, %v2852_v57  ;;  %v2844_v16 = vadd.f32 %v2843_v17, %v2748_v13 }
 0x7b1   : > { %3306 = vpow2.f32 %v2858_v19  ;;  %v2855_v35 = vsub.f32 0.0, %v2849_v33 }
 0x7b2   : > { %3308 = vpow2.f32 %v2856_v21  ;;  %v2854_v15 = vsub.f32 0.0, %v2844_v16 }
 0x7b3   : > { %v2862_v22 = vmul.f32 1.442695, %v2855_v35 }
 0x7b4   : > { %v2860_v48 = vmul.f32 1.442695, %v2854_v15 }
 0x7b5   : > { %3310 = vpow2.f32 %v2862_v22 }
 0x7b6   : > { %3312 = vpow2.f32 %v2860_v48 }
 0x7bb   : > { %v3307_v63 = vpop.eup %3306 }
 0x7bc   : > { %v3309_v18 = vpop.eup %3308  ;;  %v2865_v46 = vadd.f32 1.0, %v3307_v63 }
 0x7bd   : > { %v2864_v32 = vadd.f32 1.0, %v3309_v18 }
 0x7be   : > { %3314 = vrcp.f32 %v2865_v46 }
 0x7bf   : > { %v3311_v52 = vpop.eup %3310  ;;  %3316 = vrcp.f32 %v2864_v32 }
 0x7c0   : > { %v3313_v3 = vpop.eup %3312  ;;  %v2867_v5 = vadd.f32 1.0, %v3311_v52 }
 0x7c1   : > { %v2866_v9 = vadd.f32 1.0, %v3313_v3 }
 0x7c2   : > { %3318 = vrcp.f32 %v2867_v5 }
 0x7c3   : > { %3320 = vrcp.f32 %v2866_v9 }
 0x7c8   : > { %v3315_v11 = vpop.eup %3314 }
 0x7c9   : > { %v3317_v27 = vpop.eup %3316  ;;  %v2873_v0 = vmul.f32 %v3315_v11, %v4397_v49 }
 0x7ca   : > { %v2872_v50 = vmul.f32 %v3317_v27, %v4394_v47 }
 0x7cc   : > { %v3319_v30 = vpop.eup %3318 }
 0x7cd   : > { %v3321_v60 = vpop.eup %3320  ;;  %v2875_v23 = vmul.f32 %v3319_v30, %v2737_v59 }
 0x7ce   : > { %v2874_v61 = vmul.f32 %v3321_v60, %v2736_v36 }
 0x7cf   : > { %v2877_v29 = vadd.f32 %v2875_v23, %v2873_v0 }
 0x7d0   : > { %v2876_v6 = vadd.f32 %v2874_v61, %v2872_v50 }
 0x7d2   : > { %v3220_v40 = vpack.c.bf16 %v2877_v29, %v2876_v6 }
 0x7d4   : > { %3221 = vmatpush3.bf16.msra.mxu0 %v3220_v40 }
 0x7d7   : > { %3205 = vmatmul.mubr.msk.f32.vlgmr.msra.gmra.mrb[10].mxu0 %vm327_vm9, %v240_v31 }
 0x8aa   : > { %v2951_v2 = vpop.f32.mrb[10].mxu0 }
 0x8ab   : > { %v2952_v49 = vadd.f32 %v2951_v2, %v2881_v1  ;;  %v3206_v7 = vpop.f32.mrb[11].mxu0 }
 0x8ad   : > { %2956 = vst.msk [vmem:[%s219_s18] sm:$0x3] %vm2955_vm0, %v2952_v49 }
 0x8ae PF: > { %s14_s15 = sadd.s32 1, %s3328_s15  }
 0x8af   : > { %p11_p5 = scmp.ge.s32.totalorder %s14_s15, 4  }
 0x8b1   :  { %13 = sbr.rel (!%p11_p5) target bundleno = 1 (0x1), region = 69 }

</bundles_post_ra>
